<compile_context>
chip_gen: v7x
topology: tpu7x:2x2x1
jax: 0.10.0
libtpu: 0.0.40
codegen_flags: <defaults>
</compile_context>

<pallas_src>
import numpy as np
import jax
import jax.numpy as jnp
from jax.experimental import pallas as pl
from jax.experimental.pallas import tpu as pltpu

_TB = 8          # images per grid step (batch tile)
_EPS = 1e-5      # BatchNorm eps (PyTorch default)


# ----------------------------------------------------------------------------
# Fused encoder kernel: all VMEM-resident matmuls + max / ELU.
# Activation layout inside the kernel: rows = (image, spatial row),
# lanes = (spatial col, channel) with channel minor.
# ----------------------------------------------------------------------------
def _encoder_kernel(x_ref,
                    d1_ref, t1_ref, p1_ref, b1_ref,
                    d2_ref, t2_ref, p2_ref, b2_ref,
                    d3_ref, t3_ref, b3_ref,
                    wd_ref, mk_ref, sr_ref, rs_ref, bd_ref,
                    o_ref):
    f32 = jnp.float32

    def mm(a, b):
        return jnp.dot(a, b, preferred_element_type=f32)

    def elu(v):
        return jnp.where(v > 0.0, v, jnp.exp(jnp.minimum(v, 0.0)) - 1.0)

    def conv_pool(x, d_ref, t_ref, p_ref, b_ref):
        # 3x3 conv (pad=1) as 3 row-Toeplitz matmuls with the 2x2 max-pool and
        # folded BN bias fused in; ELU applied to the pooled result
        # (valid because ELU is monotonic and the bias is per-channel).
        x_up = mm(d_ref[0], x)                       # row i-1 (0 at image top)
        x_dn = mm(d_ref[1], x)                       # row i+1 (0 at image bottom)
        y_e = mm(x_up, t_ref[0]) + mm(x, t_ref[1]) + mm(x_dn, t_ref[2])
        y_o = mm(x_up, t_ref[3]) + mm(x, t_ref[4]) + mm(x_dn, t_ref[5])
        yh = jnp.maximum(y_e, y_o)                                 # horiz 2->1
        yv = jnp.maximum(mm(p_ref[0], yh), mm(p_ref[1], yh))       # vert  2->1
        return elu(yv + b_ref[...])

    x = x_ref[...]                                       # (TB*28, 28)
    x2 = conv_pool(x, d1_ref, t1_ref, p1_ref, b1_ref)    # (TB*14, 14*16)
    x3 = conv_pool(x2, d2_ref, t2_ref, p2_ref, b2_ref)   # (TB*7,  7*8)

    # conv3 + bn3 + elu (no pool)
    x_up = mm(d3_ref[0], x3)
    x_dn = mm(d3_ref[1], x3)
    y3 = elu(mm(x_up, t3_ref[0]) + mm(x3, t3_ref[1]) + mm(x_dn, t3_ref[2])
             + b3_ref[...])                              # (TB*7, 56)

    # dense1 (flatten in PyTorch NCHW order folded into wd_ref) + dropout
    # (eval: identity) + elu.  One wide matmul against all 7 per-row weight
    # blocks, a per-row mask selecting the correct block, then two selection
    # matmuls reducing over the 7 rows of each image and the 7 lane blocks.
    y = mm(y3, wd_ref[...]) * mk_ref[...]                # (TB*7, 7*32)
    o_ref[...] = elu(mm(mm(sr_ref[...], y), rs_ref[...]) + bd_ref[...])  # (TB, 32)


# ----------------------------------------------------------------------------
# Wrapper: one pallas_call, gridded over batch tiles of _TB images.
# ----------------------------------------------------------------------------
def encoder_forward(img, kp):
    """img: (B, 1, 28, 28) NCHW float -> (B, 32)."""
    b = img.shape[0]
    bp = ((b + _TB - 1) // _TB) * _TB
    x = img.astype(jnp.float32).reshape(b * 28, 28)      # rows = (b, i), cols = w
    if bp != b:
        x = jnp.concatenate(
            [x, jnp.zeros(((bp - b) * 28, 28), jnp.float32)], axis=0)

    const_specs = [
        pl.BlockSpec((2, _TB * 28, _TB * 28), lambda t: (0, 0, 0)),   # d1
        pl.BlockSpec((6, 28, 224), lambda t: (0, 0, 0)),              # t1
        pl.BlockSpec((2, _TB * 14, _TB * 28), lambda t: (0, 0, 0)),   # p1
        pl.BlockSpec((1, 224), lambda t: (0, 0)),                     # b1
        pl.BlockSpec((2, _TB * 14, _TB * 14), lambda t: (0, 0, 0)),   # d2
        pl.BlockSpec((6, 224, 56), lambda t: (0, 0, 0)),              # t2
        pl.BlockSpec((2, _TB * 7, _TB * 14), lambda t: (0, 0, 0)),    # p2
        pl.BlockSpec((1, 56), lambda t: (0, 0)),                      # b2
        pl.BlockSpec((2, _TB * 7, _TB * 7), lambda t: (0, 0, 0)),     # d3
        pl.BlockSpec((3, 56, 56), lambda t: (0, 0, 0)),               # t3
        pl.BlockSpec((1, 56), lambda t: (0, 0)),                      # b3
        pl.BlockSpec((56, 7 * 32), lambda t: (0, 0)),                 # wd_stack
        pl.BlockSpec((_TB * 7, 7 * 32), lambda t: (0, 0)),            # mask
        pl.BlockSpec((_TB, _TB * 7), lambda t: (0, 0)),               # srow
        pl.BlockSpec((7 * 32, 32), lambda t: (0, 0)),                 # rsum
        pl.BlockSpec((1, 32), lambda t: (0, 0)),                      # bd
    ]
    out = pl.pallas_call(
        _encoder_kernel,
        out_shape=jax.ShapeDtypeStruct((bp, 32), jnp.float32),
        grid=(bp // _TB,),
        in_specs=[pl.BlockSpec((_TB * 28, 28), lambda t: (t, 0))] + const_specs,
        out_specs=pl.BlockSpec((_TB, 32), lambda t: (t, 0)),
        compiler_params=pltpu.CompilerParams(
            dimension_semantics=("parallel",)),
    )(x, kp["d1"], kp["t1"], kp["p1"], kp["b1"],
      kp["d2"], kp["t2"], kp["p2"], kp["b2"],
      kp["d3"], kp["t3"], kp["b3"],
      kp["wd"], kp["mk"], kp["sr"], kp["rs"], kp["bd"])
    return out[:b]


# ----------------------------------------------------------------------------
# Parameter preparation (init-time only, plain numpy): fold BN into conv
# weights/bias and build the structured matmul operands.
# ----------------------------------------------------------------------------
def build_kernel_params(raw, tb=_TB):
    def fold(w, b, g, be, m, v):
        w = np.asarray(w, np.float32); b = np.asarray(b, np.float32)
        g = np.asarray(g, np.float32); be = np.asarray(be, np.float32)
        m = np.asarray(m, np.float32); v = np.asarray(v, np.float32)
        s = g / np.sqrt(v + _EPS)
        return w * s[:, None, None, None], (b - m) * s + be

    def toeplitz(weff, win, jlist):
        # T[dh, jp*cin+ci, idx*cout+co] = Weff[co, ci, dh, jp - jlist[idx] + 1]
        cout, cin = weff.shape[0], weff.shape[1]
        t = np.zeros((3, win * cin, len(jlist) * cout), np.float32)
        for dh in range(3):
            for idx, j in enumerate(jlist):
                for dw in range(3):
                    jp = j + dw - 1
                    if 0 <= jp < win:
                        t[dh, jp * cin:(jp + 1) * cin,
                          idx * cout:(idx + 1) * cout] = weff[:, :, dh, dw].T
        return t

    def conv_split(weff, win):
        # even output columns (0..2) and odd output columns (3..5):
        # the horizontal half of the 2x2 pool folds into this split.
        te = toeplitz(weff, win, list(range(0, win, 2)))
        to = toeplitz(weff, win, list(range(1, win, 2)))
        return np.concatenate([te, to], axis=0)

    def row_shift(tb_, h):
        # [0]: picks row i-1 (zero at image top), [1]: picks row i+1 (zero at bottom)
        r = tb_ * h
        d = np.zeros((2, r, r), np.float32)
        for rr in range(r):
            if rr % h != 0:
                d[0, rr, rr - 1] = 1.0
            if rr % h != h - 1:
                d[1, rr, rr + 1] = 1.0
        return d

    def pool_rows(tb_, h):
        # [0]: even rows, [1]: odd rows (vertical half of the 2x2 pool)
        r, r2 = tb_ * h, tb_ * h // 2
        p = np.zeros((2, r2, r), np.float32)
        for k in range(r2):
            p[0, k, 2 * k] = 1.0
            p[1, k, 2 * k + 1] = 1.0
        return p

    w1, b1 = fold(raw["w1"], raw["b1"], raw["g1"], raw["be1"], raw["m1"], raw["v1"])
    w2, b2 = fold(raw["w2"], raw["b2"], raw["g2"], raw["be2"], raw["m2"], raw["v2"])
    w3, b3 = fold(raw["w3"], raw["b3"], raw["g3"], raw["be3"], raw["m3"], raw["v3"])

    # dense weight: PyTorch flatten order (c, i, j) -> kernel order (i, j, c).
    # wdk[i, j*8+c, o] = wd[o, c*49 + i*7 + j]
    wd = np.asarray(raw["wd"], np.float32)                     # (32, 392)
    wdk = np.transpose(wd.reshape(32, 8, 7, 7), (2, 3, 1, 0)).reshape(7, 56, 32)
    # wd_stack[jc, i*32+o] = wdk[i, jc, o]
    wd_stack = np.transpose(wdk, (1, 0, 2)).reshape(56, 7 * 32)
    # mask[r, l] = 1 iff (r % 7) == (l // 32): keeps the weight block that
    # matches this activation row's spatial-row index.
    mask = np.zeros((tb * 7, 7 * 32), np.float32)
    for r in range(tb * 7):
        i = r % 7
        mask[r, i * 32:(i + 1) * 32] = 1.0
    # srow sums the 7 spatial rows of each image; rsum sums the 7 lane blocks.
    srow = np.zeros((tb, tb * 7), np.float32)
    for bb in range(tb):
        srow[bb, bb * 7:(bb + 1) * 7] = 1.0
    rsum = np.zeros((7 * 32, 32), np.float32)
    for i in range(7):
        rsum[i * 32:(i + 1) * 32, :] = np.eye(32, dtype=np.float32)

    kp = {
        "d1": row_shift(tb, 28), "t1": conv_split(w1, 28),
        "p1": pool_rows(tb, 28), "b1": np.tile(b1, 14)[None, :],
        "d2": row_shift(tb, 14), "t2": conv_split(w2, 14),
        "p2": pool_rows(tb, 14), "b2": np.tile(b2, 7)[None, :],
        "d3": row_shift(tb, 7),  "t3": toeplitz(w3, 7, list(range(7))),
        "b3": np.tile(b3, 7)[None, :],
        "wd": wd_stack, "mk": mask, "sr": srow, "rs": rsum,
        "bd": np.asarray(raw["bd"], np.float32)[None, :],
    }
    return {k: jnp.asarray(v) for k, v in kp.items()}


def init_raw_params(key):
    ks = jax.random.split(key, 20)

    def conv(kw, kb, cin, cout, scale):
        return (scale * jax.random.normal(kw, (cout, cin, 3, 3), jnp.float32),
                0.1 * jax.random.normal(kb, (cout,), jnp.float32))

    def bn(kg, kb, km, kv, c):
        return (1.0 + 0.1 * jax.random.normal(kg, (c,), jnp.float32),
                0.1 * jax.random.normal(kb, (c,), jnp.float32),
                0.05 * jax.random.normal(km, (c,), jnp.float32),
                0.5 + jax.random.uniform(kv, (c,), jnp.float32))

    w1, b1 = conv(ks[0], ks[1], 1, 16, 0.3)
    g1, be1, m1, v1 = bn(ks[2], ks[3], ks[4], ks[5], 16)
    w2, b2 = conv(ks[6], ks[7], 16, 8, 0.1)
    g2, be2, m2, v2 = bn(ks[8], ks[9], ks[10], ks[11], 8)
    w3, b3 = conv(ks[12], ks[13], 8, 8, 0.1)
    g3, be3, m3, v3 = bn(ks[14], ks[15], ks[16], ks[17], 8)
    wd = 0.05 * jax.random.normal(ks[18], (32, 392), jnp.float32)
    bd = 0.1 * jax.random.normal(ks[19], (32,), jnp.float32)
    return dict(w1=w1, b1=b1, g1=g1, be1=be1, m1=m1, v1=v1,
                w2=w2, b2=b2, g2=g2, be2=be2, m2=m2, v2=v2,
                w3=w3, b3=b3, g3=g3, be3=be3, m3=m3, v3=v3,
                wd=wd, bd=bd)


# ----------------------------------------------------------------------------
# Pure-JAX reference (eval-mode PyTorch semantics) for validation.
# ----------------------------------------------------------------------------
def reference_forward(img, raw):
    hi = jax.lax.Precision.HIGHEST
    x = img.astype(jnp.float32)

    def block(x, w, b, g, be, m, v):
        y = jax.lax.conv_general_dilated(
            x, w, (1, 1), ((1, 1), (1, 1)),
            dimension_numbers=("NCHW", "OIHW", "NCHW"), precision=hi)
        y = y + b.reshape(1, -1, 1, 1)
        s = g / jnp.sqrt(v + _EPS)
        y = s.reshape(1, -1, 1, 1) * (y - m.reshape(1, -1, 1, 1)) \
            + be.reshape(1, -1, 1, 1)
        return jnp.where(y > 0, y, jnp.exp(jnp.minimum(y, 0.0)) - 1.0)

    def pool(x):
        b, c, h, w = x.shape
        return x.reshape(b, c, h // 2, 2, w // 2, 2).max(axis=(3, 5))

    x = block(x, raw["w1"], raw["b1"], raw["g1"], raw["be1"], raw["m1"], raw["v1"])
    x = pool(x)
    x = block(x, raw["w2"], raw["b2"], raw["g2"], raw["be2"], raw["m2"], raw["v2"])
    x = pool(x)
    x = block(x, raw["w3"], raw["b3"], raw["g3"], raw["be3"], raw["m3"], raw["v3"])
    feat = x.reshape(x.shape[0], 392)
    y = jnp.dot(feat, raw["wd"].T, precision=hi) + raw["bd"]
    return jnp.where(y > 0, y, jnp.exp(jnp.minimum(y, 0.0)) - 1.0)


if __name__ == "__main__":
    root = jax.random.PRNGKey(0)
    k_par, k_img = jax.random.split(root)
    raw = init_raw_params(k_par)
    kparams = build_kernel_params(raw)
    img = jax.random.normal(k_img, (2, 1, 28, 28), jnp.float32)

    out = jax.block_until_ready(jax.jit(encoder_forward)(img, kparams))
    assert out.shape == (2, 32) and out.dtype == jnp.float32
    assert bool(jnp.all(jnp.isfinite(out)))

    ref = jax.block_until_ready(reference_forward(img, raw))
    assert bool(jnp.allclose(out, ref, atol=5e-2, rtol=5e-2)), (
        float(jnp.max(jnp.abs(out - ref))))
    print("KERNEL_OK")
</pallas_src>

<mosaic_0001>
module attributes {stable_mosaic.version = 11 : i64} {
  func.func @_encoder_kernel(%arg0: i32, %arg1: memref<224x28xf32, #tpu.memory_space<vmem>>, %arg2: memref<2x224x224xf32, #tpu.memory_space<vmem>>, %arg3: memref<6x28x224xf32, #tpu.memory_space<vmem>>, %arg4: memref<2x112x224xf32, #tpu.memory_space<vmem>>, %arg5: memref<1x224xf32, #tpu.memory_space<vmem>>, %arg6: memref<2x112x112xf32, #tpu.memory_space<vmem>>, %arg7: memref<6x224x56xf32, #tpu.memory_space<vmem>>, %arg8: memref<2x56x112xf32, #tpu.memory_space<vmem>>, %arg9: memref<1x56xf32, #tpu.memory_space<vmem>>, %arg10: memref<2x56x56xf32, #tpu.memory_space<vmem>>, %arg11: memref<3x56x56xf32, #tpu.memory_space<vmem>>, %arg12: memref<1x56xf32, #tpu.memory_space<vmem>>, %arg13: memref<56x224xf32, #tpu.memory_space<vmem>>, %arg14: memref<56x224xf32, #tpu.memory_space<vmem>>, %arg15: memref<8x56xf32, #tpu.memory_space<vmem>>, %arg16: memref<224x32xf32, #tpu.memory_space<vmem>>, %arg17: memref<1x32xf32, #tpu.memory_space<vmem>>, %arg18: memref<8x32xf32, #tpu.memory_space<vmem>>) attributes {dimension_semantics = [#tpu.dimension_semantics<parallel>], iteration_bounds = array<i64: 1>, scalar_prefetch = 0 : i64, scratch_operands = 0 : i64, tpu.core_type = #tpu.core_type<tc>, window_params = [{transform_indices = @transform_0, window_bounds = array<i64: 224, 28>}, {pipeline_mode = #tpu.pipeline_mode<synchronous>, transform_indices = @transform_1, window_bounds = array<i64: 2, 224, 224>}, {pipeline_mode = #tpu.pipeline_mode<synchronous>, transform_indices = @transform_2, window_bounds = array<i64: 6, 28, 224>}, {pipeline_mode = #tpu.pipeline_mode<synchronous>, transform_indices = @transform_3, window_bounds = array<i64: 2, 112, 224>}, {pipeline_mode = #tpu.pipeline_mode<synchronous>, transform_indices = @transform_4, window_bounds = array<i64: 1, 224>}, {pipeline_mode = #tpu.pipeline_mode<synchronous>, transform_indices = @transform_5, window_bounds = array<i64: 2, 112, 112>}, {pipeline_mode = #tpu.pipeline_mode<synchronous>, transform_indices = @transform_6, window_bounds = array<i64: 6, 224, 56>}, {pipeline_mode = #tpu.pipeline_mode<synchronous>, transform_indices = @transform_7, window_bounds = array<i64: 2, 56, 112>}, {pipeline_mode = #tpu.pipeline_mode<synchronous>, transform_indices = @transform_8, window_bounds = array<i64: 1, 56>}, {pipeline_mode = #tpu.pipeline_mode<synchronous>, transform_indices = @transform_9, window_bounds = array<i64: 2, 56, 56>}, {pipeline_mode = #tpu.pipeline_mode<synchronous>, transform_indices = @transform_10, window_bounds = array<i64: 3, 56, 56>}, {pipeline_mode = #tpu.pipeline_mode<synchronous>, transform_indices = @transform_11, window_bounds = array<i64: 1, 56>}, {pipeline_mode = #tpu.pipeline_mode<synchronous>, transform_indices = @transform_12, window_bounds = array<i64: 56, 224>}, {pipeline_mode = #tpu.pipeline_mode<synchronous>, transform_indices = @transform_13, window_bounds = array<i64: 56, 224>}, {pipeline_mode = #tpu.pipeline_mode<synchronous>, transform_indices = @transform_14, window_bounds = array<i64: 8, 56>}, {pipeline_mode = #tpu.pipeline_mode<synchronous>, transform_indices = @transform_15, window_bounds = array<i64: 224, 32>}, {pipeline_mode = #tpu.pipeline_mode<synchronous>, transform_indices = @transform_16, window_bounds = array<i64: 1, 32>}, {transform_indices = @transform_17, window_bounds = array<i64: 8, 32>}]} {
    %c0 = arith.constant 0 : index
    %c0_0 = arith.constant 0 : index
    %0 = vector.load %arg1[%c0, %c0_0] : memref<224x28xf32, #tpu.memory_space<vmem>>, vector<224x28xf32>
    %c0_1 = arith.constant 0 : index
    %c0_2 = arith.constant 0 : index
    %c0_3 = arith.constant 0 : index
    %1 = vector.load %arg2[%c0_1, %c0_2, %c0_3] : memref<2x224x224xf32, #tpu.memory_space<vmem>>, vector<1x224x224xf32>
    %2 = vector.shape_cast %1 : vector<1x224x224xf32> to vector<224x224xf32>
    %cst = arith.constant dense<0.000000e+00> : vector<224x28xf32>
    %3 = tpu.matmul %2, %0, %cst {dimension_numbers = #tpu.dot_dimension_numbers<[1], [0], [0], [1], [0, 0, 1, 1], [], []>} : vector<224x224xf32>, vector<224x28xf32>, vector<224x28xf32> -> vector<224x28xf32>
    %c1 = arith.constant 1 : index
    %c0_4 = arith.constant 0 : index
    %c0_5 = arith.constant 0 : index
    %4 = vector.load %arg2[%c1, %c0_4, %c0_5] : memref<2x224x224xf32, #tpu.memory_space<vmem>>, vector<1x224x224xf32>
    %5 = vector.shape_cast %4 : vector<1x224x224xf32> to vector<224x224xf32>
    %cst_6 = arith.constant dense<0.000000e+00> : vector<224x28xf32>
    %6 = tpu.matmul %5, %0, %cst_6 {dimension_numbers = #tpu.dot_dimension_numbers<[1], [0], [0], [1], [0, 0, 1, 1], [], []>} : vector<224x224xf32>, vector<224x28xf32>, vector<224x28xf32> -> vector<224x28xf32>
    %c0_7 = arith.constant 0 : index
    %c0_8 = arith.constant 0 : index
    %c0_9 = arith.constant 0 : index
    %7 = vector.load %arg3[%c0_7, %c0_8, %c0_9] : memref<6x28x224xf32, #tpu.memory_space<vmem>>, vector<1x28x224xf32>
    %8 = vector.shape_cast %7 : vector<1x28x224xf32> to vector<28x224xf32>
    %cst_10 = arith.constant dense<0.000000e+00> : vector<224x224xf32>
    %9 = tpu.matmul %3, %8, %cst_10 {dimension_numbers = #tpu.dot_dimension_numbers<[1], [0], [0], [1], [0, 0, 1, 1], [], []>} : vector<224x28xf32>, vector<28x224xf32>, vector<224x224xf32> -> vector<224x224xf32>
    %c1_11 = arith.constant 1 : index
    %c0_12 = arith.constant 0 : index
    %c0_13 = arith.constant 0 : index
    %10 = vector.load %arg3[%c1_11, %c0_12, %c0_13] : memref<6x28x224xf32, #tpu.memory_space<vmem>>, vector<1x28x224xf32>
    %11 = vector.shape_cast %10 : vector<1x28x224xf32> to vector<28x224xf32>
    %cst_14 = arith.constant dense<0.000000e+00> : vector<224x224xf32>
    %12 = tpu.matmul %0, %11, %cst_14 {dimension_numbers = #tpu.dot_dimension_numbers<[1], [0], [0], [1], [0, 0, 1, 1], [], []>} : vector<224x28xf32>, vector<28x224xf32>, vector<224x224xf32> -> vector<224x224xf32>
    %13 = arith.addf %9, %12 : vector<224x224xf32>
    %c2 = arith.constant 2 : index
    %c0_15 = arith.constant 0 : index
    %c0_16 = arith.constant 0 : index
    %14 = vector.load %arg3[%c2, %c0_15, %c0_16] : memref<6x28x224xf32, #tpu.memory_space<vmem>>, vector<1x28x224xf32>
    %15 = vector.shape_cast %14 : vector<1x28x224xf32> to vector<28x224xf32>
    %cst_17 = arith.constant dense<0.000000e+00> : vector<224x224xf32>
    %16 = tpu.matmul %6, %15, %cst_17 {dimension_numbers = #tpu.dot_dimension_numbers<[1], [0], [0], [1], [0, 0, 1, 1], [], []>} : vector<224x28xf32>, vector<28x224xf32>, vector<224x224xf32> -> vector<224x224xf32>
    %17 = arith.addf %13, %16 : vector<224x224xf32>
    %c3 = arith.constant 3 : index
    %c0_18 = arith.constant 0 : index
    %c0_19 = arith.constant 0 : index
    %18 = vector.load %arg3[%c3, %c0_18, %c0_19] : memref<6x28x224xf32, #tpu.memory_space<vmem>>, vector<1x28x224xf32>
    %19 = vector.shape_cast %18 : vector<1x28x224xf32> to vector<28x224xf32>
    %cst_20 = arith.constant dense<0.000000e+00> : vector<224x224xf32>
    %20 = tpu.matmul %3, %19, %cst_20 {dimension_numbers = #tpu.dot_dimension_numbers<[1], [0], [0], [1], [0, 0, 1, 1], [], []>} : vector<224x28xf32>, vector<28x224xf32>, vector<224x224xf32> -> vector<224x224xf32>
    %c4 = arith.constant 4 : index
    %c0_21 = arith.constant 0 : index
    %c0_22 = arith.constant 0 : index
    %21 = vector.load %arg3[%c4, %c0_21, %c0_22] : memref<6x28x224xf32, #tpu.memory_space<vmem>>, vector<1x28x224xf32>
    %22 = vector.shape_cast %21 : vector<1x28x224xf32> to vector<28x224xf32>
    %cst_23 = arith.constant dense<0.000000e+00> : vector<224x224xf32>
    %23 = tpu.matmul %0, %22, %cst_23 {dimension_numbers = #tpu.dot_dimension_numbers<[1], [0], [0], [1], [0, 0, 1, 1], [], []>} : vector<224x28xf32>, vector<28x224xf32>, vector<224x224xf32> -> vector<224x224xf32>
    %24 = arith.addf %20, %23 : vector<224x224xf32>
    %c5 = arith.constant 5 : index
    %c0_24 = arith.constant 0 : index
    %c0_25 = arith.constant 0 : index
    %25 = vector.load %arg3[%c5, %c0_24, %c0_25] : memref<6x28x224xf32, #tpu.memory_space<vmem>>, vector<1x28x224xf32>
    %26 = vector.shape_cast %25 : vector<1x28x224xf32> to vector<28x224xf32>
    %cst_26 = arith.constant dense<0.000000e+00> : vector<224x224xf32>
    %27 = tpu.matmul %6, %26, %cst_26 {dimension_numbers = #tpu.dot_dimension_numbers<[1], [0], [0], [1], [0, 0, 1, 1], [], []>} : vector<224x28xf32>, vector<28x224xf32>, vector<224x224xf32> -> vector<224x224xf32>
    %28 = arith.addf %24, %27 : vector<224x224xf32>
    %29 = arith.maximumf %17, %28 : vector<224x224xf32>
    %c0_27 = arith.constant 0 : index
    %c0_28 = arith.constant 0 : index
    %c0_29 = arith.constant 0 : index
    %30 = vector.load %arg4[%c0_27, %c0_28, %c0_29] : memref<2x112x224xf32, #tpu.memory_space<vmem>>, vector<1x112x224xf32>
    %31 = vector.shape_cast %30 : vector<1x112x224xf32> to vector<112x224xf32>
    %cst_30 = arith.constant dense<0.000000e+00> : vector<112x224xf32>
    %32 = tpu.matmul %31, %29, %cst_30 {dimension_numbers = #tpu.dot_dimension_numbers<[1], [0], [0], [1], [0, 0, 1, 1], [], []>} : vector<112x224xf32>, vector<224x224xf32>, vector<112x224xf32> -> vector<112x224xf32>
    %c1_31 = arith.constant 1 : index
    %c0_32 = arith.constant 0 : index
    %c0_33 = arith.constant 0 : index
    %33 = vector.load %arg4[%c1_31, %c0_32, %c0_33] : memref<2x112x224xf32, #tpu.memory_space<vmem>>, vector<1x112x224xf32>
    %34 = vector.shape_cast %33 : vector<1x112x224xf32> to vector<112x224xf32>
    %cst_34 = arith.constant dense<0.000000e+00> : vector<112x224xf32>
    %35 = tpu.matmul %34, %29, %cst_34 {dimension_numbers = #tpu.dot_dimension_numbers<[1], [0], [0], [1], [0, 0, 1, 1], [], []>} : vector<112x224xf32>, vector<224x224xf32>, vector<112x224xf32> -> vector<112x224xf32>
    %36 = arith.maximumf %32, %35 : vector<112x224xf32>
    %c0_35 = arith.constant 0 : index
    %c0_36 = arith.constant 0 : index
    %37 = vector.load %arg5[%c0_35, %c0_36] : memref<1x224xf32, #tpu.memory_space<vmem>>, vector<1x224xf32>
    %38 = vector.broadcast %37 : vector<1x224xf32> to vector<112x224xf32>
    %39 = arith.addf %36, %38 : vector<112x224xf32>
    %cst_37 = arith.constant 0.000000e+00 : f32
    %40 = vector.broadcast %cst_37 : f32 to vector<112x224xf32>
    %41 = arith.cmpf ogt, %39, %40 : vector<112x224xf32>
    %cst_38 = arith.constant 0.000000e+00 : f32
    %42 = vector.broadcast %cst_38 : f32 to vector<112x224xf32>
    %43 = arith.minimumf %39, %42 : vector<112x224xf32>
    %44 = math.exp %43 : vector<112x224xf32>
    %cst_39 = arith.constant 1.000000e+00 : f32
    %45 = vector.broadcast %cst_39 : f32 to vector<112x224xf32>
    %46 = arith.subf %44, %45 : vector<112x224xf32>
    %47 = arith.select %41, %39, %46 : vector<112x224xi1>, vector<112x224xf32>
    %c0_40 = arith.constant 0 : index
    %c0_41 = arith.constant 0 : index
    %c0_42 = arith.constant 0 : index
    %48 = vector.load %arg6[%c0_40, %c0_41, %c0_42] : memref<2x112x112xf32, #tpu.memory_space<vmem>>, vector<1x112x112xf32>
    %49 = vector.shape_cast %48 : vector<1x112x112xf32> to vector<112x112xf32>
    %cst_43 = arith.constant dense<0.000000e+00> : vector<112x224xf32>
    %50 = tpu.matmul %49, %47, %cst_43 {dimension_numbers = #tpu.dot_dimension_numbers<[1], [0], [0], [1], [0, 0, 1, 1], [], []>} : vector<112x112xf32>, vector<112x224xf32>, vector<112x224xf32> -> vector<112x224xf32>
    %c1_44 = arith.constant 1 : index
    %c0_45 = arith.constant 0 : index
    %c0_46 = arith.constant 0 : index
    %51 = vector.load %arg6[%c1_44, %c0_45, %c0_46] : memref<2x112x112xf32, #tpu.memory_space<vmem>>, vector<1x112x112xf32>
    %52 = vector.shape_cast %51 : vector<1x112x112xf32> to vector<112x112xf32>
    %cst_47 = arith.constant dense<0.000000e+00> : vector<112x224xf32>
    %53 = tpu.matmul %52, %47, %cst_47 {dimension_numbers = #tpu.dot_dimension_numbers<[1], [0], [0], [1], [0, 0, 1, 1], [], []>} : vector<112x112xf32>, vector<112x224xf32>, vector<112x224xf32> -> vector<112x224xf32>
    %c0_48 = arith.constant 0 : index
    %c0_49 = arith.constant 0 : index
    %c0_50 = arith.constant 0 : index
    %54 = vector.load %arg7[%c0_48, %c0_49, %c0_50] : memref<6x224x56xf32, #tpu.memory_space<vmem>>, vector<1x224x56xf32>
    %55 = vector.shape_cast %54 : vector<1x224x56xf32> to vector<224x56xf32>
    %cst_51 = arith.constant dense<0.000000e+00> : vector<112x56xf32>
    %56 = tpu.matmul %50, %55, %cst_51 {dimension_numbers = #tpu.dot_dimension_numbers<[1], [0], [0], [1], [0, 0, 1, 1], [], []>} : vector<112x224xf32>, vector<224x56xf32>, vector<112x56xf32> -> vector<112x56xf32>
    %c1_52 = arith.constant 1 : index
    %c0_53 = arith.constant 0 : index
    %c0_54 = arith.constant 0 : index
    %57 = vector.load %arg7[%c1_52, %c0_53, %c0_54] : memref<6x224x56xf32, #tpu.memory_space<vmem>>, vector<1x224x56xf32>
    %58 = vector.shape_cast %57 : vector<1x224x56xf32> to vector<224x56xf32>
    %cst_55 = arith.constant dense<0.000000e+00> : vector<112x56xf32>
    %59 = tpu.matmul %47, %58, %cst_55 {dimension_numbers = #tpu.dot_dimension_numbers<[1], [0], [0], [1], [0, 0, 1, 1], [], []>} : vector<112x224xf32>, vector<224x56xf32>, vector<112x56xf32> -> vector<112x56xf32>
    %60 = arith.addf %56, %59 : vector<112x56xf32>
    %c2_56 = arith.constant 2 : index
    %c0_57 = arith.constant 0 : index
    %c0_58 = arith.constant 0 : index
    %61 = vector.load %arg7[%c2_56, %c0_57, %c0_58] : memref<6x224x56xf32, #tpu.memory_space<vmem>>, vector<1x224x56xf32>
    %62 = vector.shape_cast %61 : vector<1x224x56xf32> to vector<224x56xf32>
    %cst_59 = arith.constant dense<0.000000e+00> : vector<112x56xf32>
    %63 = tpu.matmul %53, %62, %cst_59 {dimension_numbers = #tpu.dot_dimension_numbers<[1], [0], [0], [1], [0, 0, 1, 1], [], []>} : vector<112x224xf32>, vector<224x56xf32>, vector<112x56xf32> -> vector<112x56xf32>
    %64 = arith.addf %60, %63 : vector<112x56xf32>
    %c3_60 = arith.constant 3 : index
    %c0_61 = arith.constant 0 : index
    %c0_62 = arith.constant 0 : index
    %65 = vector.load %arg7[%c3_60, %c0_61, %c0_62] : memref<6x224x56xf32, #tpu.memory_space<vmem>>, vector<1x224x56xf32>
    %66 = vector.shape_cast %65 : vector<1x224x56xf32> to vector<224x56xf32>
    %cst_63 = arith.constant dense<0.000000e+00> : vector<112x56xf32>
    %67 = tpu.matmul %50, %66, %cst_63 {dimension_numbers = #tpu.dot_dimension_numbers<[1], [0], [0], [1], [0, 0, 1, 1], [], []>} : vector<112x224xf32>, vector<224x56xf32>, vector<112x56xf32> -> vector<112x56xf32>
    %c4_64 = arith.constant 4 : index
    %c0_65 = arith.constant 0 : index
    %c0_66 = arith.constant 0 : index
    %68 = vector.load %arg7[%c4_64, %c0_65, %c0_66] : memref<6x224x56xf32, #tpu.memory_space<vmem>>, vector<1x224x56xf32>
    %69 = vector.shape_cast %68 : vector<1x224x56xf32> to vector<224x56xf32>
    %cst_67 = arith.constant dense<0.000000e+00> : vector<112x56xf32>
    %70 = tpu.matmul %47, %69, %cst_67 {dimension_numbers = #tpu.dot_dimension_numbers<[1], [0], [0], [1], [0, 0, 1, 1], [], []>} : vector<112x224xf32>, vector<224x56xf32>, vector<112x56xf32> -> vector<112x56xf32>
    %71 = arith.addf %67, %70 : vector<112x56xf32>
    %c5_68 = arith.constant 5 : index
    %c0_69 = arith.constant 0 : index
    %c0_70 = arith.constant 0 : index
    %72 = vector.load %arg7[%c5_68, %c0_69, %c0_70] : memref<6x224x56xf32, #tpu.memory_space<vmem>>, vector<1x224x56xf32>
    %73 = vector.shape_cast %72 : vector<1x224x56xf32> to vector<224x56xf32>
    %cst_71 = arith.constant dense<0.000000e+00> : vector<112x56xf32>
    %74 = tpu.matmul %53, %73, %cst_71 {dimension_numbers = #tpu.dot_dimension_numbers<[1], [0], [0], [1], [0, 0, 1, 1], [], []>} : vector<112x224xf32>, vector<224x56xf32>, vector<112x56xf32> -> vector<112x56xf32>
    %75 = arith.addf %71, %74 : vector<112x56xf32>
    %76 = arith.maximumf %64, %75 : vector<112x56xf32>
    %c0_72 = arith.constant 0 : index
    %c0_73 = arith.constant 0 : index
    %c0_74 = arith.constant 0 : index
    %77 = vector.load %arg8[%c0_72, %c0_73, %c0_74] : memref<2x56x112xf32, #tpu.memory_space<vmem>>, vector<1x56x112xf32>
    %78 = vector.shape_cast %77 : vector<1x56x112xf32> to vector<56x112xf32>
    %cst_75 = arith.constant dense<0.000000e+00> : vector<56x56xf32>
    %79 = tpu.matmul %78, %76, %cst_75 {dimension_numbers = #tpu.dot_dimension_numbers<[1], [0], [0], [1], [0, 0, 1, 1], [], []>} : vector<56x112xf32>, vector<112x56xf32>, vector<56x56xf32> -> vector<56x56xf32>
    %c1_76 = arith.constant 1 : index
    %c0_77 = arith.constant 0 : index
    %c0_78 = arith.constant 0 : index
    %80 = vector.load %arg8[%c1_76, %c0_77, %c0_78] : memref<2x56x112xf32, #tpu.memory_space<vmem>>, vector<1x56x112xf32>
    %81 = vector.shape_cast %80 : vector<1x56x112xf32> to vector<56x112xf32>
    %cst_79 = arith.constant dense<0.000000e+00> : vector<56x56xf32>
    %82 = tpu.matmul %81, %76, %cst_79 {dimension_numbers = #tpu.dot_dimension_numbers<[1], [0], [0], [1], [0, 0, 1, 1], [], []>} : vector<56x112xf32>, vector<112x56xf32>, vector<56x56xf32> -> vector<56x56xf32>
    %83 = arith.maximumf %79, %82 : vector<56x56xf32>
    %c0_80 = arith.constant 0 : index
    %c0_81 = arith.constant 0 : index
    %84 = vector.load %arg9[%c0_80, %c0_81] : memref<1x56xf32, #tpu.memory_space<vmem>>, vector<1x56xf32>
    %85 = vector.broadcast %84 : vector<1x56xf32> to vector<56x56xf32>
    %86 = arith.addf %83, %85 : vector<56x56xf32>
    %cst_82 = arith.constant 0.000000e+00 : f32
    %87 = vector.broadcast %cst_82 : f32 to vector<56x56xf32>
    %88 = arith.cmpf ogt, %86, %87 : vector<56x56xf32>
    %cst_83 = arith.constant 0.000000e+00 : f32
    %89 = vector.broadcast %cst_83 : f32 to vector<56x56xf32>
    %90 = arith.minimumf %86, %89 : vector<56x56xf32>
    %91 = math.exp %90 : vector<56x56xf32>
    %cst_84 = arith.constant 1.000000e+00 : f32
    %92 = vector.broadcast %cst_84 : f32 to vector<56x56xf32>
    %93 = arith.subf %91, %92 : vector<56x56xf32>
    %94 = arith.select %88, %86, %93 : vector<56x56xi1>, vector<56x56xf32>
    %c0_85 = arith.constant 0 : index
    %c0_86 = arith.constant 0 : index
    %c0_87 = arith.constant 0 : index
    %95 = vector.load %arg10[%c0_85, %c0_86, %c0_87] : memref<2x56x56xf32, #tpu.memory_space<vmem>>, vector<1x56x56xf32>
    %96 = vector.shape_cast %95 : vector<1x56x56xf32> to vector<56x56xf32>
    %cst_88 = arith.constant dense<0.000000e+00> : vector<56x56xf32>
    %97 = tpu.matmul %96, %94, %cst_88 {dimension_numbers = #tpu.dot_dimension_numbers<[1], [0], [0], [1], [0, 0, 1, 1], [], []>} : vector<56x56xf32>, vector<56x56xf32>, vector<56x56xf32> -> vector<56x56xf32>
    %c1_89 = arith.constant 1 : index
    %c0_90 = arith.constant 0 : index
    %c0_91 = arith.constant 0 : index
    %98 = vector.load %arg10[%c1_89, %c0_90, %c0_91] : memref<2x56x56xf32, #tpu.memory_space<vmem>>, vector<1x56x56xf32>
    %99 = vector.shape_cast %98 : vector<1x56x56xf32> to vector<56x56xf32>
    %cst_92 = arith.constant dense<0.000000e+00> : vector<56x56xf32>
    %100 = tpu.matmul %99, %94, %cst_92 {dimension_numbers = #tpu.dot_dimension_numbers<[1], [0], [0], [1], [0, 0, 1, 1], [], []>} : vector<56x56xf32>, vector<56x56xf32>, vector<56x56xf32> -> vector<56x56xf32>
    %c0_93 = arith.constant 0 : index
    %c0_94 = arith.constant 0 : index
    %c0_95 = arith.constant 0 : index
    %101 = vector.load %arg11[%c0_93, %c0_94, %c0_95] : memref<3x56x56xf32, #tpu.memory_space<vmem>>, vector<1x56x56xf32>
    %102 = vector.shape_cast %101 : vector<1x56x56xf32> to vector<56x56xf32>
    %cst_96 = arith.constant dense<0.000000e+00> : vector<56x56xf32>
    %103 = tpu.matmul %97, %102, %cst_96 {dimension_numbers = #tpu.dot_dimension_numbers<[1], [0], [0], [1], [0, 0, 1, 1], [], []>} : vector<56x56xf32>, vector<56x56xf32>, vector<56x56xf32> -> vector<56x56xf32>
    %c1_97 = arith.constant 1 : index
    %c0_98 = arith.constant 0 : index
    %c0_99 = arith.constant 0 : index
    %104 = vector.load %arg11[%c1_97, %c0_98, %c0_99] : memref<3x56x56xf32, #tpu.memory_space<vmem>>, vector<1x56x56xf32>
    %105 = vector.shape_cast %104 : vector<1x56x56xf32> to vector<56x56xf32>
    %cst_100 = arith.constant dense<0.000000e+00> : vector<56x56xf32>
    %106 = tpu.matmul %94, %105, %cst_100 {dimension_numbers = #tpu.dot_dimension_numbers<[1], [0], [0], [1], [0, 0, 1, 1], [], []>} : vector<56x56xf32>, vector<56x56xf32>, vector<56x56xf32> -> vector<56x56xf32>
    %107 = arith.addf %103, %106 : vector<56x56xf32>
    %c2_101 = arith.constant 2 : index
    %c0_102 = arith.constant 0 : index
    %c0_103 = arith.constant 0 : index
    %108 = vector.load %arg11[%c2_101, %c0_102, %c0_103] : memref<3x56x56xf32, #tpu.memory_space<vmem>>, vector<1x56x56xf32>
    %109 = vector.shape_cast %108 : vector<1x56x56xf32> to vector<56x56xf32>
    %cst_104 = arith.constant dense<0.000000e+00> : vector<56x56xf32>
    %110 = tpu.matmul %100, %109, %cst_104 {dimension_numbers = #tpu.dot_dimension_numbers<[1], [0], [0], [1], [0, 0, 1, 1], [], []>} : vector<56x56xf32>, vector<56x56xf32>, vector<56x56xf32> -> vector<56x56xf32>
    %111 = arith.addf %107, %110 : vector<56x56xf32>
    %c0_105 = arith.constant 0 : index
    %c0_106 = arith.constant 0 : index
    %112 = vector.load %arg12[%c0_105, %c0_106] : memref<1x56xf32, #tpu.memory_space<vmem>>, vector<1x56xf32>
    %113 = vector.broadcast %112 : vector<1x56xf32> to vector<56x56xf32>
    %114 = arith.addf %111, %113 : vector<56x56xf32>
    %cst_107 = arith.constant 0.000000e+00 : f32
    %115 = vector.broadcast %cst_107 : f32 to vector<56x56xf32>
    %116 = arith.cmpf ogt, %114, %115 : vector<56x56xf32>
    %cst_108 = arith.constant 0.000000e+00 : f32
    %117 = vector.broadcast %cst_108 : f32 to vector<56x56xf32>
    %118 = arith.minimumf %114, %117 : vector<56x56xf32>
    %119 = math.exp %118 : vector<56x56xf32>
    %cst_109 = arith.constant 1.000000e+00 : f32
    %120 = vector.broadcast %cst_109 : f32 to vector<56x56xf32>
    %121 = arith.subf %119, %120 : vector<56x56xf32>
    %122 = arith.select %116, %114, %121 : vector<56x56xi1>, vector<56x56xf32>
    %c0_110 = arith.constant 0 : index
    %c0_111 = arith.constant 0 : index
    %123 = vector.load %arg13[%c0_110, %c0_111] : memref<56x224xf32, #tpu.memory_space<vmem>>, vector<56x224xf32>
    %cst_112 = arith.constant dense<0.000000e+00> : vector<56x224xf32>
    %124 = tpu.matmul %122, %123, %cst_112 {dimension_numbers = #tpu.dot_dimension_numbers<[1], [0], [0], [1], [0, 0, 1, 1], [], []>} : vector<56x56xf32>, vector<56x224xf32>, vector<56x224xf32> -> vector<56x224xf32>
    %c0_113 = arith.constant 0 : index
    %c0_114 = arith.constant 0 : index
    %125 = vector.load %arg14[%c0_113, %c0_114] : memref<56x224xf32, #tpu.memory_space<vmem>>, vector<56x224xf32>
    %126 = arith.mulf %124, %125 : vector<56x224xf32>
    %c0_115 = arith.constant 0 : index
    %c0_116 = arith.constant 0 : index
    %127 = vector.load %arg15[%c0_115, %c0_116] : memref<8x56xf32, #tpu.memory_space<vmem>>, vector<8x56xf32>
    %cst_117 = arith.constant dense<0.000000e+00> : vector<8x224xf32>
    %128 = tpu.matmul %127, %126, %cst_117 {dimension_numbers = #tpu.dot_dimension_numbers<[1], [0], [0], [1], [0, 0, 1, 1], [], []>} : vector<8x56xf32>, vector<56x224xf32>, vector<8x224xf32> -> vector<8x224xf32>
    %c0_118 = arith.constant 0 : index
    %c0_119 = arith.constant 0 : index
    %129 = vector.load %arg16[%c0_118, %c0_119] : memref<224x32xf32, #tpu.memory_space<vmem>>, vector<224x32xf32>
    %cst_120 = arith.constant dense<0.000000e+00> : vector<8x32xf32>
    %130 = tpu.matmul %128, %129, %cst_120 {dimension_numbers = #tpu.dot_dimension_numbers<[1], [0], [0], [1], [0, 0, 1, 1], [], []>} : vector<8x224xf32>, vector<224x32xf32>, vector<8x32xf32> -> vector<8x32xf32>
    %c0_121 = arith.constant 0 : index
    %c0_122 = arith.constant 0 : index
    %131 = vector.load %arg17[%c0_121, %c0_122] : memref<1x32xf32, #tpu.memory_space<vmem>>, vector<1x32xf32>
    %132 = vector.broadcast %131 : vector<1x32xf32> to vector<8x32xf32>
    %133 = arith.addf %130, %132 : vector<8x32xf32>
    %cst_123 = arith.constant 0.000000e+00 : f32
    %134 = vector.broadcast %cst_123 : f32 to vector<8x32xf32>
    %135 = arith.cmpf ogt, %133, %134 : vector<8x32xf32>
    %cst_124 = arith.constant 0.000000e+00 : f32
    %136 = vector.broadcast %cst_124 : f32 to vector<8x32xf32>
    %137 = arith.minimumf %133, %136 : vector<8x32xf32>
    %138 = math.exp %137 : vector<8x32xf32>
    %cst_125 = arith.constant 1.000000e+00 : f32
    %139 = vector.broadcast %cst_125 : f32 to vector<8x32xf32>
    %140 = arith.subf %138, %139 : vector<8x32xf32>
    %141 = arith.select %135, %133, %140 : vector<8x32xi1>, vector<8x32xf32>
    %c0_126 = arith.constant 0 : index
    %c0_127 = arith.constant 0 : index
    %142 = vector.load %arg18[%c0_126, %c0_127] : memref<8x32xf32, #tpu.memory_space<vmem>>, vector<8x32xf32>
    tpu.vector_store %arg18[%c0_126, %c0_127], %141 {strides = array<i32>} : memref<8x32xf32, #tpu.memory_space<vmem>>, vector<8x32xf32>,
    return
  }
  func.func @transform_0(%arg0: i32) -> (i32, i32) {
    %c0_i32 = arith.constant 0 : i32
    %c0_i32_0 = arith.constant 0 : i32
    return %arg0, %c0_i32 : i32, i32
  }
  func.func @transform_1(%arg0: i32) -> (i32, i32, i32) {
    %c0_i32 = arith.constant 0 : i32
    %c0_i32_0 = arith.constant 0 : i32
    %c0_i32_1 = arith.constant 0 : i32
    %c0_i32_2 = arith.constant 0 : i32
    return %c0_i32, %c0_i32_0, %c0_i32_1 : i32, i32, i32
  }
  func.func @transform_2(%arg0: i32) -> (i32, i32, i32) {
    %c0_i32 = arith.constant 0 : i32
    %c0_i32_0 = arith.constant 0 : i32
    %c0_i32_1 = arith.constant 0 : i32
    %c0_i32_2 = arith.constant 0 : i32
    return %c0_i32, %c0_i32_0, %c0_i32_1 : i32, i32, i32
  }
  func.func @transform_3(%arg0: i32) -> (i32, i32, i32) {
    %c0_i32 = arith.constant 0 : i32
    %c0_i32_0 = arith.constant 0 : i32
    %c0_i32_1 = arith.constant 0 : i32
    %c0_i32_2 = arith.constant 0 : i32
    return %c0_i32, %c0_i32_0, %c0_i32_1 : i32, i32, i32
  }
  func.func @transform_4(%arg0: i32) -> (i32, i32) {
    %c0_i32 = arith.constant 0 : i32
    %c0_i32_0 = arith.constant 0 : i32
    %c0_i32_1 = arith.constant 0 : i32
    return %c0_i32, %c0_i32_0 : i32, i32
  }
  func.func @transform_5(%arg0: i32) -> (i32, i32, i32) {
    %c0_i32 = arith.constant 0 : i32
    %c0_i32_0 = arith.constant 0 : i32
    %c0_i32_1 = arith.constant 0 : i32
    %c0_i32_2 = arith.constant 0 : i32
    return %c0_i32, %c0_i32_0, %c0_i32_1 : i32, i32, i32
  }
  func.func @transform_6(%arg0: i32) -> (i32, i32, i32) {
    %c0_i32 = arith.constant 0 : i32
    %c0_i32_0 = arith.constant 0 : i32
    %c0_i32_1 = arith.constant 0 : i32
    %c0_i32_2 = arith.constant 0 : i32
    return %c0_i32, %c0_i32_0, %c0_i32_1 : i32, i32, i32
  }
  func.func @transform_7(%arg0: i32) -> (i32, i32, i32) {
    %c0_i32 = arith.constant 0 : i32
    %c0_i32_0 = arith.constant 0 : i32
    %c0_i32_1 = arith.constant 0 : i32
    %c0_i32_2 = arith.constant 0 : i32
    return %c0_i32, %c0_i32_0, %c0_i32_1 : i32, i32, i32
  }
  func.func @transform_8(%arg0: i32) -> (i32, i32) {
    %c0_i32 = arith.constant 0 : i32
    %c0_i32_0 = arith.constant 0 : i32
    %c0_i32_1 = arith.constant 0 : i32
    return %c0_i32, %c0_i32_0 : i32, i32
  }
  func.func @transform_9(%arg0: i32) -> (i32, i32, i32) {
    %c0_i32 = arith.constant 0 : i32
    %c0_i32_0 = arith.constant 0 : i32
    %c0_i32_1 = arith.constant 0 : i32
    %c0_i32_2 = arith.constant 0 : i32
    return %c0_i32, %c0_i32_0, %c0_i32_1 : i32, i32, i32
  }
  func.func @transform_10(%arg0: i32) -> (i32, i32, i32) {
    %c0_i32 = arith.constant 0 : i32
    %c0_i32_0 = arith.constant 0 : i32
    %c0_i32_1 = arith.constant 0 : i32
    %c0_i32_2 = arith.constant 0 : i32
    return %c0_i32, %c0_i32_0, %c0_i32_1 : i32, i32, i32
  }
  func.func @transform_11(%arg0: i32) -> (i32, i32) {
    %c0_i32 = arith.constant 0 : i32
    %c0_i32_0 = arith.constant 0 : i32
    %c0_i32_1 = arith.constant 0 : i32
    return %c0_i32, %c0_i32_0 : i32, i32
  }
  func.func @transform_12(%arg0: i32) -> (i32, i32) {
    %c0_i32 = arith.constant 0 : i32
    %c0_i32_0 = arith.constant 0 : i32
    %c0_i32_1 = arith.constant 0 : i32
    return %c0_i32, %c0_i32_0 : i32, i32
  }
  func.func @transform_13(%arg0: i32) -> (i32, i32) {
    %c0_i32 = arith.constant 0 : i32
    %c0_i32_0 = arith.constant 0 : i32
    %c0_i32_1 = arith.constant 0 : i32
    return %c0_i32, %c0_i32_0 : i32, i32
  }
  func.func @transform_14(%arg0: i32) -> (i32, i32) {
    %c0_i32 = arith.constant 0 : i32
    %c0_i32_0 = arith.constant 0 : i32
    %c0_i32_1 = arith.constant 0 : i32
    return %c0_i32, %c0_i32_0 : i32, i32
  }
  func.func @transform_15(%arg0: i32) -> (i32, i32) {
    %c0_i32 = arith.constant 0 : i32
    %c0_i32_0 = arith.constant 0 : i32
    %c0_i32_1 = arith.constant 0 : i32
    return %c0_i32, %c0_i32_0 : i32, i32
  }
  func.func @transform_16(%arg0: i32) -> (i32, i32) {
    %c0_i32 = arith.constant 0 : i32
    %c0_i32_0 = arith.constant 0 : i32
    %c0_i32_1 = arith.constant 0 : i32
    return %c0_i32, %c0_i32_0 : i32, i32
  }
  func.func @transform_17(%arg0: i32) -> (i32, i32) {
    %c0_i32 = arith.constant 0 : i32
    %c0_i32_0 = arith.constant 0 : i32
    return %arg0, %c0_i32 : i32, i32
  }
}

</mosaic_0001>

<bundles_post_ra>
// kernel: encoder_forward.1
= control target key start
LH: loop header
LB: loop body
LE: loop exit
PB: predicated region body
PF: predicated region fallthrough
CT: control target
= control target key end

     0   :  { %v8657_v0 = vmov 0.0|0.0   ;;  %vm140_vm0 = vcmask 785408   ;;  %vm878_vm1 = vcmask 1043456   ;;  %vm8658_vm2 = vmmov 1   ;;  %s12219_s0 = inlined_call_operand.vmem [shape: f32[224,28], index: 0, kind: input, shape index: {}]   ;;  %s12220_s1 = inlined_call_operand.vmem [shape: f32[2,224,224], index: 1, kind: input, shape index: {}]   ;;  %s12221_s2 = inlined_call_operand.vmem [shape: f32[6,28,224], index: 2, kind: input, shape index: {}]   ;;  %s12222_s3 = inlined_call_operand.vmem [shape: f32[2,112,224], index: 3, kind: input, shape index: {}]   ;;  %s12223_s4 = inlined_call_operand.vmem [shape: f32[1,224], index: 4, kind: input, shape index: {}]   ;;  %s12224_s6 = inlined_call_operand.vmem [shape: f32[6,224,56], index: 6, kind: input, shape index: {}]   ;;  %s12225_s5 = inlined_call_operand.vmem [shape: f32[2,112,112], index: 5, kind: input, shape index: {}]   ;;  %s12226_s7 = inlined_call_operand.vmem [shape: f32[2,56,112], index: 7, kind: input, shape index: {}]   ;;  %s12227_s8 = inlined_call_operand.vmem [shape: f32[1,56], index: 8, kind: input, shape index: {}]   ;;  %s12228_s10 = inlined_call_operand.vmem [shape: f32[3,56,56], index: 10, kind: input, shape index: {}]   ;;  %s12229_s9 = inlined_call_operand.vmem [shape: f32[2,56,56], index: 9, kind: input, shape index: {}]   ;;  %s12230_s12 = inlined_call_operand.vmem [shape: f32[56,224], index: 12, kind: input, shape index: {}]   ;;  %s12231_s11 = inlined_call_operand.vmem [shape: f32[1,56], index: 11, kind: input, shape index: {}]   ;;  %s12232_s15 = inlined_call_operand.vmem [shape: f32[224,32], index: 15, kind: input, shape index: {}]   ;;  %s12233_s13 = inlined_call_operand.vmem [shape: f32[56,224], index: 13, kind: input, shape index: {}]   ;;  %s12234_s14 = inlined_call_operand.vmem [shape: f32[8,56], index: 14, kind: input, shape index: {}]   ;;  %s12235_s16 = inlined_call_operand.vmem [shape: f32[1,32], index: 16, kind: input, shape index: {}]   ;;  %s12236_s17 = inlined_call_operand.vmem [shape: f32[8,32], index: 17, kind: output, shape index: {}]  }
   0x1   :  { %12239 = sst [smem:[#allocation2_spill]] %s12219_s0  ;;  %7486 = vmatprep.subr.bf16.mxu0 %v8657_v0  ;;  %8203 = vmatprep.subr.bf16.mxu1 %v8657_v0  ;;  %v6542_v44 = vld [vmem:[%s12221_s2 + $0x108] sm:$0xff]  ;;  %v6544_v45 = vld [vmem:[%s12221_s2 + $0x118] sm:$0xff]  ;;  %v6541_v48 = vld [vmem:[%s12221_s2 + $0x100] sm:$0xff]  ;;  %vm793_vm4 = vcmask 228352  }
   0x2   :  { %12240 = sst [smem:[#allocation3_spill]] %s12220_s1  ;;  %s12241_s26 = sld [smem:[#allocation2_spill]]  ;;  %v7600_v47 = vpack.c.bf16 %v6544_v45, %v6542_v44  ;;  %v6543_v49 = vld [vmem:[%s12221_s2 + $0x110] sm:$0xff]  ;;  %v6546_v50 = vld [vmem:[%s12221_s2 + $0x128] sm:$0xff]  ;;  %v6548_v51 = vld [vmem:[%s12221_s2 + $0x138] sm:$0xf] }
   0x3   :  { %s12242_s29 = sld [smem:[#allocation3_spill]]  ;;  %v7602_v56 = vpack.c.bf16 %v6543_v49, %v6541_v48  ;;  %v7604_v57 = vpack.c.bf16 %v6548_v51, %v6546_v50  ;;  %v6545_v58 = vld [vmem:[%s12221_s2 + $0x120] sm:$0xff]  ;;  %v6547_v59 = vld [vmem:[%s12221_s2 + $0x130] sm:$0xf]  ;;  %vm9048_vm3 = vmpackc.low %vm878_vm1, %vm8658_vm2 }
   0x4   :  { %v6534_v44 = vld [vmem:[%s12221_s2 + $0xc8] sm:$0xff] }
   0x8   :  { %v8756_v1 = vld [vmem:[%s12241_s26] sm:$0xff]  ;;  %v8761_v2 = vld [vmem:[%s12241_s26 + $0x8] sm:$0xff]  ;;  %v8766_v3 = vld [vmem:[%s12241_s26 + $0x10] sm:$0xff] }
   0x9   :  { %v8770_v4 = vpack.c.bf16 %v8761_v2, %v8756_v1  ;;  %v8775_v5 = vld [vmem:[%s12241_s26 + $0x18] sm:$0xff]  ;;  %v8788_v7 = vld [vmem:[%s12241_s26 + $0x20] sm:$0xff]  ;;  %v8793_v8 = vld [vmem:[%s12241_s26 + $0x28] sm:$0xff] }
   0xa   :  { %v8781_v6 = vpack.c.bf16 %v8775_v5, %v8766_v3  ;;  %v8799_v9 = vpack.c.bf16 %v8793_v8, %v8788_v7  ;;  %v8806_v10 = vld [vmem:[%s12241_s26 + $0x30] sm:$0xff]  ;;  %v8811_v11 = vld [vmem:[%s12241_s26 + $0x38] sm:$0xff]  ;;  %v85_v12 = vld [vmem:[%s12242_s29 + $0x8] sm:$0xff] }
   0xb   :  { %7488 = vmatpush1.bf16.msra.mxu0 %v8770_v4  ;;  %8217 = vmatpush1.bf16.msra.mxu1 %v8770_v4  ;;  %v6350_v13 = vld [vmem:[%s12242_s29 + $0x1f8] sm:$0xff]  ;;  %v8825_v14 = vpack.c.bf16 %v8811_v11, %v8806_v10  ;;  %v8832_v15 = vld [vmem:[%s12241_s26 + $0x40] sm:$0xff]  ;;  %v8837_v16 = vld [vmem:[%s12241_s26 + $0x48] sm:$0xff] }
   0xc   :  { %7489 = vmatprep.subr.bf16.mxu0 %v8657_v0  ;;  %8204 = vmatprep.subr.bf16.mxu1 %v8657_v0  ;;  %v8843_v17 = vpack.c.bf16 %v8837_v16, %v8832_v15  ;;  %v8850_v18 = vld [vmem:[%s12241_s26 + $0x50] sm:$0xff]  ;;  %v8855_v19 = vld [vmem:[%s12241_s26 + $0x58] sm:$0xff]  ;;  %v8868_v21 = vld [vmem:[%s12241_s26 + $0x60] sm:$0xff] }
   0xd   :  { %6315 = vmatprep.mubr.msk.f32.mxu0 %vm140_vm0, %v85_v12  ;;  %6402 = vmatprep.mubr.msk.f32.mxu1 %vm140_vm0, %v6350_v13  ;;  %v8861_v20 = vpack.c.bf16 %v8855_v19, %v8850_v18  ;;  %v8873_v22 = vld [vmem:[%s12241_s26 + $0x68] sm:$0xff]  ;;  %v8886_v24 = vld [vmem:[%s12241_s26 + $0x70] sm:$0xff]  ;;  %v8891_v25 = vld [vmem:[%s12241_s26 + $0x78] sm:$0xff]  ;;  %v7607_v13 = vpack.c.bf16 %v6547_v59, %v6545_v58 }
   0xe   :  { %v8879_v23 = vpack.c.bf16 %v8873_v22, %v8868_v21  ;;  %v8897_v26 = vpack.c.bf16 %v8891_v25, %v8886_v24  ;;  %v8904_v27 = vld [vmem:[%s12241_s26 + $0x80] sm:$0xff]  ;;  %v8909_v28 = vld [vmem:[%s12241_s26 + $0x88] sm:$0xff]  ;;  %v8922_v30 = vld [vmem:[%s12241_s26 + $0x90] sm:$0xff] }
   0xf   :  { %7491 = vmatpush1.bf16.msra.mxu0 %v8781_v6  ;;  %8218 = vmatpush1.bf16.msra.mxu1 %v8781_v6  ;;  %v8915_v29 = vpack.c.bf16 %v8909_v28, %v8904_v27  ;;  %v8927_v31 = vld [vmem:[%s12241_s26 + $0x98] sm:$0xff]  ;;  %v8940_v33 = vld [vmem:[%s12241_s26 + $0xa0] sm:$0xff]  ;;  %v8945_v34 = vld [vmem:[%s12241_s26 + $0xa8] sm:$0xff] }
  0x10   :  { %7492 = vmatprep.subr.bf16.mxu0 %v8657_v0  ;;  %8205 = vmatprep.subr.bf16.mxu1 %v8657_v0  ;;  %v8933_v32 = vpack.c.bf16 %v8927_v31, %v8922_v30  ;;  %v8951_v35 = vpack.c.bf16 %v8945_v34, %v8940_v33  ;;  %v8958_v36 = vld [vmem:[%s12241_s26 + $0xb0] sm:$0xff]  ;;  %v8963_v37 = vld [vmem:[%s12241_s26 + $0xb8] sm:$0xff]  ;;  %v8976_v39 = vld [vmem:[%s12241_s26 + $0xc0] sm:$0xff] }
  0x11   :  { %v8969_v38 = vpack.c.bf16 %v8963_v37, %v8958_v36  ;;  %v8981_v40 = vld [vmem:[%s12241_s26 + $0xc8] sm:$0xff]  ;;  %v8994_v42 = vld [vmem:[%s12241_s26 + $0xd0] sm:$0xff]  ;;  %v8999_v43 = vld [vmem:[%s12241_s26 + $0xd8] sm:$0xff] }
  0x12   :  { %v8987_v41 = vpack.c.bf16 %v8981_v40, %v8976_v39  ;;  %v9011_v46 = vpack.c.bf16 %v8999_v43, %v8994_v42  ;;  %v84_v52 = vld [vmem:[%s12242_s29] sm:$0xff]  ;;  %v6349_v53 = vld [vmem:[%s12242_s29 + $0x1f0] sm:$0xff]  ;;  %v87_v54 = vld [vmem:[%s12242_s29 + $0x18] sm:$0xff] }
  0x13   :  { %7494 = vmatpush1.bf16.msra.mxu0 %v8799_v9  ;;  %8219 = vmatpush1.bf16.msra.mxu1 %v8799_v9  ;;  %v6352_v55 = vld [vmem:[%s12242_s29 + $0x208] sm:$0xff]  ;;  %v86_v61 = vld [vmem:[%s12242_s29 + $0x10] sm:$0xff]  ;;  %v6351_v62 = vld [vmem:[%s12242_s29 + $0x200] sm:$0xff] }
  0x14   :  { %7495 = vmatprep.subr.bf16.mxu0 %v8657_v0  ;;  %8206 = vmatprep.subr.bf16.mxu1 %v8657_v0  ;;  %v89_v63 = vld [vmem:[%s12242_s29 + $0x28] sm:$0xff]  ;;  %v6354_v12 = vld [vmem:[%s12242_s29 + $0x218] sm:$0xff]  ;;  %v6353_v45 = vld [vmem:[%s12242_s29 + $0x210] sm:$0xff] }
  0x15   :  { %v91_v48 = vld [vmem:[%s12242_s29 + $0x38] sm:$0xff]  ;;  %v6356_v49 = vld [vmem:[%s12242_s29 + $0x228] sm:$0xff]  ;;  %v90_v51 = vld [vmem:[%s12242_s29 + $0x30] sm:$0xff] }
  0x16   :  { %v6359_v58 = vld [vmem:[%s12242_s29 + $0x240] sm:$0xff]  ;;  %v6362_v59 = vld [vmem:[%s12242_s29 + $0x258] sm:$0xff] }
  0x17   :  { %7497 = vmatpush1.bf16.msra.mxu0 %v8825_v14  ;;  %8220 = vmatpush1.bf16.msra.mxu1 %v8825_v14 }
  0x18   :  { %7498 = vmatprep.subr.bf16.mxu0 %v8657_v0  ;;  %8207 = vmatprep.subr.bf16.mxu1 %v8657_v0 }
  0x1b   :  { %7500 = vmatpush1.bf16.msra.mxu0 %v8843_v17  ;;  %8221 = vmatpush1.bf16.msra.mxu1 %v8843_v17 }
  0x1c   :  { %7501 = vmatprep.subr.bf16.mxu0 %v8657_v0  ;;  %8208 = vmatprep.subr.bf16.mxu1 %v8657_v0 }
  0x1f   :  { %7503 = vmatpush1.bf16.msra.mxu0 %v8861_v20  ;;  %8222 = vmatpush1.bf16.msra.mxu1 %v8861_v20 }
  0x20   :  { %7504 = vmatprep.subr.bf16.mxu0 %v8657_v0  ;;  %8209 = vmatprep.subr.bf16.mxu1 %v8657_v0 }
  0x23   :  { %7506 = vmatpush1.bf16.msra.mxu0 %v8879_v23  ;;  %8223 = vmatpush1.bf16.msra.mxu1 %v8879_v23 }
  0x24   :  { %7507 = vmatprep.subr.bf16.mxu0 %v8657_v0  ;;  %8210 = vmatprep.subr.bf16.mxu1 %v8657_v0 }
  0x27   :  { %7509 = vmatpush1.bf16.msra.mxu0 %v8897_v26  ;;  %8224 = vmatpush1.bf16.msra.mxu1 %v8897_v26 }
  0x28   :  { %7510 = vmatprep.subr.bf16.mxu0 %v8657_v0  ;;  %8211 = vmatprep.subr.bf16.mxu1 %v8657_v0 }
  0x2b   :  { %7512 = vmatpush1.bf16.msra.mxu0 %v8915_v29  ;;  %8225 = vmatpush1.bf16.msra.mxu1 %v8915_v29 }
  0x2c   :  { %7513 = vmatprep.subr.bf16.mxu0 %v8657_v0  ;;  %8212 = vmatprep.subr.bf16.mxu1 %v8657_v0 }
  0x2f   :  { %7515 = vmatpush1.bf16.msra.mxu0 %v8933_v32  ;;  %8226 = vmatpush1.bf16.msra.mxu1 %v8933_v32 }
  0x30   :  { %7516 = vmatprep.subr.bf16.mxu0 %v8657_v0  ;;  %8213 = vmatprep.subr.bf16.mxu1 %v8657_v0 }
  0x33   :  { %7518 = vmatpush1.bf16.msra.mxu0 %v8951_v35  ;;  %8227 = vmatpush1.bf16.msra.mxu1 %v8951_v35 }
  0x34   :  { %7519 = vmatprep.subr.bf16.mxu0 %v8657_v0  ;;  %8214 = vmatprep.subr.bf16.mxu1 %v8657_v0 }
  0x37   :  { %7521 = vmatpush1.bf16.msra.mxu0 %v8969_v38  ;;  %8228 = vmatpush1.bf16.msra.mxu1 %v8969_v38 }
  0x38   :  { %7522 = vmatprep.subr.bf16.mxu0 %v8657_v0  ;;  %8215 = vmatprep.subr.bf16.mxu1 %v8657_v0 }
  0x3b   :  { %7524 = vmatpush1.bf16.msra.mxu0 %v8987_v41  ;;  %8229 = vmatpush1.bf16.msra.mxu1 %v8987_v41 }
  0x3c   :  { %7525 = vmatprep.subr.bf16.mxu0 %v8657_v0  ;;  %8216 = vmatprep.subr.bf16.mxu1 %v8657_v0 }
  0x3f   :  { %7527 = vmatpush1.bf16.msra.mxu0 %v9011_v46  ;;  %8230 = vmatpush1.bf16.msra.mxu1 %v9011_v46 }
  0x40   :  { %7528 = vmatprep.subr.bf16.mxu0 %v8657_v0  ;;  %7601 = vmatprep.subr.bf16.mxu1 %v7600_v47  ;;  %v6536_v47 = vld [vmem:[%s12221_s2 + $0xd8] sm:$0xff] }
  0x41   :  { %v7610_v50 = vpack.c.bf16 %v6536_v47, %v6534_v44  ;;  %v6366_v44 = vld [vmem:[%s12242_s29 + $0x278] sm:$0xff]  ;;  %v6368_v47 = vld [vmem:[%s12242_s29 + $0x288] sm:$0xff] }
  0x42   :  { %290 = vmatmul.mubr.f32.vlgmr.msra.gmra.mrb[0].mxu0 %v84_v52  ;;  %651 = vmatmul.mubr.f32.vlgmr.msra.gmra.mrb[0].mxu1 %v6349_v53  ;;  %v93_v52 = vld [vmem:[%s12242_s29 + $0x48] sm:$0xff]  ;;  %v6358_v53 = vld [vmem:[%s12242_s29 + $0x238] sm:$0xff] }
  0x43   :  { %6316 = vmatprep.mubr.msk.f32.mxu0 %vm140_vm0, %v87_v54  ;;  %6403 = vmatprep.mubr.msk.f32.mxu1 %vm140_vm0, %v6352_v55  ;;  %v92_v54 = vld [vmem:[%s12242_s29 + $0x40] sm:$0xff]  ;;  %v6357_v55 = vld [vmem:[%s12242_s29 + $0x230] sm:$0xff] }
  0x44   :  { %7530 = vmatpush1.bf16.msra.mxu0 %v8770_v4  ;;  %7603 = vmatpush1.bf16.msra.mxu1 %v7602_v56  ;;  %v88_v4 = vld [vmem:[%s12242_s29 + $0x20] sm:$0xff]  ;;  %v6360_v56 = vld [vmem:[%s12242_s29 + $0x248] sm:$0xff] }
  0x45   :  { %7531 = vmatprep.subr.bf16.mxu0 %v8657_v0  ;;  %7606 = vmatprep.subr.msk.bf16.mxu1 %vm9048_vm3, %v7604_v57  ;;  %v94_v57 = vld [vmem:[%s12242_s29 + $0x50] sm:$0xff] }
  0x46   :  { %295 = vmatmul.mubr.f32.gmra.mrb[2].mxu0 %v86_v61  ;;  %656 = vmatmul.mubr.f32.gmra.mrb[2].mxu1 %v6351_v62  ;;  %v96_v61 = vld [vmem:[%s12242_s29 + $0x60] sm:$0xff]  ;;  %v6361_v62 = vld [vmem:[%s12242_s29 + $0x250] sm:$0xff] }
  0x47   :  { %6317 = vmatprep.mubr.msk.f32.mxu0 %vm140_vm0, %v89_v63  ;;  %6404 = vmatprep.mubr.msk.f32.mxu1 %vm140_vm0, %v6354_v12  ;;  %v6364_v63 = vld [vmem:[%s12242_s29 + $0x268] sm:$0xff]  ;;  %v98_v12 = vld [vmem:[%s12242_s29 + $0x70] sm:$0xff] }
  0x48   :  { %7533 = vmatpush1.bf16.msra.mxu0 %v8781_v6  ;;  %7609 = vmatpush1.bf16.msk.msra.mxu1 %vm9048_vm3, %v7607_v13  ;;  %v6355_v6 = vld [vmem:[%s12242_s29 + $0x220] sm:$0xff] }
  0x49   :  { %7534 = vmatprep.subr.bf16.mxu0 %v8657_v0  ;;  %7611 = vmatprep.subr.bf16.mxu1 %v7610_v50  ;;  %v6363_v13 = vld [vmem:[%s12242_s29 + $0x260] sm:$0xff]  ;;  %v6370_v50 = vld [vmem:[%s12242_s29 + $0x298] sm:$0xff] }
  0x4a   :  { %300 = vmatmul.mubr.f32.gmra.mrb[4].mxu0 %v88_v4  ;;  %661 = vmatmul.mubr.f32.gmra.mrb[4].mxu1 %v6353_v45  ;;  %v100_v4 = vld [vmem:[%s12242_s29 + $0x80] sm:$0xff]  ;;  %v6365_v45 = vld [vmem:[%s12242_s29 + $0x270] sm:$0xff] }
  0x4b   :  { %6318 = vmatprep.mubr.msk.f32.mxu0 %vm140_vm0, %v91_v48  ;;  %6405 = vmatprep.mubr.msk.f32.mxu1 %vm140_vm0, %v6356_v49  ;;  %v102_v48 = vld [vmem:[%s12242_s29 + $0x90] sm:$0xff]  ;;  %v6367_v49 = vld [vmem:[%s12242_s29 + $0x280] sm:$0xff] }
  0x4c   :  { %7536 = vmatpush1.bf16.msra.mxu0 %v8799_v9  ;;  %v95_v9 = vld [vmem:[%s12242_s29 + $0x58] sm:$0xff] }
  0x4d   :  { %7537 = vmatprep.subr.bf16.mxu0 %v8657_v0 }
  0x4e   :  { %305 = vmatmul.mubr.f32.gmra.mrb[6].mxu0 %v90_v51  ;;  %666 = vmatmul.mubr.f32.gmra.mrb[6].mxu1 %v6355_v6  ;;  %v104_v51 = vld [vmem:[%s12242_s29 + $0xa0] sm:$0xff]  ;;  %v6369_v6 = vld [vmem:[%s12242_s29 + $0x290] sm:$0xff] }
  0x4f   :  { %6319 = vmatprep.mubr.msk.f32.mxu0 %vm140_vm0, %v93_v52  ;;  %6406 = vmatprep.mubr.msk.f32.mxu1 %vm140_vm0, %v6358_v53  ;;  %v6372_v52 = vld [vmem:[%s12242_s29 + $0x2a8] sm:$0xff]  ;;  %v106_v53 = vld [vmem:[%s12242_s29 + $0xb0] sm:$0xff] }
  0x50   :  { %7539 = vmatpush1.bf16.msra.mxu0 %v8825_v14  ;;  %v97_v14 = vld [vmem:[%s12242_s29 + $0x68] sm:$0xff] }
  0x51   :  { %7540 = vmatprep.subr.bf16.mxu0 %v8657_v0 }
  0x52   :  { %310 = vmatmul.mubr.f32.gmra.mrb[8].mxu0 %v92_v54  ;;  %671 = vmatmul.mubr.f32.gmra.mrb[8].mxu1 %v6357_v55  ;;  %v6371_v54 = vld [vmem:[%s12242_s29 + $0x2a0] sm:$0xff]  ;;  %v6374_v55 = vld [vmem:[%s12242_s29 + $0x2b8] sm:$0xff] }
  0x53   :  { %6320 = vmatprep.mubr.msk.f32.mxu0 %vm140_vm0, %v95_v9  ;;  %6407 = vmatprep.mubr.msk.f32.mxu1 %vm140_vm0, %v6360_v56  ;;  %v108_v9 = vld [vmem:[%s12242_s29 + $0xc0] sm:$0xff]  ;;  %v6373_v56 = vld [vmem:[%s12242_s29 + $0x2b0] sm:$0xff] }
  0x54   :  { %7542 = vmatpush1.bf16.msra.mxu0 %v8843_v17  ;;  %v99_v17 = vld [vmem:[%s12242_s29 + $0x78] sm:$0xff] }
  0x55   :  { %7543 = vmatprep.subr.bf16.mxu0 %v8657_v0 }
  0x56   :  { %315 = vmatmul.mubr.f32.gmra.mrb[10].mxu0 %v94_v57  ;;  %676 = vmatmul.mubr.f32.gmra.mrb[10].mxu1 %v6359_v58  ;;  %v6376_v57 = vld [vmem:[%s12242_s29 + $0x2c8] sm:$0xff] }
  0x57   :  { %6321 = vmatprep.mubr.msk.f32.mxu0 %vm140_vm0, %v97_v14  ;;  %6408 = vmatprep.mubr.msk.f32.mxu1 %vm140_vm0, %v6362_v59  ;;  %v6428_v58 = vld [vmem:[%s12221_s2 + $0x48] sm:$0xff]  ;;  %v6430_v14 = vld [vmem:[%s12221_s2 + $0x58] sm:$0xff]  ;;  %v6375_v59 = vld [vmem:[%s12242_s29 + $0x2c0] sm:$0xff] }
  0x58   :  { %7545 = vmatpush1.bf16.msra.mxu0 %v8861_v20  ;;  %v101_v20 = vld [vmem:[%s12242_s29 + $0x88] sm:$0xff] }
  0x59   :  { %7546 = vmatprep.subr.bf16.mxu0 %v8657_v0 }
  0x5a   :  { %320 = vmatmul.mubr.f32.gmra.mrb[12].mxu0 %v96_v61  ;;  %681 = vmatmul.mubr.f32.gmra.mrb[12].mxu1 %v6361_v62  ;;  %v113_v61 = vld [vmem:[%s12242_s29 + $0xe8] sm:$0xff]  ;;  %v6378_v62 = vld [vmem:[%s12242_s29 + $0x2d8] sm:$0xff] }
  0x5b   :  { %6322 = vmatprep.mubr.msk.f32.mxu0 %vm140_vm0, %v99_v17  ;;  %6409 = vmatprep.mubr.msk.f32.mxu1 %vm140_vm0, %v6364_v63  ;;  %v7570_v17 = vpack.c.bf16 %v6430_v14, %v6428_v58  ;;  %v112_v63 = vld [vmem:[%s12242_s29 + $0xe0] sm:$0xff]  ;;  %v6392_v58 = vld [vmem:[%s12242_s29 + $0x348] sm:$0xff]  ;;  %v126_v14 = vld [vmem:[%s12242_s29 + $0x150] sm:$0xff] }
  0x5c   :  { %7548 = vmatpush1.bf16.msra.mxu0 %v8879_v23  ;;  %v103_v23 = vld [vmem:[%s12242_s29 + $0x98] sm:$0xff] }
  0x5d   :  { %7549 = vmatprep.subr.bf16.mxu0 %v8657_v0 }
  0x5e   :  { %325 = vmatmul.mubr.f32.gmra.mrb[14].mxu0 %v98_v12  ;;  %686 = vmatmul.mubr.f32.gmra.mrb[14].mxu1 %v6363_v13  ;;  %v6377_v12 = vld [vmem:[%s12242_s29 + $0x2d0] sm:$0xff]  ;;  %v6380_v13 = vld [vmem:[%s12242_s29 + $0x2e8] sm:$0xff] }
  0x5f   :  { %6323 = vmatprep.mubr.msk.f32.mxu0 %vm140_vm0, %v101_v20  ;;  %6410 = vmatprep.mubr.msk.f32.mxu1 %vm140_vm0, %v6366_v44  ;;  %v114_v20 = vld [vmem:[%s12242_s29 + $0xf0] sm:$0xff]  ;;  %v6379_v44 = vld [vmem:[%s12242_s29 + $0x2e0] sm:$0xff] }
  0x60   :  { %7551 = vmatpush1.bf16.msra.mxu0 %v8897_v26  ;;  %v105_v26 = vld [vmem:[%s12242_s29 + $0xa8] sm:$0xff] }
  0x61   :  { %7552 = vmatprep.subr.bf16.mxu0 %v8657_v0 }
  0x62   :  { %330 = vmatmul.mubr.f32.gmra.mrb[16].mxu0 %v100_v4  ;;  %691 = vmatmul.mubr.f32.gmra.mrb[16].mxu1 %v6365_v45  ;;  %v117_v4 = vld [vmem:[%s12242_s29 + $0x108] sm:$0xff]  ;;  %v116_v45 = vld [vmem:[%s12242_s29 + $0x100] sm:$0xff] }
  0x63   :  { %6324 = vmatprep.mubr.msk.f32.mxu0 %vm140_vm0, %v103_v23  ;;  %6411 = vmatprep.mubr.msk.f32.mxu1 %vm140_vm0, %v6368_v47  ;;  %v6381_v23 = vld [vmem:[%s12242_s29 + $0x2f0] sm:$0xff]  ;;  %v119_v47 = vld [vmem:[%s12242_s29 + $0x118] sm:$0xff] }
  0x64   :  { %7554 = vmatpush1.bf16.msra.mxu0 %v8915_v29  ;;  %v107_v29 = vld [vmem:[%s12242_s29 + $0xb8] sm:$0xff] }
  0x65   :  { %7555 = vmatprep.subr.bf16.mxu0 %v8657_v0 }
  0x66   :  { %335 = vmatmul.mubr.f32.gmra.mrb[18].mxu0 %v102_v48  ;;  %696 = vmatmul.mubr.f32.gmra.mrb[18].mxu1 %v6367_v49  ;;  %v6384_v48 = vld [vmem:[%s12242_s29 + $0x308] sm:$0xff]  ;;  %v118_v49 = vld [vmem:[%s12242_s29 + $0x110] sm:$0xff] }
  0x67   :  { %6325 = vmatprep.mubr.msk.f32.mxu0 %vm140_vm0, %v105_v26  ;;  %6412 = vmatprep.mubr.msk.f32.mxu1 %vm140_vm0, %v6370_v50  ;;  %v6383_v26 = vld [vmem:[%s12242_s29 + $0x300] sm:$0xff]  ;;  %v121_v50 = vld [vmem:[%s12242_s29 + $0x128] sm:$0xff] }
  0x68   :  { %7557 = vmatpush1.bf16.msra.mxu0 %v8933_v32  ;;  %v109_v32 = vld [vmem:[%s12242_s29 + $0xc8] sm:$0xff] }
  0x69   :  { %7558 = vmatprep.subr.bf16.mxu0 %v8657_v0 }
  0x6a   :  { %340 = vmatmul.mubr.f32.gmra.mrb[20].mxu0 %v104_v51  ;;  %701 = vmatmul.mubr.f32.gmra.mrb[20].mxu1 %v6369_v6  ;;  %v6386_v51 = vld [vmem:[%s12242_s29 + $0x318] sm:$0xff]  ;;  %v120_v6 = vld [vmem:[%s12242_s29 + $0x120] sm:$0xff] }
  0x6b   :  { %6326 = vmatprep.mubr.msk.f32.mxu0 %vm140_vm0, %v107_v29  ;;  %6413 = vmatprep.mubr.msk.f32.mxu1 %vm140_vm0, %v6372_v52  ;;  %v6385_v29 = vld [vmem:[%s12242_s29 + $0x310] sm:$0xff]  ;;  %v123_v52 = vld [vmem:[%s12242_s29 + $0x138] sm:$0xff] }
  0x6c   :  { %7560 = vmatpush1.bf16.msra.mxu0 %v8951_v35  ;;  %v111_v35 = vld [vmem:[%s12242_s29 + $0xd8] sm:$0xff] }
  0x6d   :  { %7561 = vmatprep.subr.bf16.mxu0 %v8657_v0 }
  0x6e   :  { %345 = vmatmul.mubr.f32.gmra.mrb[22].mxu0 %v106_v53  ;;  %706 = vmatmul.mubr.f32.gmra.mrb[22].mxu1 %v6371_v54  ;;  %v6388_v53 = vld [vmem:[%s12242_s29 + $0x328] sm:$0xff]  ;;  %v122_v54 = vld [vmem:[%s12242_s29 + $0x130] sm:$0xff] }
  0x6f   :  { %6327 = vmatprep.mubr.msk.f32.mxu0 %vm140_vm0, %v109_v32  ;;  %6414 = vmatprep.mubr.msk.f32.mxu1 %vm140_vm0, %v6374_v55  ;;  %v6387_v32 = vld [vmem:[%s12242_s29 + $0x320] sm:$0xff]  ;;  %v125_v55 = vld [vmem:[%s12242_s29 + $0x148] sm:$0xff] }
  0x70   :  { %7563 = vmatpush1.bf16.msra.mxu0 %v8969_v38  ;;  %v110_v38 = vld [vmem:[%s12242_s29 + $0xd0] sm:$0xff] }
  0x71   :  { %7564 = vmatprep.subr.bf16.mxu0 %v8657_v0 }
  0x72   :  { %350 = vmatmul.mubr.f32.gmra.mrb[24].mxu0 %v108_v9  ;;  %711 = vmatmul.mubr.f32.gmra.mrb[24].mxu1 %v6373_v56  ;;  %v6390_v9 = vld [vmem:[%s12242_s29 + $0x338] sm:$0xff]  ;;  %v124_v56 = vld [vmem:[%s12242_s29 + $0x140] sm:$0xff] }
  0x73   :  { %6328 = vmatprep.mubr.msk.f32.mxu0 %vm140_vm0, %v111_v35  ;;  %6415 = vmatprep.mubr.msk.f32.mxu1 %vm140_vm0, %v6376_v57  ;;  %v6389_v35 = vld [vmem:[%s12242_s29 + $0x330] sm:$0xff]  ;;  %v127_v57 = vld [vmem:[%s12242_s29 + $0x158] sm:$0xff] }
  0x74   :  { %7566 = vmatpush1.bf16.msra.mxu0 %v8987_v41  ;;  %v115_v41 = vld [vmem:[%s12242_s29 + $0xf8] sm:$0xff] }
  0x75   :  { %7567 = vmatprep.subr.bf16.mxu0 %v8657_v0 }
  0x76   :  { %355 = vmatmul.mubr.f32.gmra.mrb[26].mxu0 %v110_v38  ;;  %716 = vmatmul.mubr.f32.gmra.mrb[26].mxu1 %v6375_v59  ;;  %v6391_v38 = vld [vmem:[%s12242_s29 + $0x340] sm:$0xff]  ;;  %v129_v59 = vld [vmem:[%s12242_s29 + $0x168] sm:$0xff] }
  0x77   :  { %6329 = vmatprep.mubr.msk.f32.mxu0 %vm140_vm0, %v113_v61  ;;  %6416 = vmatprep.mubr.msk.f32.mxu1 %vm140_vm0, %v6378_v62  ;;  %v6394_v61 = vld [vmem:[%s12242_s29 + $0x358] sm:$0xff]  ;;  %v128_v62 = vld [vmem:[%s12242_s29 + $0x160] sm:$0xff] }
  0x78   :  { %7569 = vmatpush1.bf16.msra.mxu0 %v9011_v46  ;;  %v6382_v46 = vld [vmem:[%s12242_s29 + $0x2f8] sm:$0xff] }
  0x79   :  { %7571 = vmatprep.subr.bf16.mxu0 %v7570_v17  ;;  %v6393_v17 = vld [vmem:[%s12242_s29 + $0x350] sm:$0xff] }
  0x7a   :  { %360 = vmatmul.mubr.f32.gmra.mrb[28].mxu0 %v112_v63  ;;  %721 = vmatmul.mubr.f32.gmra.mrb[28].mxu1 %v6377_v12  ;;  %v131_v63 = vld [vmem:[%s12242_s29 + $0x178] sm:$0xff]  ;;  %v6396_v12 = vld [vmem:[%s12242_s29 + $0x368] sm:$0xff] }
  0x7b   :  { %6330 = vmatprep.mubr.msk.f32.mxu0 %vm140_vm0, %v115_v41  ;;  %6417 = vmatprep.mubr.msk.f32.mxu1 %vm140_vm0, %v6380_v13  ;;  %v130_v41 = vld [vmem:[%s12242_s29 + $0x170] sm:$0xff]  ;;  %v6395_v13 = vld [vmem:[%s12242_s29 + $0x360] sm:$0xff] }
  0x7e   :  { %365 = vmatmul.mubr.f32.gmra.mrb[30].mxu0 %v114_v20  ;;  %726 = vmatmul.mubr.f32.gmra.mrb[30].mxu1 %v6379_v44  ;;  %v133_v20 = vld [vmem:[%s12242_s29 + $0x188] sm:$0xff]  ;;  %v6398_v44 = vld [vmem:[%s12242_s29 + $0x378] sm:$0xff] }
  0x7f   :  { %6331 = vmatprep.mubr.msk.f32.mxu0 %vm140_vm0, %v117_v4  ;;  %6418 = vmatprep.mubr.msk.f32.mxu1 %vm140_vm0, %v6382_v46  ;;  %v132_v4 = vld [vmem:[%s12242_s29 + $0x180] sm:$0xff]  ;;  %v6397_v46 = vld [vmem:[%s12242_s29 + $0x370] sm:$0xff] }
  0x82   :  { %370 = vmatmul.mubr.f32.gmra.mrb[32].mxu0 %v116_v45  ;;  %731 = vmatmul.mubr.f32.gmra.mrb[32].mxu1 %v6381_v23  ;;  %v135_v45 = vld [vmem:[%s12242_s29 + $0x198] sm:$0xff]  ;;  %v6533_v23 = vld [vmem:[%s12221_s2 + $0xc0] sm:$0xff] }
  0x83   :  { %6332 = vmatprep.mubr.msk.f32.mxu0 %vm140_vm0, %v119_v47  ;;  %6419 = vmatprep.mubr.msk.f32.mxu1 %vm140_vm0, %v6384_v48  ;;  %v6535_v47 = vld [vmem:[%s12221_s2 + $0xd0] sm:$0xff]  ;;  %v6538_v48 = vld [vmem:[%s12221_s2 + $0xe8] sm:$0xff] }
  0x86   :  { %375 = vmatmul.mubr.f32.gmra.mrb[34].mxu0 %v118_v49  ;;  %736 = vmatmul.mubr.f32.gmra.mrb[34].mxu1 %v6383_v26  ;;  %v6540_v49 = vld [vmem:[%s12221_s2 + $0xf8] sm:$0xf]  ;;  %v8659_v26 = vmov 0.0  }
  0x87   :  { %6333 = vmatprep.mubr.msk.f32.mxu0 %vm140_vm0, %v121_v50  ;;  %6420 = vmatprep.mubr.msk.f32.mxu1 %vm140_vm0, %v6386_v51  ;;  %v134_v50 = vld [vmem:[%s12242_s29 + $0x190] sm:$0xff]  ;;  %v137_v51 = vld [vmem:[%s12242_s29 + $0x1a8] sm:$0xff] }
  0x8a   :  { %380 = vmatmul.mubr.f32.gmra.mrb[36].mxu0 %v120_v6  ;;  %741 = vmatmul.mubr.f32.gmra.mrb[36].mxu1 %v6385_v29  ;;  %v7612_v6 = vpack.c.bf16 %v6535_v47, %v6533_v23  ;;  %v7614_v29 = vpack.c.bf16 %v6540_v49, %v6538_v48  ;;  %v6612_v23 = vld [vmem:[%s12221_s2 + $0x158] sm:$0xff]  ;;  %v776_v48 = vld [vmem:[%s12221_s2] sm:$0xff]  ;;  %v778_v49 = vld [vmem:[%s12221_s2 + $0x10] sm:$0xff] }
  0x8b   :  { %6334 = vmatprep.mubr.msk.f32.mxu0 %vm140_vm0, %v123_v52  ;;  %6421 = vmatprep.mubr.msk.f32.mxu1 %vm140_vm0, %v6388_v53  ;;  %v6537_v52 = vld [vmem:[%s12221_s2 + $0xe0] sm:$0xff]  ;;  %v6539_v53 = vld [vmem:[%s12221_s2 + $0xf0] sm:$0xf] }
  0x8e   :  { %385 = vmatmul.mubr.f32.gmra.mrb[38].mxu0 %v122_v54  ;;  %746 = vmatmul.mubr.f32.gmra.mrb[38].mxu1 %v6387_v32  ;;  %v136_v54 = vld [vmem:[%s12242_s29 + $0x1a0] sm:$0xff]  ;;  %v139_v32 = vld [vmem:[%s12242_s29 + $0x1b8] sm:$0xff] }
  0x8f   :  { %6335 = vmatprep.mubr.msk.f32.mxu0 %vm140_vm0, %v125_v55  ;;  %6422 = vmatprep.mubr.msk.f32.mxu1 %vm140_vm0, %v6390_v9  ;;  %v7617_v55 = vpack.c.bf16 %v6539_v53, %v6537_v52  ;;  %v138_v9 = vld [vmem:[%s12242_s29 + $0x1b0] sm:$0xff]  ;;  %v780_v52 = vld [vmem:[%s12221_s2 + $0x20] sm:$0xff] }
  0x90   :  { %v782_v53 = vld [vmem:[%s12221_s2 + $0x30] sm:$0xf] }
  0x92   :  { %390 = vmatmul.mubr.f32.gmra.mrb[40].mxu0 %v124_v56  ;;  %751 = vmatmul.mubr.f32.gmra.mrb[40].mxu1 %v6389_v35  ;;  %v6344_v56 = vld [vmem:[%s12242_s29 + $0x1c8] sm:$0xff]  ;;  %v6427_v35 = vld [vmem:[%s12221_s2 + $0x40] sm:$0xff] }
  0x93   :  { %6336 = vmatprep.mubr.msk.f32.mxu0 %vm140_vm0, %v127_v57  ;;  %6423 = vmatprep.mubr.msk.f32.mxu1 %vm140_vm0, %v6392_v58  ;;  %v6429_v57 = vld [vmem:[%s12221_s2 + $0x50] sm:$0xff]  ;;  %v6432_v58 = vld [vmem:[%s12221_s2 + $0x68] sm:$0xff] }
  0x96   :  { %395 = vmatmul.mubr.f32.gmra.mrb[42].mxu0 %v126_v14  ;;  %756 = vmatmul.mubr.f32.gmra.mrb[42].mxu1 %v6391_v38  ;;  %v6434_v14 = vld [vmem:[%s12221_s2 + $0x78] sm:$0xf]  ;;  %v6343_v38 = vld [vmem:[%s12242_s29 + $0x1c0] sm:$0xff] }
  0x97   :  { %6337 = vmatprep.mubr.msk.f32.mxu0 %vm140_vm0, %v129_v59  ;;  %6424 = vmatprep.mubr.msk.f32.mxu1 %vm140_vm0, %v6394_v61  ;;  %v6346_v59 = vld [vmem:[%s12242_s29 + $0x1d8] sm:$0xff]  ;;  %v7572_v61 = vpack.c.bf16 %v6429_v57, %v6427_v35 }
  0x9a   :  { %400 = vmatmul.mubr.f32.gmra.mrb[44].mxu0 %v128_v62  ;;  %761 = vmatmul.mubr.f32.gmra.mrb[44].mxu1 %v6393_v17  ;;  %v7574_v62 = vpack.c.bf16 %v6434_v14, %v6432_v58  ;;  %v6431_v17 = vld [vmem:[%s12221_s2 + $0x60] sm:$0xff] }
  0x9b   :  { %6338 = vmatprep.mubr.msk.f32.mxu0 %vm140_vm0, %v131_v63  ;;  %6425 = vmatprep.mubr.msk.f32.mxu1 %vm140_vm0, %v6396_v12  ;;  %v6433_v63 = vld [vmem:[%s12221_s2 + $0x70] sm:$0xf]  ;;  %v777_v12 = vld [vmem:[%s12221_s2 + $0x8] sm:$0xff]  ;;  %v6495_v14 = vld [vmem:[%s12221_s2 + $0x80] sm:$0xff] }
  0x9e   :  { %405 = vmatmul.mubr.f32.gmra.mrb[46].mxu0 %v130_v41  ;;  %766 = vmatmul.mubr.f32.gmra.mrb[46].mxu1 %v6395_v13  ;;  %v779_v41 = vld [vmem:[%s12221_s2 + $0x18] sm:$0xff]  ;;  %v6345_v13 = vld [vmem:[%s12242_s29 + $0x1d0] sm:$0xff] }
  0x9f   :  { %6339 = vmatprep.mubr.msk.f32.mxu0 %vm140_vm0, %v133_v20  ;;  %6426 = vmatprep.mubr.msk.f32.mxu1 %vm140_vm0, %v6398_v44  ;;  %v6348_v20 = vld [vmem:[%s12242_s29 + $0x1e8] sm:$0xff]  ;;  %v7577_v44 = vpack.c.bf16 %v6433_v63, %v6431_v17  ;;  %v6502_v17 = vld [vmem:[%s12221_s2 + $0xb8] sm:$0xf] }
  0xa2   :  { %410 = vmatmul.mubr.f32.gmra.mrb[48].mxu0 %v132_v4  ;;  %771 = vmatmul.mubr.f32.gmra.mrb[48].mxu1 %v6397_v46  ;;  %v7580_v4 = vpack.c.bf16 %v779_v41, %v777_v12  ;;  %v6610_v46 = vld [vmem:[%s12221_s2 + $0x148] sm:$0xff] }
  0xa3   :  { %6340 = vmatprep.mubr.msk.f32.mxu0 %vm140_vm0, %v135_v45  ;;  %1917 = vmatprep.mubr.f32.mxu1 %v8659_v26  ;;  %v6347_v45 = vld [vmem:[%s12242_s29 + $0x1e0] sm:$0xff]  ;;  %v7620_v47 = vpack.c.bf16 %v6612_v23, %v6610_v46 }
  0xa6   :  { %415 = vmatmul.mubr.f32.gmra.mrb[50].mxu0 %v134_v50  ;;  %6551 = vmatmul.mubr.msk.f32.vlgmr.msra.gmra.mrb[50].mxu1 %vm793_vm4, %v8756_v1  ;;  %v781_v50 = vld [vmem:[%s12221_s2 + $0x28] sm:$0xff] }
  0xa7   :  { %6341 = vmatprep.mubr.msk.f32.mxu0 %vm140_vm0, %v137_v51  ;;  %1923 = vmatprep.mubr.f32.mxu1 %v8659_v26  ;;  %v783_v51 = vld [vmem:[%s12221_s2 + $0x38] sm:$0xf] }
  0xa8   :  { %7613 = vmatpush1.bf16.msra.mxu1 %v7612_v6  ;;  %v7582_v6 = vpack.c.bf16 %v778_v49, %v776_v48 }
  0xa9   :  { %7616 = vmatprep.subr.msk.bf16.mxu1 %vm9048_vm3, %v7614_v29  ;;  %v7584_v29 = vpack.c.bf16 %v783_v51, %v781_v50 }
  0xaa   :  { %420 = vmatmul.mubr.f32.gmra.mrb[52].mxu0 %v136_v54  ;;  %6552 = vmatmul.mubr.msk.f32.gmra.mrb[52].mxu1 %vm793_vm4, %v8761_v2  ;;  %v6496_v54 = vld [vmem:[%s12221_s2 + $0x88] sm:$0xff] }
  0xab   :  { %6342 = vmatprep.mubr.msk.f32.mxu0 %vm140_vm0, %v139_v32  ;;  %1929 = vmatprep.mubr.f32.mxu1 %v8659_v26  ;;  %v6498_v32 = vld [vmem:[%s12221_s2 + $0x98] sm:$0xff] }
  0xac   :  { %7619 = vmatpush1.bf16.msk.msra.mxu1 %vm9048_vm3, %v7617_v55  ;;  %v7587_v55 = vpack.c.bf16 %v782_v53, %v780_v52 }
  0xad   :  { %7621 = vmatprep.subr.bf16.mxu1 %v7620_v47 }
  0xae   :  { %425 = vmatmul.mubr.f32.gmra.mrb[54].mxu0 %v138_v9  ;;  %6553 = vmatmul.mubr.msk.f32.gmra.mrb[54].mxu1 %vm793_vm4, %v8766_v3 }
  0xaf   :  { %6399 = vmatprep.mubr.msk.f32.mxu0 %vm140_vm0, %v6344_v56  ;;  %1935 = vmatprep.mubr.f32.mxu1 %v8659_v26 }
  0xb2   :  { %636 = vmatmul.mubr.f32.vlgmr.msra.gmra.mrb[56].mxu0 %v6343_v38  ;;  %6554 = vmatmul.mubr.msk.f32.gmra.mrb[56].mxu1 %vm793_vm4, %v8775_v5  ;;  %v6497_v38 = vld [vmem:[%s12221_s2 + $0x90] sm:$0xff] }
  0xb3   :  { %6400 = vmatprep.mubr.msk.f32.mxu0 %vm140_vm0, %v6346_v59  ;;  %1941 = vmatprep.mubr.f32.mxu1 %v8659_v26  ;;  %v7592_v63 = vpack.c.bf16 %v6497_v38, %v6495_v14 }
  0xb4   :  { %7573 = vmatpush1.bf16.msra.mxu0 %v7572_v61 }
  0xb5   :  { %7576 = vmatprep.subr.msk.bf16.mxu0 %vm9048_vm3, %v7574_v62  ;;  %v6500_v62 = vld [vmem:[%s12221_s2 + $0xa8] sm:$0xff] }
  0xb6   :  { %641 = vmatmul.mubr.f32.gmra.mrb[58].mxu0 %v6345_v13  ;;  %6555 = vmatmul.mubr.msk.f32.gmra.mrb[58].mxu1 %vm793_vm4, %v8788_v7  ;;  %v6499_v13 = vld [vmem:[%s12221_s2 + $0xa0] sm:$0xff] }
  0xb7   :  { %6401 = vmatprep.mubr.msk.f32.mxu0 %vm140_vm0, %v6348_v20  ;;  %1947 = vmatprep.mubr.f32.mxu1 %v8659_v26  ;;  %v6501_v20 = vld [vmem:[%s12221_s2 + $0xb0] sm:$0xf] }
  0xb8   :  { %7579 = vmatpush1.bf16.msk.msra.mxu0 %vm9048_vm3, %v7577_v44  ;;  %v7597_v46 = vpack.c.bf16 %v6501_v20, %v6499_v13 }
  0xb9   :  { %7581 = vmatprep.subr.bf16.mxu0 %v7580_v4 }
  0xba   :  { %646 = vmatmul.mubr.f32.gmra.mrb[60].mxu0 %v6347_v45  ;;  %6556 = vmatmul.mubr.msk.f32.gmra.mrb[60].mxu1 %vm793_vm4, %v8793_v8 }
  0xbb   :  { %949 = vmatprep.mubr.f32.mxu0 %v8659_v26  ;;  %1953 = vmatprep.mubr.f32.mxu1 %v8659_v26 }
  0xbe   :  { %6437 = vmatmul.mubr.msk.f32.vlgmr.msra.gmra.mrb[62].mxu0 %vm793_vm4, %v8756_v1  ;;  %6557 = vmatmul.mubr.msk.f32.gmra.mrb[62].mxu1 %vm793_vm4, %v8806_v10  ;;  %v7590_v1 = vpack.c.bf16 %v6498_v32, %v6496_v54 }
  0xbf   :  { %955 = vmatprep.mubr.f32.mxu0 %v8659_v26  ;;  %1959 = vmatprep.mubr.f32.mxu1 %v8659_v26 }
  0xc0   :  { %7583 = vmatpush1.bf16.msra.mxu0 %v7582_v6 }
  0xc1   :  { %7586 = vmatprep.subr.msk.bf16.mxu0 %vm9048_vm3, %v7584_v29 }
  0xc2   :  { %6438 = vmatmul.mubr.msk.f32.gmra.mrb[64].mxu0 %vm793_vm4, %v8761_v2  ;;  %6558 = vmatmul.mubr.msk.f32.gmra.mrb[64].mxu1 %vm793_vm4, %v8811_v11  ;;  %v6609_v2 = vld [vmem:[%s12221_s2 + $0x140] sm:$0xff] }
  0xc3   :  { %961 = vmatprep.mubr.f32.mxu0 %v8659_v26  ;;  %1965 = vmatprep.mubr.f32.mxu1 %v8659_v26 }
  0xc4   :  { %7589 = vmatpush1.bf16.msk.msra.mxu0 %vm9048_vm3, %v7587_v55 }
  0xc5   :  { %7591 = vmatprep.subr.bf16.mxu0 %v7590_v1 }
  0xc6   :  { %6439 = vmatmul.mubr.msk.f32.gmra.mrb[66].mxu0 %vm793_vm4, %v8766_v3  ;;  %6559 = vmatmul.mubr.msk.f32.gmra.mrb[66].mxu1 %vm793_vm4, %v8832_v15  ;;  %v6611_v3 = vld [vmem:[%s12221_s2 + $0x150] sm:$0xff] }
  0xc7   :  { %967 = vmatprep.mubr.f32.mxu0 %v8659_v26  ;;  %1971 = vmatprep.mubr.f32.mxu1 %v8659_v26 }
  0xca   :  { %6440 = vmatmul.mubr.msk.f32.gmra.mrb[68].mxu0 %vm793_vm4, %v8775_v5  ;;  %6560 = vmatmul.mubr.msk.f32.gmra.mrb[68].mxu1 %vm793_vm4, %v8837_v16  ;;  %v6614_v5 = vld [vmem:[%s12221_s2 + $0x168] sm:$0xff] }
  0xcb   :  { %973 = vmatprep.mubr.f32.mxu0 %v8659_v26  ;;  %1977 = vmatprep.mubr.f32.mxu1 %v8659_v26 }
  0xce   :  { %6441 = vmatmul.mubr.msk.f32.gmra.mrb[70].mxu0 %vm793_vm4, %v8788_v7  ;;  %6561 = vmatmul.mubr.msk.f32.gmra.mrb[70].mxu1 %vm793_vm4, %v8850_v18  ;;  %v6616_v7 = vld [vmem:[%s12221_s2 + $0x178] sm:$0xf] }
  0xcf   :  { %979 = vmatprep.mubr.f32.mxu0 %v8659_v26  ;;  %1983 = vmatprep.mubr.f32.mxu1 %v8659_v26 }
  0xd2   :  { %6442 = vmatmul.mubr.msk.f32.gmra.mrb[72].mxu0 %vm793_vm4, %v8793_v8  ;;  %6562 = vmatmul.mubr.msk.f32.gmra.mrb[72].mxu1 %vm793_vm4, %v8855_v19  ;;  %v7622_v8 = vpack.c.bf16 %v6611_v3, %v6609_v2 }
  0xd3   :  { %985 = vmatprep.mubr.f32.mxu0 %v8659_v26  ;;  %1989 = vmatprep.mubr.f32.mxu1 %v8659_v26 }
  0xd6   :  { %6443 = vmatmul.mubr.msk.f32.gmra.mrb[74].mxu0 %vm793_vm4, %v8806_v10  ;;  %6563 = vmatmul.mubr.msk.f32.gmra.mrb[74].mxu1 %vm793_vm4, %v8868_v21 }
  0xd7   :  { %991 = vmatprep.mubr.f32.mxu0 %v8659_v26  ;;  %1995 = vmatprep.mubr.f32.mxu1 %v8659_v26 }
  0xda   :  { %6444 = vmatmul.mubr.msk.f32.gmra.mrb[76].mxu0 %vm793_vm4, %v8811_v11  ;;  %6564 = vmatmul.mubr.msk.f32.gmra.mrb[76].mxu1 %vm793_vm4, %v8873_v22 }
  0xdb   :  { %997 = vmatprep.mubr.f32.mxu0 %v8659_v26  ;;  %2001 = vmatprep.mubr.f32.mxu1 %v8659_v26 }
  0xde   :  { %6445 = vmatmul.mubr.msk.f32.gmra.mrb[78].mxu0 %vm793_vm4, %v8832_v15  ;;  %6565 = vmatmul.mubr.msk.f32.gmra.mrb[78].mxu1 %vm793_vm4, %v8886_v24  ;;  %v7624_v15 = vpack.c.bf16 %v6616_v7, %v6614_v5 }
  0xdf   :  { %1003 = vmatprep.mubr.f32.mxu0 %v8659_v26  ;;  %2007 = vmatprep.mubr.f32.mxu1 %v8659_v26 }
  0xe2   :  { %6446 = vmatmul.mubr.msk.f32.gmra.mrb[80].mxu0 %vm793_vm4, %v8837_v16  ;;  %6566 = vmatmul.mubr.msk.f32.gmra.mrb[80].mxu1 %vm793_vm4, %v8891_v25  ;;  %v6613_v16 = vld [vmem:[%s12221_s2 + $0x160] sm:$0xff] }
  0xe3   :  { %1009 = vmatprep.mubr.f32.mxu0 %v8659_v26  ;;  %2013 = vmatprep.mubr.f32.mxu1 %v8659_v26 }
  0xe6   :  { %6447 = vmatmul.mubr.msk.f32.gmra.mrb[82].mxu0 %vm793_vm4, %v8850_v18  ;;  %6567 = vmatmul.mubr.msk.f32.gmra.mrb[82].mxu1 %vm793_vm4, %v8904_v27  ;;  %v6615_v18 = vld [vmem:[%s12221_s2 + $0x170] sm:$0xf] }
  0xe7   :  { %1015 = vmatprep.mubr.f32.mxu0 %v8659_v26  ;;  %2019 = vmatprep.mubr.f32.mxu1 %v8659_v26 }
  0xea   :  { %6448 = vmatmul.mubr.msk.f32.gmra.mrb[84].mxu0 %vm793_vm4, %v8855_v19  ;;  %6568 = vmatmul.mubr.msk.f32.gmra.mrb[84].mxu1 %vm793_vm4, %v8909_v28 }
  0xeb   :  { %1021 = vmatprep.mubr.f32.mxu0 %v8659_v26  ;;  %2025 = vmatprep.mubr.f32.mxu1 %v8659_v26 }
  0xee   :  { %6449 = vmatmul.mubr.msk.f32.gmra.mrb[86].mxu0 %vm793_vm4, %v8868_v21  ;;  %6569 = vmatmul.mubr.msk.f32.gmra.mrb[86].mxu1 %vm793_vm4, %v8922_v30 }
  0xef   :  { %1027 = vmatprep.mubr.f32.mxu0 %v8659_v26  ;;  %2031 = vmatprep.mubr.f32.mxu1 %v8659_v26 }
  0xf2   :  { %6450 = vmatmul.mubr.msk.f32.gmra.mrb[88].mxu0 %vm793_vm4, %v8873_v22  ;;  %6570 = vmatmul.mubr.msk.f32.gmra.mrb[88].mxu1 %vm793_vm4, %v8927_v31  ;;  %v7627_v22 = vpack.c.bf16 %v6615_v18, %v6613_v16 }
  0xf3   :  { %1033 = vmatprep.mubr.f32.mxu0 %v8659_v26  ;;  %2037 = vmatprep.mubr.f32.mxu1 %v8659_v26 }
  0xf6   :  { %6451 = vmatmul.mubr.msk.f32.gmra.mrb[90].mxu0 %vm793_vm4, %v8886_v24  ;;  %6571 = vmatmul.mubr.msk.f32.gmra.mrb[90].mxu1 %vm793_vm4, %v8940_v33 }
  0xf7   :  { %1039 = vmatprep.mubr.f32.mxu0 %v8659_v26  ;;  %2043 = vmatprep.mubr.f32.mxu1 %v8659_v26 }
  0xfa   :  { %6452 = vmatmul.mubr.msk.f32.gmra.mrb[92].mxu0 %vm793_vm4, %v8891_v25  ;;  %6572 = vmatmul.mubr.msk.f32.gmra.mrb[92].mxu1 %vm793_vm4, %v8945_v34 }
  0xfb   :  { %1045 = vmatprep.mubr.f32.mxu0 %v8659_v26  ;;  %2049 = vmatprep.mubr.f32.mxu1 %v8659_v26 }
  0xfe   :  { %6453 = vmatmul.mubr.msk.f32.gmra.mrb[94].mxu0 %vm793_vm4, %v8904_v27  ;;  %6573 = vmatmul.mubr.msk.f32.gmra.mrb[94].mxu1 %vm793_vm4, %v8958_v36 }
  0xff   :  { %1051 = vmatprep.mubr.f32.mxu0 %v8659_v26  ;;  %2055 = vmatprep.mubr.f32.mxu1 %v8659_v26 }
 0x102   :  { %6454 = vmatmul.mubr.msk.f32.gmra.mrb[96].mxu0 %vm793_vm4, %v8909_v28  ;;  %6574 = vmatmul.mubr.msk.f32.gmra.mrb[96].mxu1 %vm793_vm4, %v8963_v37 }
 0x103   :  { %1057 = vmatprep.mubr.f32.mxu0 %v8659_v26  ;;  %2061 = vmatprep.mubr.f32.mxu1 %v8659_v26 }
 0x106   :  { %6455 = vmatmul.mubr.msk.f32.gmra.mrb[98].mxu0 %vm793_vm4, %v8922_v30  ;;  %6575 = vmatmul.mubr.msk.f32.gmra.mrb[98].mxu1 %vm793_vm4, %v8976_v39 }
 0x107   :  { %1063 = vmatprep.mubr.f32.mxu0 %v8659_v26  ;;  %2067 = vmatprep.mubr.f32.mxu1 %v8659_v26 }
 0x10a   :  { %6456 = vmatmul.mubr.msk.f32.gmra.mrb[100].mxu0 %vm793_vm4, %v8927_v31  ;;  %6576 = vmatmul.mubr.msk.f32.gmra.mrb[100].mxu1 %vm793_vm4, %v8981_v40 }
 0x10b   :  { %1069 = vmatprep.mubr.f32.mxu0 %v8659_v26  ;;  %2073 = vmatprep.mubr.f32.mxu1 %v8659_v26 }
 0x10e   :  { %6457 = vmatmul.mubr.msk.f32.gmra.mrb[102].mxu0 %vm793_vm4, %v8940_v33  ;;  %6577 = vmatmul.mubr.msk.f32.gmra.mrb[102].mxu1 %vm793_vm4, %v8994_v42 }
 0x10f   :  { %1075 = vmatprep.mubr.f32.mxu0 %v8659_v26  ;;  %2079 = vmatprep.mubr.f32.mxu1 %v8659_v26 }
 0x112   :  { %6458 = vmatmul.mubr.msk.f32.gmra.mrb[104].mxu0 %vm793_vm4, %v8945_v34  ;;  %6578 = vmatmul.mubr.msk.f32.gmra.mrb[104].mxu1 %vm793_vm4, %v8999_v43 }
 0x113   :  { %1081 = vmatprep.mubr.f32.mxu0 %v8659_v26  ;;  %2156 = vmatprep.mubr.f32.mxu1 %v8659_v26 }
 0x115   :  { %v9715_v10 = vpop.f32.mrb[0].mxu0  ;;  %v9717_v11 = vpop.f32.mrb[0].mxu1 }
 0x116   :  { %v293_v19 = vpop.f32.mrb[1].mxu0  ;;  %6459 = vmatmul.mubr.msk.f32.gmra.mrb[106].mxu0 %vm793_vm4, %v8958_v36  ;;  %6581 = vmatmul.mubr.msk.f32.vlgmr.msra.gmra.mrb[50].mxu1 %vm793_vm4, %v9715_v10  ;;  %v654_v21 = vpop.f32.mrb[1].mxu1 }
 0x117   :  { %1087 = vmatprep.mubr.f32.mxu0 %v8659_v26  ;;  %2162 = vmatprep.mubr.f32.mxu1 %v8659_v26 }
 0x118   :  { %7623 = vmatpush1.bf16.msra.mxu1 %v7622_v8 }
 0x119   :  { %v9731_v24 = vpop.f32.mrb[2].mxu0  ;;  %v9733_v25 = vpop.f32.mrb[2].mxu1  ;;  %7626 = vmatprep.subr.msk.bf16.mxu1 %vm9048_vm3, %v7624_v15 }
 0x11a   :  { %v298_v27 = vpop.f32.mrb[3].mxu0  ;;  %6460 = vmatmul.mubr.msk.f32.gmra.mrb[108].mxu0 %vm793_vm4, %v8963_v37  ;;  %6582 = vmatmul.mubr.msk.f32.gmra.mrb[52].mxu1 %vm793_vm4, %v9731_v24  ;;  %v659_v28 = vpop.f32.mrb[3].mxu1 }
 0x11b   :  { %1093 = vmatprep.mubr.f32.mxu0 %v8659_v26  ;;  %2168 = vmatprep.mubr.f32.mxu1 %v8659_v26 }
 0x11c   :  { %7629 = vmatpush1.bf16.msk.msra.mxu1 %vm9048_vm3, %v7627_v22 }
 0x11d   :  { %v9745_v30 = vpop.f32.mrb[4].mxu0  ;;  %v9747_v31 = vpop.f32.mrb[4].mxu1 }
 0x11e   :  { %v303_v33 = vpop.f32.mrb[5].mxu0  ;;  %6461 = vmatmul.mubr.msk.f32.gmra.mrb[110].mxu0 %vm793_vm4, %v8976_v39  ;;  %6583 = vmatmul.mubr.msk.f32.gmra.mrb[54].mxu1 %vm793_vm4, %v9745_v30  ;;  %v664_v34 = vpop.f32.mrb[5].mxu1 }
 0x11f   :  { %1099 = vmatprep.mubr.f32.mxu0 %v8659_v26  ;;  %2174 = vmatprep.mubr.f32.mxu1 %v8659_v26 }
 0x121   :  { %v9755_v36 = vpop.f32.mrb[6].mxu0  ;;  %v9757_v37 = vpop.f32.mrb[6].mxu1 }
 0x122   :  { %v308_v9 = vpop.f32.mrb[7].mxu0  ;;  %6462 = vmatmul.mubr.msk.f32.gmra.mrb[112].mxu0 %vm793_vm4, %v8981_v40  ;;  %6584 = vmatmul.mubr.msk.f32.gmra.mrb[56].mxu1 %vm793_vm4, %v9755_v36  ;;  %v669_v39 = vpop.f32.mrb[7].mxu1 }
 0x123   :  { %1105 = vmatprep.mubr.f32.mxu0 %v8659_v26  ;;  %2180 = vmatprep.mubr.f32.mxu1 %v8659_v26 }
 0x125   :  { %v9765_v56 = vpop.f32.mrb[8].mxu0  ;;  %v9767_v35 = vpop.f32.mrb[8].mxu1 }
 0x126   :  { %v313_v57 = vpop.f32.mrb[9].mxu0  ;;  %6463 = vmatmul.mubr.msk.f32.gmra.mrb[114].mxu0 %vm793_vm4, %v8994_v42  ;;  %6585 = vmatmul.mubr.msk.f32.gmra.mrb[58].mxu1 %vm793_vm4, %v9765_v56  ;;  %v674_v40 = vpop.f32.mrb[9].mxu1 }
 0x127   :  { %1111 = vmatprep.mubr.f32.mxu0 %v8659_v26  ;;  %2186 = vmatprep.mubr.f32.mxu1 %v8659_v26 }
 0x129   :  { %v9775_v58 = vpop.f32.mrb[10].mxu0  ;;  %v9783_v59 = vpop.f32.mrb[10].mxu1 }
 0x12a   :  { %v318_v42 = vpop.f32.mrb[11].mxu0  ;;  %6464 = vmatmul.mubr.msk.f32.gmra.mrb[116].mxu0 %vm793_vm4, %v8999_v43  ;;  %6586 = vmatmul.mubr.msk.f32.gmra.mrb[60].mxu1 %vm793_vm4, %v9775_v58  ;;  %v679_v61 = vpop.f32.mrb[11].mxu1  ;;  %v7594_v43 = vpack.c.bf16 %v6502_v17, %v6500_v62 }
 0x12b   :  { %1272 = vmatprep.mubr.f32.mxu0 %v8659_v26  ;;  %2192 = vmatprep.mubr.f32.mxu1 %v8659_v26 }
 0x12d   :  { %v321_v12 = vpop.f32.mrb[12].mxu0  ;;  %v9797_v41 = vpop.f32.mrb[12].mxu1 }
 0x12e   :  { %v323_v44 = vpop.f32.mrb[13].mxu0  ;;  %6467 = vmatmul.mubr.msk.f32.vlgmr.msra.gmra.mrb[62].mxu0 %vm793_vm4, %v9715_v10  ;;  %6587 = vmatmul.mubr.msk.f32.gmra.mrb[62].mxu1 %vm793_vm4, %v321_v12  ;;  %v684_v4 = vpop.f32.mrb[13].mxu1 }
 0x12f   :  { %1278 = vmatprep.mubr.f32.mxu0 %v8659_v26  ;;  %2198 = vmatprep.mubr.f32.mxu1 %v8659_v26 }
 0x130   :  { %7593 = vmatpush1.bf16.msra.mxu0 %v7592_v63 }
 0x131   :  { %v326_v45 = vpop.f32.mrb[14].mxu0  ;;  %v9810_v23 = vpop.f32.mrb[14].mxu1  ;;  %7596 = vmatprep.subr.msk.bf16.mxu0 %vm9048_vm3, %v7594_v43 }
 0x132   :  { %v328_v47 = vpop.f32.mrb[15].mxu0  ;;  %6468 = vmatmul.mubr.msk.f32.gmra.mrb[64].mxu0 %vm793_vm4, %v9731_v24  ;;  %6588 = vmatmul.mubr.msk.f32.gmra.mrb[64].mxu1 %vm793_vm4, %v326_v45  ;;  %v689_v48 = vpop.f32.mrb[15].mxu1 }
 0x133   :  { %1284 = vmatprep.mubr.f32.mxu0 %v8659_v26  ;;  %2204 = vmatprep.mubr.f32.mxu1 %v8659_v26 }
 0x134   :  { %7599 = vmatpush1.bf16.msk.msra.mxu0 %vm9048_vm3, %v7597_v46 }
 0x135   :  { %v331_v49 = vpop.f32.mrb[16].mxu0  ;;  %v9821_v50 = vpop.f32.mrb[16].mxu1 }
 0x136   :  { %v333_v51 = vpop.f32.mrb[17].mxu0  ;;  %6469 = vmatmul.mubr.msk.f32.gmra.mrb[66].mxu0 %vm793_vm4, %v9745_v30  ;;  %6589 = vmatmul.mubr.msk.f32.gmra.mrb[66].mxu1 %vm793_vm4, %v331_v49  ;;  %v694_v6 = vpop.f32.mrb[17].mxu1 }
 0x137   :  { %1290 = vmatprep.mubr.f32.mxu0 %v8659_v26  ;;  %2210 = vmatprep.mubr.f32.mxu1 %v8659_v26 }
 0x139   :  { %v336_v29 = vpop.f32.mrb[18].mxu0  ;;  %v9828_v52 = vpop.f32.mrb[18].mxu1 }
 0x13a   :  { %v338_v53 = vpop.f32.mrb[19].mxu0  ;;  %6470 = vmatmul.mubr.msk.f32.gmra.mrb[68].mxu0 %vm793_vm4, %v9755_v36  ;;  %6590 = vmatmul.mubr.msk.f32.gmra.mrb[68].mxu1 %vm793_vm4, %v336_v29  ;;  %v699_v60 = vpop.f32.mrb[19].mxu1 }
 0x13b   :  { %1296 = vmatprep.mubr.f32.mxu0 %v8659_v26  ;;  %2216 = vmatprep.mubr.f32.mxu1 %v8659_v26 }
 0x13d   :  { %v341_v54 = vpop.f32.mrb[20].mxu0  ;;  %v9835_v32 = vpop.f32.mrb[20].mxu1 }
 0x13e   :  { %v343_v55 = vpop.f32.mrb[21].mxu0  ;;  %6471 = vmatmul.mubr.msk.f32.gmra.mrb[70].mxu0 %vm793_vm4, %v9765_v56  ;;  %6591 = vmatmul.mubr.msk.f32.gmra.mrb[70].mxu1 %vm793_vm4, %v341_v54  ;;  %v704_v1 = vpop.f32.mrb[21].mxu1 }
 0x13f   :  { %1302 = vmatprep.mubr.f32.mxu0 %v8659_v26  ;;  %2222 = vmatprep.mubr.f32.mxu1 %v8659_v26 }
 0x141   :  { %v346_v2 = vpop.f32.mrb[22].mxu0  ;;  %v9842_v3 = vpop.f32.mrb[22].mxu1 }
 0x142   :  { %v348_v5 = vpop.f32.mrb[23].mxu0  ;;  %6472 = vmatmul.mubr.msk.f32.gmra.mrb[72].mxu0 %vm793_vm4, %v9775_v58  ;;  %6592 = vmatmul.mubr.msk.f32.gmra.mrb[72].mxu1 %vm793_vm4, %v346_v2  ;;  %v709_v7 = vpop.f32.mrb[23].mxu1 }
 0x143   :  { %1308 = vmatprep.mubr.f32.mxu0 %v8659_v26  ;;  %2228 = vmatprep.mubr.f32.mxu1 %v8659_v26 }
 0x145   :  { %v351_v8 = vpop.f32.mrb[24].mxu0  ;;  %v9849_v10 = vpop.f32.mrb[24].mxu1 }
 0x146   :  { %v353_v15 = vpop.f32.mrb[25].mxu0  ;;  %6473 = vmatmul.mubr.msk.f32.gmra.mrb[74].mxu0 %vm793_vm4, %v321_v12  ;;  %6593 = vmatmul.mubr.msk.f32.gmra.mrb[74].mxu1 %vm793_vm4, %v351_v8  ;;  %v714_v16 = vpop.f32.mrb[25].mxu1 }
 0x147   :  { %1314 = vmatprep.mubr.f32.mxu0 %v8659_v26  ;;  %2234 = vmatprep.mubr.f32.mxu1 %v8659_v26 }
 0x149   :  { %v356_v18 = vpop.f32.mrb[26].mxu0  ;;  %v9855_v19 = vpop.f32.mrb[26].mxu1 }
 0x14a   :  { %v358_v21 = vpop.f32.mrb[27].mxu0  ;;  %6474 = vmatmul.mubr.msk.f32.gmra.mrb[76].mxu0 %vm793_vm4, %v326_v45  ;;  %6594 = vmatmul.mubr.msk.f32.gmra.mrb[76].mxu1 %vm793_vm4, %v356_v18  ;;  %v719_v22 = vpop.f32.mrb[27].mxu1 }
 0x14b   :  { %1320 = vmatprep.mubr.f32.mxu0 %v8659_v26  ;;  %2240 = vmatprep.mubr.f32.mxu1 %v8659_v26 }
 0x14d   :  { %v361_v24 = vpop.f32.mrb[28].mxu0  ;;  %v9861_v27 = vpop.f32.mrb[28].mxu1 }
 0x14e   :  { %v363_v28 = vpop.f32.mrb[29].mxu0  ;;  %6475 = vmatmul.mubr.msk.f32.gmra.mrb[78].mxu0 %vm793_vm4, %v331_v49  ;;  %6595 = vmatmul.mubr.msk.f32.gmra.mrb[78].mxu1 %vm793_vm4, %v361_v24  ;;  %v724_v30 = vpop.f32.mrb[29].mxu1 }
 0x14f   :  { %1326 = vmatprep.mubr.f32.mxu0 %v8659_v26  ;;  %2246 = vmatprep.mubr.f32.mxu1 %v8659_v26 }
 0x151   :  { %v366_v33 = vpop.f32.mrb[30].mxu0  ;;  %v9867_v34 = vpop.f32.mrb[30].mxu1 }
 0x152   :  { %v368_v36 = vpop.f32.mrb[31].mxu0  ;;  %6476 = vmatmul.mubr.msk.f32.gmra.mrb[80].mxu0 %vm793_vm4, %v336_v29  ;;  %6596 = vmatmul.mubr.msk.f32.gmra.mrb[80].mxu1 %vm793_vm4, %v366_v33  ;;  %v729_v9 = vpop.f32.mrb[31].mxu1 }
 0x153   :  { %1332 = vmatprep.mubr.f32.mxu0 %v8659_v26  ;;  %2252 = vmatprep.mubr.f32.mxu1 %v8659_v26 }
 0x155   :  { %v371_v39 = vpop.f32.mrb[32].mxu0  ;;  %v9873_v56 = vpop.f32.mrb[32].mxu1 }
 0x156   :  { %v373_v57 = vpop.f32.mrb[33].mxu0  ;;  %6477 = vmatmul.mubr.msk.f32.gmra.mrb[82].mxu0 %vm793_vm4, %v341_v54  ;;  %6597 = vmatmul.mubr.msk.f32.gmra.mrb[82].mxu1 %vm793_vm4, %v371_v39  ;;  %v734_v40 = vpop.f32.mrb[33].mxu1 }
 0x157   :  { %1338 = vmatprep.mubr.f32.mxu0 %v8659_v26  ;;  %2258 = vmatprep.mubr.f32.mxu1 %v8659_v26 }
 0x159   :  { %v376_v58 = vpop.f32.mrb[34].mxu0  ;;  %v9879_v14 = vpop.f32.mrb[34].mxu1 }
 0x15a   :  { %v378_v38 = vpop.f32.mrb[35].mxu0  ;;  %6478 = vmatmul.mubr.msk.f32.gmra.mrb[84].mxu0 %vm793_vm4, %v346_v2  ;;  %6598 = vmatmul.mubr.msk.f32.gmra.mrb[84].mxu1 %vm793_vm4, %v376_v58  ;;  %v739_v42 = vpop.f32.mrb[35].mxu1 }
 0x15b   :  { %1344 = vmatprep.mubr.f32.mxu0 %v8659_v26  ;;  %2264 = vmatprep.mubr.f32.mxu1 %v8659_v26 }
 0x15d   :  { %v381_v61 = vpop.f32.mrb[36].mxu0  ;;  %v9885_v62 = vpop.f32.mrb[36].mxu1 }
 0x15e   :  { %v383_v17 = vpop.f32.mrb[37].mxu0  ;;  %6479 = vmatmul.mubr.msk.f32.gmra.mrb[86].mxu0 %vm793_vm4, %v351_v8  ;;  %6599 = vmatmul.mubr.msk.f32.gmra.mrb[86].mxu1 %vm793_vm4, %v381_v61  ;;  %v744_v63 = vpop.f32.mrb[37].mxu1 }
 0x15f   :  { %1350 = vmatprep.mubr.f32.mxu0 %v8659_v26  ;;  %2270 = vmatprep.mubr.f32.mxu1 %v8659_v26 }
 0x161   :  { %v386_v12 = vpop.f32.mrb[38].mxu0  ;;  %v9891_v43 = vpop.f32.mrb[38].mxu1 }
 0x162   :  { %v388_v13 = vpop.f32.mrb[39].mxu0  ;;  %6480 = vmatmul.mubr.msk.f32.gmra.mrb[88].mxu0 %vm793_vm4, %v356_v18  ;;  %6600 = vmatmul.mubr.msk.f32.gmra.mrb[88].mxu1 %vm793_vm4, %v386_v12  ;;  %v749_v20 = vpop.f32.mrb[39].mxu1 }
 0x163   :  { %1356 = vmatprep.mubr.f32.mxu0 %v8659_v26  ;;  %2276 = vmatprep.mubr.f32.mxu1 %v8659_v26 }
 0x165   :  { %v391_v44 = vpop.f32.mrb[40].mxu0  ;;  %v9897_v4 = vpop.f32.mrb[40].mxu1 }
 0x166   :  { %v393_v46 = vpop.f32.mrb[41].mxu0  ;;  %6481 = vmatmul.mubr.msk.f32.gmra.mrb[90].mxu0 %vm793_vm4, %v361_v24  ;;  %6601 = vmatmul.mubr.msk.f32.gmra.mrb[90].mxu1 %vm793_vm4, %v391_v44  ;;  %v754_v45 = vpop.f32.mrb[41].mxu1 }
 0x167   :  { %1362 = vmatprep.mubr.f32.mxu0 %v8659_v26  ;;  %2282 = vmatprep.mubr.f32.mxu1 %v8659_v26 }
 0x169   :  { %v396_v47 = vpop.f32.mrb[42].mxu0  ;;  %v9903_v48 = vpop.f32.mrb[42].mxu1 }
 0x16a   :  { %v398_v49 = vpop.f32.mrb[43].mxu0  ;;  %6482 = vmatmul.mubr.msk.f32.gmra.mrb[92].mxu0 %vm793_vm4, %v366_v33  ;;  %6602 = vmatmul.mubr.msk.f32.gmra.mrb[92].mxu1 %vm793_vm4, %v396_v47  ;;  %v759_v51 = vpop.f32.mrb[43].mxu1 }
 0x16b   :  { %1368 = vmatprep.mubr.f32.mxu0 %v8659_v26  ;;  %2288 = vmatprep.mubr.f32.mxu1 %v8659_v26 }
 0x16d   :  { %v401_v6 = vpop.f32.mrb[44].mxu0  ;;  %v9909_v29 = vpop.f32.mrb[44].mxu1 }
 0x16e   :  { %v403_v53 = vpop.f32.mrb[45].mxu0  ;;  %6483 = vmatmul.mubr.msk.f32.gmra.mrb[94].mxu0 %vm793_vm4, %v371_v39  ;;  %6603 = vmatmul.mubr.msk.f32.gmra.mrb[94].mxu1 %vm793_vm4, %v401_v6  ;;  %v764_v60 = vpop.f32.mrb[45].mxu1 }
 0x16f   :  { %1374 = vmatprep.mubr.f32.mxu0 %v8659_v26  ;;  %2294 = vmatprep.mubr.f32.mxu1 %v8659_v26 }
 0x171   :  { %v406_v54 = vpop.f32.mrb[46].mxu0  ;;  %v9915_v55 = vpop.f32.mrb[46].mxu1 }
 0x172   :  { %v408_v1 = vpop.f32.mrb[47].mxu0  ;;  %6484 = vmatmul.mubr.msk.f32.gmra.mrb[96].mxu0 %vm793_vm4, %v376_v58  ;;  %6604 = vmatmul.mubr.msk.f32.gmra.mrb[96].mxu1 %vm793_vm4, %v406_v54  ;;  %v769_v2 = vpop.f32.mrb[47].mxu1 }
 0x173   :  { %1380 = vmatprep.mubr.f32.mxu0 %v8659_v26  ;;  %2300 = vmatprep.mubr.f32.mxu1 %v8659_v26 }
 0x175   :  { %v411_v5 = vpop.f32.mrb[48].mxu0  ;;  %v9921_v7 = vpop.f32.mrb[48].mxu1 }
 0x176   :  { %v413_v8 = vpop.f32.mrb[49].mxu0  ;;  %6485 = vmatmul.mubr.msk.f32.gmra.mrb[98].mxu0 %vm793_vm4, %v381_v61  ;;  %6605 = vmatmul.mubr.msk.f32.gmra.mrb[98].mxu1 %vm793_vm4, %v411_v5  ;;  %v774_v15 = vpop.f32.mrb[49].mxu1 }
 0x177   :  { %1386 = vmatprep.mubr.f32.mxu0 %v8659_v26  ;;  %2306 = vmatprep.mubr.f32.mxu1 %v8659_v26 }
 0x179   :  { %v416_v16 = vpop.f32.mrb[50].mxu0 }
 0x17a   :  { %v418_v18 = vpop.f32.mrb[51].mxu0  ;;  %6486 = vmatmul.mubr.msk.f32.gmra.mrb[100].mxu0 %vm793_vm4, %v386_v12  ;;  %6606 = vmatmul.mubr.msk.f32.gmra.mrb[100].mxu1 %vm793_vm4, %v416_v16 }
 0x17b   :  { %1392 = vmatprep.mubr.f32.mxu0 %v8659_v26  ;;  %2312 = vmatprep.mubr.f32.mxu1 %v8659_v26 }
 0x17d   :  { %v421_v21 = vpop.f32.mrb[52].mxu0 }
 0x17e   :  { %v423_v22 = vpop.f32.mrb[53].mxu0  ;;  %6487 = vmatmul.mubr.msk.f32.gmra.mrb[102].mxu0 %vm793_vm4, %v391_v44  ;;  %6607 = vmatmul.mubr.msk.f32.gmra.mrb[102].mxu1 %vm793_vm4, %v421_v21 }
 0x17f   :  { %1398 = vmatprep.mubr.f32.mxu0 %v8659_v26  ;;  %2318 = vmatprep.mubr.f32.mxu1 %v8659_v26 }
 0x181   :  { %v426_v24 = vpop.f32.mrb[54].mxu0 }
 0x182   :  { %v428_v28 = vpop.f32.mrb[55].mxu0  ;;  %6488 = vmatmul.mubr.msk.f32.gmra.mrb[104].mxu0 %vm793_vm4, %v396_v47  ;;  %6608 = vmatmul.mubr.msk.f32.gmra.mrb[104].mxu1 %vm793_vm4, %v426_v24 }
 0x183   :  { %1404 = vmatprep.mubr.f32.mxu0 %v8659_v26  ;;  %2404 = vmatprep.mubr.f32.mxu1 %v8659_v26 }
 0x185   :  { %v637_v30 = vpop.f32.mrb[56].mxu0 }
 0x186   :  { %v639_v33 = vpop.f32.mrb[57].mxu0  ;;  %6489 = vmatmul.mubr.msk.f32.gmra.mrb[106].mxu0 %vm793_vm4, %v401_v6  ;;  %6619 = vmatmul.mubr.msk.f32.vlgmr.msra.gmra.mrb[50].mxu1 %vm793_vm4, %v637_v30 }
 0x187   :  { %1410 = vmatprep.mubr.f32.mxu0 %v8659_v26  ;;  %2410 = vmatprep.mubr.f32.mxu1 %v8659_v26 }
 0x189   :  { %v642_v36 = vpop.f32.mrb[58].mxu0 }
 0x18a   :  { %v644_v9 = vpop.f32.mrb[59].mxu0  ;;  %6490 = vmatmul.mubr.msk.f32.gmra.mrb[108].mxu0 %vm793_vm4, %v406_v54  ;;  %6620 = vmatmul.mubr.msk.f32.gmra.mrb[52].mxu1 %vm793_vm4, %v642_v36 }
 0x18b   :  { %1416 = vmatprep.mubr.f32.mxu0 %v8659_v26  ;;  %2416 = vmatprep.mubr.f32.mxu1 %v8659_v26 }
 0x18d   :  { %v647_v39 = vpop.f32.mrb[60].mxu0 }
 0x18e   :  { %v649_v57 = vpop.f32.mrb[61].mxu0  ;;  %6491 = vmatmul.mubr.msk.f32.gmra.mrb[110].mxu0 %vm793_vm4, %v411_v5  ;;  %6621 = vmatmul.mubr.msk.f32.gmra.mrb[54].mxu1 %vm793_vm4, %v647_v39 }
 0x18f   :  { %1422 = vmatprep.mubr.f32.mxu0 %v8659_v26  ;;  %2422 = vmatprep.mubr.f32.mxu1 %v8659_v26 }
 0x192   :  { %6492 = vmatmul.mubr.msk.f32.gmra.mrb[112].mxu0 %vm793_vm4, %v416_v16  ;;  %6622 = vmatmul.mubr.msk.f32.gmra.mrb[56].mxu1 %vm793_vm4, %v9717_v11 }
 0x193   :  { %1428 = vmatprep.mubr.f32.mxu0 %v8659_v26  ;;  %2428 = vmatprep.mubr.f32.mxu1 %v8659_v26 }
 0x196   :  { %6493 = vmatmul.mubr.msk.f32.gmra.mrb[114].mxu0 %vm793_vm4, %v421_v21  ;;  %6623 = vmatmul.mubr.msk.f32.gmra.mrb[58].mxu1 %vm793_vm4, %v9733_v25 }
 0x197   :  { %1434 = vmatprep.mubr.f32.mxu0 %v8659_v26  ;;  %2434 = vmatprep.mubr.f32.mxu1 %v8659_v26 }
 0x19a   :  { %6494 = vmatmul.mubr.msk.f32.gmra.mrb[116].mxu0 %vm793_vm4, %v426_v24  ;;  %6624 = vmatmul.mubr.msk.f32.gmra.mrb[60].mxu1 %vm793_vm4, %v9747_v31 }
 0x19b   :  { %1604 = vmatprep.mubr.f32.mxu0 %v8659_v26  ;;  %2440 = vmatprep.mubr.f32.mxu1 %v8659_v26 }
 0x19e   :  { %6505 = vmatmul.mubr.msk.f32.vlgmr.msra.gmra.mrb[62].mxu0 %vm793_vm4, %v637_v30  ;;  %6625 = vmatmul.mubr.msk.f32.gmra.mrb[62].mxu1 %vm793_vm4, %v9757_v37 }
 0x19f   :  { %1610 = vmatprep.mubr.f32.mxu0 %v8659_v26  ;;  %2446 = vmatprep.mubr.f32.mxu1 %v8659_v26 }
 0x1a2   :  { %6506 = vmatmul.mubr.msk.f32.gmra.mrb[64].mxu0 %vm793_vm4, %v642_v36  ;;  %6626 = vmatmul.mubr.msk.f32.gmra.mrb[64].mxu1 %vm793_vm4, %v9767_v35 }
 0x1a3   :  { %1616 = vmatprep.mubr.f32.mxu0 %v8659_v26  ;;  %2452 = vmatprep.mubr.f32.mxu1 %v8659_v26 }
 0x1a6   :  { %6507 = vmatmul.mubr.msk.f32.gmra.mrb[66].mxu0 %vm793_vm4, %v647_v39  ;;  %6627 = vmatmul.mubr.msk.f32.gmra.mrb[66].mxu1 %vm793_vm4, %v9783_v59 }
 0x1a7   :  { %1622 = vmatprep.mubr.f32.mxu0 %v8659_v26  ;;  %2458 = vmatprep.mubr.f32.mxu1 %v8659_v26 }
 0x1aa   :  { %6508 = vmatmul.mubr.msk.f32.gmra.mrb[68].mxu0 %vm793_vm4, %v9717_v11  ;;  %6628 = vmatmul.mubr.msk.f32.gmra.mrb[68].mxu1 %vm793_vm4, %v9797_v41 }
 0x1ab   :  { %1628 = vmatprep.mubr.f32.mxu0 %v8659_v26  ;;  %2464 = vmatprep.mubr.f32.mxu1 %v8659_v26 }
 0x1ae   :  { %6509 = vmatmul.mubr.msk.f32.gmra.mrb[70].mxu0 %vm793_vm4, %v9733_v25  ;;  %6629 = vmatmul.mubr.msk.f32.gmra.mrb[70].mxu1 %vm793_vm4, %v9810_v23 }
 0x1af   :  { %1634 = vmatprep.mubr.f32.mxu0 %v8659_v26  ;;  %2470 = vmatprep.mubr.f32.mxu1 %v8659_v26 }
 0x1b2   :  { %6510 = vmatmul.mubr.msk.f32.gmra.mrb[72].mxu0 %vm793_vm4, %v9747_v31  ;;  %6630 = vmatmul.mubr.msk.f32.gmra.mrb[72].mxu1 %vm793_vm4, %v9821_v50 }
 0x1b3   :  { %1640 = vmatprep.mubr.f32.mxu0 %v8659_v26  ;;  %2476 = vmatprep.mubr.f32.mxu1 %v8659_v26 }
 0x1b6   :  { %6511 = vmatmul.mubr.msk.f32.gmra.mrb[74].mxu0 %vm793_vm4, %v9757_v37  ;;  %6631 = vmatmul.mubr.msk.f32.gmra.mrb[74].mxu1 %vm793_vm4, %v9828_v52 }
 0x1b7   :  { %1646 = vmatprep.mubr.f32.mxu0 %v8659_v26  ;;  %2482 = vmatprep.mubr.f32.mxu1 %v8659_v26 }
 0x1ba   :  { %6512 = vmatmul.mubr.msk.f32.gmra.mrb[76].mxu0 %vm793_vm4, %v9767_v35  ;;  %6632 = vmatmul.mubr.msk.f32.gmra.mrb[76].mxu1 %vm793_vm4, %v9835_v32 }
 0x1bb   :  { %1652 = vmatprep.mubr.f32.mxu0 %v8659_v26  ;;  %2488 = vmatprep.mubr.f32.mxu1 %v8659_v26 }
 0x1be   :  { %6513 = vmatmul.mubr.msk.f32.gmra.mrb[78].mxu0 %vm793_vm4, %v9783_v59  ;;  %6633 = vmatmul.mubr.msk.f32.gmra.mrb[78].mxu1 %vm793_vm4, %v9842_v3 }
 0x1bf   :  { %1658 = vmatprep.mubr.f32.mxu0 %v8659_v26  ;;  %2494 = vmatprep.mubr.f32.mxu1 %v8659_v26 }
 0x1c2   :  { %6514 = vmatmul.mubr.msk.f32.gmra.mrb[80].mxu0 %vm793_vm4, %v9797_v41  ;;  %6634 = vmatmul.mubr.msk.f32.gmra.mrb[80].mxu1 %vm793_vm4, %v9849_v10 }
 0x1c3   :  { %1664 = vmatprep.mubr.f32.mxu0 %v8659_v26  ;;  %2500 = vmatprep.mubr.f32.mxu1 %v8659_v26 }
 0x1c6   :  { %6515 = vmatmul.mubr.msk.f32.gmra.mrb[82].mxu0 %vm793_vm4, %v9810_v23  ;;  %6635 = vmatmul.mubr.msk.f32.gmra.mrb[82].mxu1 %vm793_vm4, %v9855_v19  ;;  %v2686_v23 = vld [vmem:[%s12222_s3 + $0x8] sm:$0xff] }
 0x1c7   :  { %1670 = vmatprep.mubr.f32.mxu0 %v8659_v26  ;;  %2506 = vmatprep.mubr.f32.mxu1 %v8659_v26 }
 0x1ca   :  { %6516 = vmatmul.mubr.msk.f32.gmra.mrb[84].mxu0 %vm793_vm4, %v9821_v50  ;;  %6636 = vmatmul.mubr.msk.f32.gmra.mrb[84].mxu1 %vm793_vm4, %v9861_v27  ;;  %v6662_v50 = vld [vmem:[%s12222_s3 + $0xe8] sm:$0xff] }
 0x1cb   :  { %1676 = vmatprep.mubr.f32.mxu0 %v8659_v26  ;;  %2512 = vmatprep.mubr.f32.mxu1 %v8659_v26 }
 0x1ce   :  { %6517 = vmatmul.mubr.msk.f32.gmra.mrb[86].mxu0 %vm793_vm4, %v9828_v52  ;;  %6637 = vmatmul.mubr.msk.f32.gmra.mrb[86].mxu1 %vm793_vm4, %v9867_v34 }
 0x1cf   :  { %1682 = vmatprep.mubr.f32.mxu0 %v8659_v26  ;;  %2518 = vmatprep.mubr.f32.mxu1 %v8659_v26 }
 0x1d2   :  { %6518 = vmatmul.mubr.msk.f32.gmra.mrb[88].mxu0 %vm793_vm4, %v9835_v32  ;;  %6638 = vmatmul.mubr.msk.f32.gmra.mrb[88].mxu1 %vm793_vm4, %v9873_v56 }
 0x1d3   :  { %1688 = vmatprep.mubr.f32.mxu0 %v8659_v26  ;;  %2524 = vmatprep.mubr.f32.mxu1 %v8659_v26 }
 0x1d6   :  { %6519 = vmatmul.mubr.msk.f32.gmra.mrb[90].mxu0 %vm793_vm4, %v9842_v3  ;;  %6639 = vmatmul.mubr.msk.f32.gmra.mrb[90].mxu1 %vm793_vm4, %v9879_v14 }
 0x1d7   :  { %1694 = vmatprep.mubr.f32.mxu0 %v8659_v26  ;;  %2530 = vmatprep.mubr.f32.mxu1 %v8659_v26 }
 0x1da   :  { %6520 = vmatmul.mubr.msk.f32.gmra.mrb[92].mxu0 %vm793_vm4, %v9849_v10  ;;  %6640 = vmatmul.mubr.msk.f32.gmra.mrb[92].mxu1 %vm793_vm4, %v9885_v62 }
 0x1db   :  { %1700 = vmatprep.mubr.f32.mxu0 %v8659_v26  ;;  %2536 = vmatprep.mubr.f32.mxu1 %v8659_v26 }
 0x1de   :  { %6521 = vmatmul.mubr.msk.f32.gmra.mrb[94].mxu0 %vm793_vm4, %v9855_v19  ;;  %6641 = vmatmul.mubr.msk.f32.gmra.mrb[94].mxu1 %vm793_vm4, %v9891_v43 }
 0x1df   :  { %1706 = vmatprep.mubr.f32.mxu0 %v8659_v26  ;;  %2542 = vmatprep.mubr.f32.mxu1 %v8659_v26 }
 0x1e2   :  { %6522 = vmatmul.mubr.msk.f32.gmra.mrb[96].mxu0 %vm793_vm4, %v9861_v27  ;;  %6642 = vmatmul.mubr.msk.f32.gmra.mrb[96].mxu1 %vm793_vm4, %v9897_v4 }
 0x1e3   :  { %1712 = vmatprep.mubr.f32.mxu0 %v8659_v26  ;;  %2548 = vmatprep.mubr.f32.mxu1 %v8659_v26 }
 0x1e6   :  { %6523 = vmatmul.mubr.msk.f32.gmra.mrb[98].mxu0 %vm793_vm4, %v9867_v34  ;;  %6643 = vmatmul.mubr.msk.f32.gmra.mrb[98].mxu1 %vm793_vm4, %v9903_v48 }
 0x1e7   :  { %1718 = vmatprep.mubr.f32.mxu0 %v8659_v26  ;;  %2554 = vmatprep.mubr.f32.mxu1 %v8659_v26 }
 0x1ea   :  { %6524 = vmatmul.mubr.msk.f32.gmra.mrb[100].mxu0 %vm793_vm4, %v9873_v56  ;;  %6644 = vmatmul.mubr.msk.f32.gmra.mrb[100].mxu1 %vm793_vm4, %v9909_v29 }
 0x1eb   :  { %1724 = vmatprep.mubr.f32.mxu0 %v8659_v26  ;;  %2560 = vmatprep.mubr.f32.mxu1 %v8659_v26 }
 0x1ee   :  { %6525 = vmatmul.mubr.msk.f32.gmra.mrb[102].mxu0 %vm793_vm4, %v9879_v14  ;;  %6645 = vmatmul.mubr.msk.f32.gmra.mrb[102].mxu1 %vm793_vm4, %v9915_v55 }
 0x1ef   :  { %1730 = vmatprep.mubr.f32.mxu0 %v8659_v26  ;;  %2566 = vmatprep.mubr.f32.mxu1 %v8659_v26 }
 0x1f2   :  { %6526 = vmatmul.mubr.msk.f32.gmra.mrb[104].mxu0 %vm793_vm4, %v9885_v62  ;;  %6646 = vmatmul.mubr.msk.f32.gmra.mrb[104].mxu1 %vm793_vm4, %v9921_v7 }
 0x1f3   :  { %1736 = vmatprep.mubr.f32.mxu0 %v8659_v26  ;;  %6689 = vmatprep.mubr.msk.f32.mxu1 %vm140_vm0, %v6662_v50 }
 0x1f6   :  { %6527 = vmatmul.mubr.msk.f32.gmra.mrb[106].mxu0 %vm793_vm4, %v9891_v43 }
 0x1f7   :  { %1742 = vmatprep.mubr.f32.mxu0 %v8659_v26 }
 0x1fa   :  { %6528 = vmatmul.mubr.msk.f32.gmra.mrb[108].mxu0 %vm793_vm4, %v9897_v4 }
 0x1fb   :  { %1748 = vmatprep.mubr.f32.mxu0 %v8659_v26 }
 0x1fe   :  { %6529 = vmatmul.mubr.msk.f32.gmra.mrb[110].mxu0 %vm793_vm4, %v9903_v48 }
 0x1ff   :  { %1754 = vmatprep.mubr.f32.mxu0 %v8659_v26 }
 0x202   :  { %6530 = vmatmul.mubr.msk.f32.gmra.mrb[112].mxu0 %vm793_vm4, %v9909_v29 }
 0x203   :  { %1760 = vmatprep.mubr.f32.mxu0 %v8659_v26 }
 0x206   :  { %6531 = vmatmul.mubr.msk.f32.gmra.mrb[114].mxu0 %vm793_vm4, %v9915_v55 }
 0x207   :  { %1766 = vmatprep.mubr.f32.mxu0 %v8659_v26 }
 0x20a   :  { %6532 = vmatmul.mubr.msk.f32.gmra.mrb[116].mxu0 %vm793_vm4, %v9921_v7 }
 0x20b   :  { %6647 = vmatprep.mubr.msk.f32.mxu0 %vm140_vm0, %v2686_v23 }
 0x259   :  { %v2406_v11 = vpop.f32.mrb[50].mxu1 }
 0x25a   :  { %v2408_v25 = vpop.f32.mrb[51].mxu1 }
 0x25d   :  { %v2412_v31 = vpop.f32.mrb[52].mxu1 }
 0x25e   :  { %v2414_v37 = vpop.f32.mrb[53].mxu1 }
 0x261   :  { %v2418_v35 = vpop.f32.mrb[54].mxu1 }
 0x262   :  { %v2420_v59 = vpop.f32.mrb[55].mxu1 }
 0x265   :  { %v2424_v41 = vpop.f32.mrb[56].mxu1 }
 0x266   :  { %v2426_v52 = vpop.f32.mrb[57].mxu1 }
 0x269   :  { %v2430_v32 = vpop.f32.mrb[58].mxu1 }
 0x26a   :  { %v2432_v3 = vpop.f32.mrb[59].mxu1 }
 0x26d   :  { %v2436_v10 = vpop.f32.mrb[60].mxu1 }
 0x26e   :  { %v2438_v19 = vpop.f32.mrb[61].mxu1 }
 0x271   :  { %v1606_v27 = vpop.f32.mrb[62].mxu0  ;;  %v10119_v34 = vpop.f32.mrb[62].mxu1 }
 0x272   :  { %v2629_v56 = vmax.f32 %v1606_v27, %v2406_v11  ;;  %v1608_v40 = vpop.f32.mrb[63].mxu0  ;;  %v10121_v58 = vpop.f32.mrb[63].mxu1 }
 0x273   :  { %v2630_v14 = vmax.f32 %v1608_v40, %v2408_v25 }
 0x275   :  { %v1612_v38 = vpop.f32.mrb[64].mxu0  ;;  %v2448_v42 = vpop.f32.mrb[64].mxu1 }
 0x276   :  { %v2631_v61 = vmax.f32 %v1612_v38, %v2412_v31  ;;  %v1614_v62 = vpop.f32.mrb[65].mxu0  ;;  %v2450_v17 = vpop.f32.mrb[65].mxu1 }
 0x277   :  { %v2632_v63 = vmax.f32 %v1614_v62, %v2414_v37 }
 0x278   :  { %v7632_v12 = vpack.c.bf16 %v2631_v61, %v2629_v56 }
 0x279   :  { %v7630_v43 = vpack.c.bf16 %v2632_v63, %v2630_v14  ;;  %v1618_v13 = vpop.f32.mrb[66].mxu0  ;;  %v10123_v20 = vpop.f32.mrb[66].mxu1 }
 0x27a   :  { %v2633_v44 = vmax.f32 %v1618_v13, %v2418_v35  ;;  %v1620_v4 = vpop.f32.mrb[67].mxu0  ;;  %v10125_v46 = vpop.f32.mrb[67].mxu1 }
 0x27b   :  { %v2634_v45 = vmax.f32 %v1620_v4, %v2420_v59  ;;  %7631 = vmatprep.subr.bf16.mxu0 %v7630_v43  ;;  %7687 = vmatprep.subr.bf16.mxu1 %v7630_v43 }
 0x27c   :  { %7633 = vmatpush1.bf16.msra.mxu0 %v7632_v12  ;;  %7689 = vmatpush1.bf16.msra.mxu1 %v7632_v12 }
 0x27d   :  { %v1624_v47 = vpop.f32.mrb[68].mxu0  ;;  %v2460_v48 = vpop.f32.mrb[68].mxu1 }
 0x27e   :  { %v2635_v49 = vmax.f32 %v1624_v47, %v2424_v41  ;;  %v1626_v51 = vpop.f32.mrb[69].mxu0  ;;  %v2462_v6 = vpop.f32.mrb[69].mxu1 }
 0x27f   :  { %v2636_v29 = vmax.f32 %v1626_v51, %v2426_v52 }
 0x280   :  { %v7636_v53 = vpack.c.bf16 %v2635_v49, %v2633_v44 }
 0x281   :  { %v7634_v60 = vpack.c.bf16 %v2636_v29, %v2634_v45  ;;  %v1630_v54 = vpop.f32.mrb[70].mxu0  ;;  %v10127_v55 = vpop.f32.mrb[70].mxu1 }
 0x282   :  { %v2637_v1 = vmax.f32 %v1630_v54, %v2430_v32  ;;  %v1632_v2 = vpop.f32.mrb[71].mxu0  ;;  %v10129_v5 = vpop.f32.mrb[71].mxu1 }
 0x283   :  { %v2638_v7 = vmax.f32 %v1632_v2, %v2432_v3  ;;  %7635 = vmatprep.subr.bf16.mxu0 %v7634_v60  ;;  %7691 = vmatprep.subr.bf16.mxu1 %v7634_v60 }
 0x284   :  { %7637 = vmatpush1.bf16.msra.mxu0 %v7636_v53  ;;  %7693 = vmatpush1.bf16.msra.mxu1 %v7636_v53 }
 0x285   :  { %v1636_v8 = vpop.f32.mrb[72].mxu0  ;;  %v2472_v15 = vpop.f32.mrb[72].mxu1 }
 0x286   :  { %v2639_v16 = vmax.f32 %v1636_v8, %v2436_v10  ;;  %v1638_v18 = vpop.f32.mrb[73].mxu0  ;;  %v2474_v21 = vpop.f32.mrb[73].mxu1 }
 0x287   :  { %v2640_v22 = vmax.f32 %v1638_v18, %v2438_v19 }
 0x288   :  { %v7640_v24 = vpack.c.bf16 %v2639_v16, %v2637_v1 }
 0x289   :  { %v7638_v28 = vpack.c.bf16 %v2640_v22, %v2638_v7  ;;  %v1642_v30 = vpop.f32.mrb[74].mxu0  ;;  %v10131_v33 = vpop.f32.mrb[74].mxu1 }
 0x28a   :  { %v2641_v36 = vmax.f32 %v1642_v30, %v10119_v34  ;;  %v1644_v9 = vpop.f32.mrb[75].mxu0  ;;  %v10134_v39 = vpop.f32.mrb[75].mxu1 }
 0x28b   :  { %v2642_v57 = vmax.f32 %v1644_v9, %v10121_v58  ;;  %7639 = vmatprep.subr.bf16.mxu0 %v7638_v28  ;;  %7695 = vmatprep.subr.bf16.mxu1 %v7638_v28 }
 0x28c   :  { %7641 = vmatpush1.bf16.msra.mxu0 %v7640_v24  ;;  %7697 = vmatpush1.bf16.msra.mxu1 %v7640_v24 }
 0x28d   :  { %v1648_v11 = vpop.f32.mrb[76].mxu0  ;;  %v2484_v25 = vpop.f32.mrb[76].mxu1 }
 0x28e   :  { %v2643_v31 = vmax.f32 %v1648_v11, %v2448_v42  ;;  %v1650_v37 = vpop.f32.mrb[77].mxu0  ;;  %v2486_v35 = vpop.f32.mrb[77].mxu1 }
 0x28f   :  { %v2644_v59 = vmax.f32 %v1650_v37, %v2450_v17 }
 0x290   :  { %v7644_v41 = vpack.c.bf16 %v2643_v31, %v2641_v36 }
 0x291   :  { %v7642_v23 = vpack.c.bf16 %v2644_v59, %v2642_v57  ;;  %v1654_v50 = vpop.f32.mrb[78].mxu0  ;;  %v10137_v52 = vpop.f32.mrb[78].mxu1 }
 0x292   :  { %v2645_v32 = vmax.f32 %v1654_v50, %v10123_v20  ;;  %v1656_v3 = vpop.f32.mrb[79].mxu0  ;;  %v10140_v10 = vpop.f32.mrb[79].mxu1 }
 0x293   :  { %v2646_v19 = vmax.f32 %v1656_v3, %v10125_v46  ;;  %7643 = vmatprep.subr.bf16.mxu0 %v7642_v23  ;;  %7699 = vmatprep.subr.bf16.mxu1 %v7642_v23 }
 0x294   :  { %7645 = vmatpush1.bf16.msra.mxu0 %v7644_v41  ;;  %7701 = vmatpush1.bf16.msra.mxu1 %v7644_v41 }
 0x295   :  { %v1660_v27 = vpop.f32.mrb[80].mxu0  ;;  %v2496_v34 = vpop.f32.mrb[80].mxu1 }
 0x296   :  { %v2647_v56 = vmax.f32 %v1660_v27, %v2460_v48  ;;  %v1662_v40 = vpop.f32.mrb[81].mxu0  ;;  %v2498_v58 = vpop.f32.mrb[81].mxu1 }
 0x297   :  { %v2648_v14 = vmax.f32 %v1662_v40, %v2462_v6 }
 0x298   :  { %v7648_v38 = vpack.c.bf16 %v2647_v56, %v2645_v32 }
 0x299   :  { %v7646_v42 = vpack.c.bf16 %v2648_v14, %v2646_v19  ;;  %v1666_v61 = vpop.f32.mrb[82].mxu0  ;;  %v10143_v62 = vpop.f32.mrb[82].mxu1 }
 0x29a   :  { %v2649_v17 = vmax.f32 %v1666_v61, %v10127_v55  ;;  %v1668_v63 = vpop.f32.mrb[83].mxu0  ;;  %v10146_v12 = vpop.f32.mrb[83].mxu1 }
 0x29b   :  { %v2650_v43 = vmax.f32 %v1668_v63, %v10129_v5  ;;  %7647 = vmatprep.subr.bf16.mxu0 %v7646_v42  ;;  %7703 = vmatprep.subr.bf16.mxu1 %v7646_v42 }
 0x29c   :  { %7649 = vmatpush1.bf16.msra.mxu0 %v7648_v38  ;;  %7705 = vmatpush1.bf16.msra.mxu1 %v7648_v38 }
 0x29d   :  { %v1672_v13 = vpop.f32.mrb[84].mxu0  ;;  %v2508_v20 = vpop.f32.mrb[84].mxu1 }
 0x29e   :  { %v2651_v44 = vmax.f32 %v1672_v13, %v2472_v15  ;;  %v1674_v4 = vpop.f32.mrb[85].mxu0  ;;  %v2510_v46 = vpop.f32.mrb[85].mxu1 }
 0x29f   :  { %v2652_v45 = vmax.f32 %v1674_v4, %v2474_v21 }
 0x2a0   :  { %v7652_v47 = vpack.c.bf16 %v2651_v44, %v2649_v17 }
 0x2a1   :  { %v7650_v48 = vpack.c.bf16 %v2652_v45, %v2650_v43  ;;  %v1678_v49 = vpop.f32.mrb[86].mxu0  ;;  %v10149_v51 = vpop.f32.mrb[86].mxu1 }
 0x2a2   :  { %v2653_v6 = vmax.f32 %v1678_v49, %v10131_v33  ;;  %v1680_v29 = vpop.f32.mrb[87].mxu0  ;;  %v10152_v53 = vpop.f32.mrb[87].mxu1 }
 0x2a3   :  { %v2654_v60 = vmax.f32 %v1680_v29, %v10134_v39  ;;  %7651 = vmatprep.subr.bf16.mxu0 %v7650_v48  ;;  %7707 = vmatprep.subr.bf16.mxu1 %v7650_v48 }
 0x2a4   :  { %7653 = vmatpush1.bf16.msra.mxu0 %v7652_v47  ;;  %7709 = vmatpush1.bf16.msra.mxu1 %v7652_v47 }
 0x2a5   :  { %v1684_v54 = vpop.f32.mrb[88].mxu0  ;;  %v2520_v55 = vpop.f32.mrb[88].mxu1 }
 0x2a6   :  { %v2655_v1 = vmax.f32 %v1684_v54, %v2484_v25  ;;  %v1686_v2 = vpop.f32.mrb[89].mxu0  ;;  %v2522_v5 = vpop.f32.mrb[89].mxu1 }
 0x2a7   :  { %v2656_v7 = vmax.f32 %v1686_v2, %v2486_v35 }
 0x2a8   :  { %v7656_v8 = vpack.c.bf16 %v2655_v1, %v2653_v6 }
 0x2a9   :  { %v7654_v15 = vpack.c.bf16 %v2656_v7, %v2654_v60  ;;  %v1690_v16 = vpop.f32.mrb[90].mxu0  ;;  %v10155_v18 = vpop.f32.mrb[90].mxu1 }
 0x2aa   :  { %v2657_v21 = vmax.f32 %v1690_v16, %v10137_v52  ;;  %v1692_v22 = vpop.f32.mrb[91].mxu0  ;;  %v10158_v24 = vpop.f32.mrb[91].mxu1 }
 0x2ab   :  { %v2658_v28 = vmax.f32 %v1692_v22, %v10140_v10  ;;  %7655 = vmatprep.subr.bf16.mxu0 %v7654_v15  ;;  %7711 = vmatprep.subr.bf16.mxu1 %v7654_v15 }
 0x2ac   :  { %7657 = vmatpush1.bf16.msra.mxu0 %v7656_v8  ;;  %7713 = vmatpush1.bf16.msra.mxu1 %v7656_v8 }
 0x2ad   :  { %v1696_v30 = vpop.f32.mrb[92].mxu0  ;;  %v2532_v33 = vpop.f32.mrb[92].mxu1 }
 0x2ae   :  { %v2659_v36 = vmax.f32 %v1696_v30, %v2496_v34  ;;  %v1698_v9 = vpop.f32.mrb[93].mxu0  ;;  %v2534_v39 = vpop.f32.mrb[93].mxu1 }
 0x2af   :  { %v2660_v57 = vmax.f32 %v1698_v9, %v2498_v58 }
 0x2b0   :  { %v7660_v11 = vpack.c.bf16 %v2659_v36, %v2657_v21 }
 0x2b1   :  { %v7658_v25 = vpack.c.bf16 %v2660_v57, %v2658_v28  ;;  %v1702_v31 = vpop.f32.mrb[94].mxu0  ;;  %v10161_v37 = vpop.f32.mrb[94].mxu1 }
 0x2b2   :  { %v2661_v35 = vmax.f32 %v1702_v31, %v10143_v62  ;;  %v1704_v59 = vpop.f32.mrb[95].mxu0  ;;  %v10164_v41 = vpop.f32.mrb[95].mxu1 }
 0x2b3   :  { %v2662_v23 = vmax.f32 %v1704_v59, %v10146_v12  ;;  %7659 = vmatprep.subr.bf16.mxu0 %v7658_v25  ;;  %7715 = vmatprep.subr.bf16.mxu1 %v7658_v25 }
 0x2b4   :  { %7661 = vmatpush1.bf16.msra.mxu0 %v7660_v11  ;;  %7717 = vmatpush1.bf16.msra.mxu1 %v7660_v11 }
 0x2b5   :  { %v1708_v50 = vpop.f32.mrb[96].mxu0  ;;  %v2544_v52 = vpop.f32.mrb[96].mxu1 }
 0x2b6   :  { %v2663_v32 = vmax.f32 %v1708_v50, %v2508_v20  ;;  %v1710_v3 = vpop.f32.mrb[97].mxu0  ;;  %v2546_v10 = vpop.f32.mrb[97].mxu1 }
 0x2b7   :  { %v2664_v19 = vmax.f32 %v1710_v3, %v2510_v46 }
 0x2b8   :  { %v7664_v27 = vpack.c.bf16 %v2663_v32, %v2661_v35 }
 0x2b9   :  { %v7662_v34 = vpack.c.bf16 %v2664_v19, %v2662_v23  ;;  %v1714_v56 = vpop.f32.mrb[98].mxu0  ;;  %v2550_v40 = vpop.f32.mrb[98].mxu1  ;;  %v6661_v19 = vld [vmem:[%s12222_s3 + $0xe0] sm:$0xff] }
 0x2ba   :  { %v2665_v58 = vmax.f32 %v1714_v56, %v10149_v51  ;;  %v1716_v14 = vpop.f32.mrb[99].mxu0  ;;  %v2552_v38 = vpop.f32.mrb[99].mxu1  ;;  %v2687_v56 = vld [vmem:[%s12222_s3 + $0x10] sm:$0xff] }
 0x2bb   :  { %v2666_v42 = vmax.f32 %v1716_v14, %v10152_v53  ;;  %7663 = vmatprep.subr.bf16.mxu0 %v7662_v34  ;;  %7719 = vmatprep.subr.bf16.mxu1 %v7662_v34  ;;  %v6664_v34 = vld [vmem:[%s12222_s3 + $0xf8] sm:$0xff]  ;;  %v6666_v14 = vld [vmem:[%s12222_s3 + $0x108] sm:$0xff] }
 0x2bc   :  { %7665 = vmatpush1.bf16.msra.mxu0 %v7664_v27  ;;  %7721 = vmatpush1.bf16.msra.mxu1 %v7664_v27  ;;  %v2688_v27 = vld [vmem:[%s12222_s3 + $0x18] sm:$0xff] }
 0x2bd   :  { %v1720_v61 = vpop.f32.mrb[100].mxu0  ;;  %v2556_v62 = vpop.f32.mrb[100].mxu1 }
 0x2be   :  { %v2667_v17 = vmax.f32 %v1720_v61, %v2520_v55  ;;  %v1722_v63 = vpop.f32.mrb[101].mxu0  ;;  %v2558_v12 = vpop.f32.mrb[101].mxu1  ;;  %v2692_v61 = vld [vmem:[%s12222_s3 + $0x38] sm:$0xff] }
 0x2bf   :  { %v2668_v43 = vmax.f32 %v1722_v63, %v2522_v5  ;;  %v6667_v63 = vld [vmem:[%s12222_s3 + $0x110] sm:$0xff] }
 0x2c0   :  { %v7668_v13 = vpack.c.bf16 %v2667_v17, %v2665_v58  ;;  %v2690_v58 = vld [vmem:[%s12222_s3 + $0x28] sm:$0xff]  ;;  %v2691_v17 = vld [vmem:[%s12222_s3 + $0x30] sm:$0xff] }
 0x2c1   :  { %v7666_v20 = vpack.c.bf16 %v2668_v43, %v2666_v42  ;;  %v1726_v44 = vpop.f32.mrb[102].mxu0  ;;  %v2562_v4 = vpop.f32.mrb[102].mxu1  ;;  %v6665_v42 = vld [vmem:[%s12222_s3 + $0x100] sm:$0xff]  ;;  %v6670_v43 = vld [vmem:[%s12222_s3 + $0x128] sm:$0xff] }
 0x2c2   :  { %v2669_v46 = vmax.f32 %v1726_v44, %v10155_v18  ;;  %v1728_v45 = vpop.f32.mrb[103].mxu0  ;;  %v2564_v47 = vpop.f32.mrb[103].mxu1  ;;  %v2696_v44 = vld [vmem:[%s12222_s3 + $0x58] sm:$0xff] }
 0x2c3   :  { %v2670_v48 = vmax.f32 %v1728_v45, %v10158_v24  ;;  %7667 = vmatprep.subr.bf16.mxu0 %v7666_v20  ;;  %7723 = vmatprep.subr.bf16.mxu1 %v7666_v20  ;;  %v6669_v20 = vld [vmem:[%s12222_s3 + $0x120] sm:$0xff]  ;;  %v6671_v45 = vld [vmem:[%s12222_s3 + $0x130] sm:$0xff] }
 0x2c4   :  { %7669 = vmatpush1.bf16.msra.mxu0 %v7668_v13  ;;  %7725 = vmatpush1.bf16.msra.mxu1 %v7668_v13  ;;  %v2693_v13 = vld [vmem:[%s12222_s3 + $0x40] sm:$0xff] }
 0x2c5   :  { %v1732_v49 = vpop.f32.mrb[104].mxu0  ;;  %v2568_v51 = vpop.f32.mrb[104].mxu1 }
 0x2c6   :  { %v2671_v6 = vmax.f32 %v1732_v49, %v2532_v33  ;;  %v1734_v29 = vpop.f32.mrb[105].mxu0  ;;  %v2570_v53 = vpop.f32.mrb[105].mxu1  ;;  %v2697_v49 = vld [vmem:[%s12222_s3 + $0x60] sm:$0xff] }
 0x2c7   :  { %v2672_v60 = vmax.f32 %v1734_v29, %v2534_v39  ;;  %v6676_v29 = vld [vmem:[%s12222_s3 + $0x158] sm:$0xff] }
 0x2c8   :  { %v7672_v54 = vpack.c.bf16 %v2671_v6, %v2669_v46  ;;  %v2695_v46 = vld [vmem:[%s12222_s3 + $0x50] sm:$0xff]  ;;  %v2700_v6 = vld [vmem:[%s12222_s3 + $0x78] sm:$0xff] }
 0x2c9   :  { %v7670_v55 = vpack.c.bf16 %v2672_v60, %v2670_v48  ;;  %v1738_v1 = vpop.f32.mrb[106].mxu0  ;;  %v6674_v48 = vld [vmem:[%s12222_s3 + $0x148] sm:$0xff]  ;;  %v6675_v60 = vld [vmem:[%s12222_s3 + $0x150] sm:$0xff] }
 0x2ca   :  { %v2673_v2 = vmax.f32 %v1738_v1, %v10161_v37  ;;  %v1740_v5 = vpop.f32.mrb[107].mxu0  ;;  %v2701_v1 = vld [vmem:[%s12222_s3 + $0x80] sm:$0xff] }
 0x2cb   :  { %v2674_v7 = vmax.f32 %v1740_v5, %v10164_v41  ;;  %7671 = vmatprep.subr.bf16.mxu0 %v7670_v55  ;;  %7727 = vmatprep.subr.bf16.mxu1 %v7670_v55  ;;  %v6678_v55 = vld [vmem:[%s12222_s3 + $0x168] sm:$0xff]  ;;  %v2704_v5 = vld [vmem:[%s12222_s3 + $0x98] sm:$0xff] }
 0x2cc   :  { %7673 = vmatpush1.bf16.msra.mxu0 %v7672_v54  ;;  %7729 = vmatpush1.bf16.msra.mxu1 %v7672_v54  ;;  %v2702_v54 = vld [vmem:[%s12222_s3 + $0x88] sm:$0xff] }
 0x2cd   :  { %v1744_v8 = vpop.f32.mrb[108].mxu0 }
 0x2ce   :  { %v2675_v15 = vmax.f32 %v1744_v8, %v2544_v52  ;;  %v1746_v16 = vpop.f32.mrb[109].mxu0  ;;  %v2703_v8 = vld [vmem:[%s12222_s3 + $0x90] sm:$0xff] }
 0x2cf   :  { %v2676_v18 = vmax.f32 %v1746_v16, %v2546_v10  ;;  %v2685_v10 = vld [vmem:[%s12222_s3] sm:$0xff]  ;;  %v2706_v16 = vld [vmem:[%s12222_s3 + $0xa8] sm:$0xff] }
 0x2d0   :  { %v7676_v21 = vpack.c.bf16 %v2675_v15, %v2673_v2  ;;  %v6677_v2 = vld [vmem:[%s12222_s3 + $0x160] sm:$0xff]  ;;  %v6679_v15 = vld [vmem:[%s12222_s3 + $0x170] sm:$0xff] }
 0x2d1   :  { %v7674_v22 = vpack.c.bf16 %v2676_v18, %v2674_v7  ;;  %v1750_v24 = vpop.f32.mrb[110].mxu0  ;;  %v6680_v7 = vld [vmem:[%s12222_s3 + $0x178] sm:$0xff]  ;;  %v6682_v18 = vld [vmem:[%s12222_s3 + $0x188] sm:$0xff] }
 0x2d2   :  { %v2677_v28 = vmax.f32 %v1750_v24, %v2550_v40  ;;  %v1752_v30 = vpop.f32.mrb[111].mxu0  ;;  %v6663_v40 = vld [vmem:[%s12222_s3 + $0xf0] sm:$0xff]  ;;  %v2708_v24 = vld [vmem:[%s12222_s3 + $0xb8] sm:$0xff] }
 0x2d3   :  { %v2678_v33 = vmax.f32 %v1752_v30, %v2552_v38  ;;  %7675 = vmatprep.subr.bf16.mxu0 %v7674_v22  ;;  %7731 = vmatprep.subr.bf16.mxu1 %v7674_v22  ;;  %v2689_v38 = vld [vmem:[%s12222_s3 + $0x20] sm:$0xff]  ;;  %v2707_v30 = vld [vmem:[%s12222_s3 + $0xb0] sm:$0xff] }
 0x2d4   :  { %7677 = vmatpush1.bf16.msra.mxu0 %v7676_v21  ;;  %7733 = vmatpush1.bf16.msra.mxu1 %v7676_v21  ;;  %v2705_v21 = vld [vmem:[%s12222_s3 + $0xa0] sm:$0xff] }
 0x2d5   :  { %v1756_v36 = vpop.f32.mrb[112].mxu0  ;;  %v6681_v22 = vld [vmem:[%s12222_s3 + $0x180] sm:$0xff] }
 0x2d6   :  { %v2679_v9 = vmax.f32 %v1756_v36, %v2556_v62  ;;  %v1758_v39 = vpop.f32.mrb[113].mxu0  ;;  %v6668_v62 = vld [vmem:[%s12222_s3 + $0x118] sm:$0xff]  ;;  %v2710_v36 = vld [vmem:[%s12222_s3 + $0xc8] sm:$0xff] }
 0x2d7   :  { %v2680_v57 = vmax.f32 %v1758_v39, %v2558_v12  ;;  %v2694_v12 = vld [vmem:[%s12222_s3 + $0x48] sm:$0xff]  ;;  %v2709_v39 = vld [vmem:[%s12222_s3 + $0xc0] sm:$0xff] }
 0x2d8   :  { %v7680_v11 = vpack.c.bf16 %v2679_v9, %v2677_v28  ;;  %v6684_v28 = vld [vmem:[%s12222_s3 + $0x198] sm:$0xff]  ;;  %v6686_v9 = vld [vmem:[%s12222_s3 + $0x1a8] sm:$0xff] }
 0x2d9   :  { %v7678_v25 = vpack.c.bf16 %v2680_v57, %v2678_v33  ;;  %v1762_v31 = vpop.f32.mrb[114].mxu0  ;;  %v6683_v33 = vld [vmem:[%s12222_s3 + $0x190] sm:$0xff]  ;;  %v6685_v57 = vld [vmem:[%s12222_s3 + $0x1a0] sm:$0xff] }
 0x2da   :  { %v2681_v37 = vmax.f32 %v1762_v31, %v2562_v4  ;;  %v1764_v35 = vpop.f32.mrb[115].mxu0  ;;  %v6672_v4 = vld [vmem:[%s12222_s3 + $0x138] sm:$0xff]  ;;  %v2711_v31 = vld [vmem:[%s12222_s3 + $0xd0] sm:$0xff] }
 0x2db   :  { %v2682_v59 = vmax.f32 %v1764_v35, %v2564_v47  ;;  %7679 = vmatprep.subr.bf16.mxu0 %v7678_v25  ;;  %7735 = vmatprep.subr.bf16.mxu1 %v7678_v25  ;;  %v2698_v47 = vld [vmem:[%s12222_s3 + $0x68] sm:$0xff]  ;;  %v6688_v25 = vld [vmem:[%s12222_s3 + $0x1b8] sm:$0xff]  ;;  %v3154_v35 = vlaneseq }
 0x2dc   :  { %7681 = vmatpush1.bf16.msra.mxu0 %v7680_v11  ;;  %7737 = vmatpush1.bf16.msra.mxu1 %v7680_v11  ;;  %v2712_v11 = vld [vmem:[%s12222_s3 + $0xd8] sm:$0xff] }
 0x2dd   :  { %v1768_v41 = vpop.f32.mrb[116].mxu0 }
 0x2de   :  { %v2683_v23 = vmax.f32 %v1768_v41, %v2568_v51  ;;  %v1770_v50 = vpop.f32.mrb[117].mxu0  ;;  %v6673_v51 = vld [vmem:[%s12222_s3 + $0x140] sm:$0xff] }
 0x2df   :  { %v2684_v52 = vmax.f32 %v1770_v50, %v2570_v53  ;;  %v2699_v53 = vld [vmem:[%s12222_s3 + $0x70] sm:$0xff] }
 0x2e0   :  { %v7684_v32 = vpack.c.bf16 %v2683_v23, %v2681_v37  ;;  %v6687_v37 = vld [vmem:[%s12222_s3 + $0x1b0] sm:$0xff]  ;;  %v3152_v23 = vld [vmem:[%s12223_s4] sm:$0x3] }
 0x2e1   :  { %v7682_v3 = vpack.c.bf16 %v2684_v52, %v2682_v59  ;;  %v3155_v59 = vshrl.u32 %v3154_v35, 7 }
 0x2e3   :  { %7683 = vmatprep.subr.bf16.mxu0 %v7682_v3  ;;  %7739 = vmatprep.subr.bf16.mxu1 %v7682_v3  ;;  %v3156_v41 = vsub.s32 0, %v3155_v59  ;;  %v3160_v50 = vsub.s32 1, %v3155_v59 }
 0x2e4   :  { %7685 = vmatpush1.bf16.msra.mxu0 %v7684_v32  ;;  %7741 = vmatpush1.bf16.msra.mxu1 %v7684_v32 }
 0x2e5   :  { %v10366_v52 = vrot.slane %v3152_v23, %v3156_v41 }
 0x2e7   :  { %2820 = vmatmul.mubr.f32.vlgmr.msra.gmra.mrb[118].mxu0 %v2685_v10  ;;  %3040 = vmatmul.mubr.f32.vlgmr.msra.gmra.mrb[106].mxu1 %v6661_v19  ;;  %v10368_v10 = vrot.slane %v3152_v23, %v3160_v50 }
 0x2e8   :  { %6648 = vmatprep.mubr.msk.f32.mxu0 %vm140_vm0, %v2688_v27  ;;  %6690 = vmatprep.mubr.msk.f32.mxu1 %vm140_vm0, %v6664_v34 }
 0x2eb   :  { %2826 = vmatmul.mubr.f32.gmra.mrb[120].mxu0 %v2687_v56  ;;  %3046 = vmatmul.mubr.f32.gmra.mrb[108].mxu1 %v6663_v40 }
 0x2ec   :  { %6649 = vmatprep.mubr.msk.f32.mxu0 %vm140_vm0, %v2690_v58  ;;  %6691 = vmatprep.mubr.msk.f32.mxu1 %vm140_vm0, %v6666_v14 }
 0x2ef   :  { %2832 = vmatmul.mubr.f32.gmra.mrb[122].mxu0 %v2689_v38  ;;  %3052 = vmatmul.mubr.f32.gmra.mrb[110].mxu1 %v6665_v42 }
 0x2f0   :  { %6650 = vmatprep.mubr.msk.f32.mxu0 %vm140_vm0, %v2692_v61  ;;  %6692 = vmatprep.mubr.msk.f32.mxu1 %vm140_vm0, %v6668_v62 }
 0x2f3   :  { %2838 = vmatmul.mubr.f32.gmra.mrb[124].mxu0 %v2691_v17  ;;  %3058 = vmatmul.mubr.f32.gmra.mrb[112].mxu1 %v6667_v63 }
 0x2f4   :  { %6651 = vmatprep.mubr.msk.f32.mxu0 %vm140_vm0, %v2694_v12  ;;  %6693 = vmatprep.mubr.msk.f32.mxu1 %vm140_vm0, %v6670_v43 }
 0x2f7   :  { %2844 = vmatmul.mubr.f32.gmra.mrb[126].mxu0 %v2693_v13  ;;  %3064 = vmatmul.mubr.f32.gmra.mrb[114].mxu1 %v6669_v20 }
 0x2f8   :  { %6652 = vmatprep.mubr.msk.f32.mxu0 %vm140_vm0, %v2696_v44  ;;  %6694 = vmatprep.mubr.msk.f32.mxu1 %vm140_vm0, %v6672_v4 }
 0x2fb   :  { %2850 = vmatmul.mubr.f32.gmra.mrb[128].mxu0 %v2695_v46  ;;  %3070 = vmatmul.mubr.f32.gmra.mrb[116].mxu1 %v6671_v45 }
 0x2fc   :  { %6653 = vmatprep.mubr.msk.f32.mxu0 %vm140_vm0, %v2698_v47  ;;  %6695 = vmatprep.mubr.msk.f32.mxu1 %vm140_vm0, %v6674_v48 }
 0x2ff   :  { %2856 = vmatmul.mubr.f32.gmra.mrb[130].mxu0 %v2697_v49  ;;  %3076 = vmatmul.mubr.f32.gmra.mrb[118].mxu1 %v6673_v51 }
 0x300   :  { %6654 = vmatprep.mubr.msk.f32.mxu0 %vm140_vm0, %v2700_v6  ;;  %6696 = vmatprep.mubr.msk.f32.mxu1 %vm140_vm0, %v6676_v29 }
 0x303   :  { %2862 = vmatmul.mubr.f32.gmra.mrb[132].mxu0 %v2699_v53  ;;  %3082 = vmatmul.mubr.f32.gmra.mrb[120].mxu1 %v6675_v60 }
 0x304   :  { %6655 = vmatprep.mubr.msk.f32.mxu0 %vm140_vm0, %v2702_v54  ;;  %6697 = vmatprep.mubr.msk.f32.mxu1 %vm140_vm0, %v6678_v55 }
 0x307   :  { %2868 = vmatmul.mubr.f32.gmra.mrb[134].mxu0 %v2701_v1  ;;  %3088 = vmatmul.mubr.f32.gmra.mrb[122].mxu1 %v6677_v2 }
 0x308   :  { %6656 = vmatprep.mubr.msk.f32.mxu0 %vm140_vm0, %v2704_v5  ;;  %6698 = vmatprep.mubr.msk.f32.mxu1 %vm140_vm0, %v6680_v7 }
 0x30b   :  { %2874 = vmatmul.mubr.f32.gmra.mrb[136].mxu0 %v2703_v8  ;;  %3094 = vmatmul.mubr.f32.gmra.mrb[124].mxu1 %v6679_v15 }
 0x30c   :  { %6657 = vmatprep.mubr.msk.f32.mxu0 %vm140_vm0, %v2706_v16  ;;  %6699 = vmatprep.mubr.msk.f32.mxu1 %vm140_vm0, %v6682_v18 }
 0x30f   :  { %2880 = vmatmul.mubr.f32.gmra.mrb[138].mxu0 %v2705_v21  ;;  %3100 = vmatmul.mubr.f32.gmra.mrb[126].mxu1 %v6681_v22 }
 0x310   :  { %6658 = vmatprep.mubr.msk.f32.mxu0 %vm140_vm0, %v2708_v24  ;;  %6700 = vmatprep.mubr.msk.f32.mxu1 %vm140_vm0, %v6684_v28 }
 0x313   :  { %2886 = vmatmul.mubr.f32.gmra.mrb[140].mxu0 %v2707_v30  ;;  %3106 = vmatmul.mubr.f32.gmra.mrb[128].mxu1 %v6683_v33 }
 0x314   :  { %6659 = vmatprep.mubr.msk.f32.mxu0 %vm140_vm0, %v2710_v36  ;;  %6701 = vmatprep.mubr.msk.f32.mxu1 %vm140_vm0, %v6686_v9 }
 0x317   :  { %2892 = vmatmul.mubr.f32.gmra.mrb[142].mxu0 %v2709_v39  ;;  %3112 = vmatmul.mubr.f32.gmra.mrb[130].mxu1 %v6685_v57 }
 0x318   :  { %6660 = vmatprep.mubr.msk.f32.mxu0 %vm140_vm0, %v2712_v11  ;;  %6702 = vmatprep.mubr.msk.f32.mxu1 %vm140_vm0, %v6688_v25 }
 0x31b   :  { %2898 = vmatmul.mubr.f32.gmra.mrb[144].mxu0 %v2711_v31  ;;  %3118 = vmatmul.mubr.f32.gmra.mrb[132].mxu1 %v6687_v37 }
 0x31c   :  { %3481 = vmatprep.mubr.f32.mxu0 %v8659_v26  ;;  %3687 = vmatprep.mubr.f32.mxu1 %v8659_v26 }
 0x3ba   :  { %v2821_v32 = vpop.f32.mrb[118].mxu0  ;;  %v3041_v3 = vpop.f32.mrb[106].mxu1 }
 0x3bb   :  { %v3124_v19 = vmax.f32 %v2821_v32, %v3041_v3  ;;  %v2823_v27 = vpop.f32.mrb[119].mxu0  ;;  %v3043_v34 = vpop.f32.mrb[107].mxu1 }
 0x3bc   :  { %v3125_v56 = vmax.f32 %v2823_v27, %v3043_v34 }
 0x3bd   :  { %v10371_v40 = vadd.f32 %v10366_v52, %v3124_v19 }
 0x3be   :  { %v10374_v58 = vadd.f32 %v10368_v10, %v3125_v56  ;;  %v2827_v14 = vpop.f32.mrb[120].mxu0  ;;  %v3047_v38 = vpop.f32.mrb[108].mxu1 }
 0x3bf   :  { %v3126_v42 = vmax.f32 %v2827_v14, %v3047_v38  ;;  %v2829_v61 = vpop.f32.mrb[121].mxu0  ;;  %v3049_v62 = vpop.f32.mrb[109].mxu1  ;;  %v3220_v12 = vmin.f32 %v10371_v40, 0.0  ;;  %vm3192_vm8 = vcmp.gt.f32.partialorder %v10371_v40, 0.0 }
 0x3c0   :  { %v3221_v17 = vmin.f32 %v10374_v58, 0.0  ;;  %v3127_v63 = vmax.f32 %v2829_v61, %v3049_v62  ;;  %vm3193_vm5 = vcmp.gt.f32.partialorder %v10374_v58, 0.0 }
 0x3c1   :  { %v10379_v43 = vadd.f32 %v10366_v52, %v3126_v42  ;;  %v3248_v6 = vmul.f32 1.442695, %v3220_v12 }
 0x3c2   :  { %v3250_v13 = vmul.f32 1.442695, %v3221_v17  ;;  %v10382_v20 = vadd.f32 %v10368_v10, %v3127_v63  ;;  %v2833_v44 = vpop.f32.mrb[122].mxu0  ;;  %v3053_v4 = vpop.f32.mrb[110].mxu1 }
 0x3c3   :  { %v3222_v46 = vmin.f32 %v10379_v43, 0.0  ;;  %v3128_v45 = vmax.f32 %v2833_v44, %v3053_v4  ;;  %v2835_v47 = vpop.f32.mrb[123].mxu0  ;;  %v3055_v48 = vpop.f32.mrb[111].mxu1  ;;  %vm3194_vm6 = vcmp.gt.f32.partialorder %v10379_v43, 0.0 }
 0x3c4   :  { %v3223_v49 = vmin.f32 %v10382_v20, 0.0  ;;  %v3129_v51 = vmax.f32 %v2835_v47, %v3055_v48  ;;  %8571 = vpow2.f32 %v3250_v13  ;;  %vm3195_vm7 = vcmp.gt.f32.partialorder %v10382_v20, 0.0 }
 0x3c5   :  { %v3252_v29 = vmul.f32 1.442695, %v3222_v46  ;;  %v10387_v53 = vadd.f32 %v10366_v52, %v3128_v45 }
 0x3c6   :  { %v3254_v60 = vmul.f32 1.442695, %v3223_v49  ;;  %v10390_v54 = vadd.f32 %v10368_v10, %v3129_v51  ;;  %v2839_v55 = vpop.f32.mrb[124].mxu0  ;;  %v3059_v1 = vpop.f32.mrb[112].mxu1 }
 0x3c7   :  { %8573 = vpow2.f32 %v3252_v29  ;;  %v3224_v2 = vmin.f32 %v10387_v53, 0.0  ;;  %v3130_v5 = vmax.f32 %v2839_v55, %v3059_v1  ;;  %v2841_v7 = vpop.f32.mrb[125].mxu0  ;;  %v3061_v8 = vpop.f32.mrb[113].mxu1  ;;  %vm3196_vm9 = vcmp.gt.f32.partialorder %v10387_v53, 0.0 }
 0x3c8   :  { %8575 = vpow2.f32 %v3254_v60  ;;  %v3225_v15 = vmin.f32 %v10390_v54, 0.0  ;;  %v3131_v16 = vmax.f32 %v2841_v7, %v3061_v8  ;;  %vm3197_vm10 = vcmp.gt.f32.partialorder %v10390_v54, 0.0 }
 0x3c9   :  { %8577 = vpow2.f32 %v3248_v6  ;;  %v10395_v18 = vadd.f32 %v10366_v52, %v3130_v5  ;;  %v3256_v28 = vmul.f32 1.442695, %v3224_v2 }
 0x3ca   :  { %v10398_v21 = vadd.f32 %v10368_v10, %v3131_v16  ;;  %v2845_v22 = vpop.f32.mrb[126].mxu0  ;;  %v3065_v24 = vpop.f32.mrb[114].mxu1  ;;  %v3258_v39 = vmul.f32 1.442695, %v3225_v15 }
 0x3cb   :  { %v3226_v30 = vmin.f32 %v10395_v18, 0.0  ;;  %v3132_v33 = vmax.f32 %v2845_v22, %v3065_v24  ;;  %v2847_v36 = vpop.f32.mrb[127].mxu0  ;;  %v3067_v9 = vpop.f32.mrb[115].mxu1  ;;  %8579 = vpow2.f32 %v3256_v28  ;;  %vm3198_vm11 = vcmp.gt.f32.partialorder %v10395_v18, 0.0 }
 0x3cc   :  { %v3227_v57 = vmin.f32 %v10398_v21, 0.0  ;;  %v3133_v11 = vmax.f32 %v2847_v36, %v3067_v9  ;;  %8581 = vpow2.f32 %v3258_v39  ;;  %vm3199_vm12 = vcmp.gt.f32.partialorder %v10398_v21, 0.0 }
 0x3cd   :  { %v3260_v25 = vmul.f32 1.442695, %v3226_v30  ;;  %v10403_v31 = vadd.f32 %v10366_v52, %v3132_v33 }
 0x3ce   :  { %v3262_v37 = vmul.f32 1.442695, %v3227_v57  ;;  %v10406_v35 = vadd.f32 %v10368_v10, %v3133_v11  ;;  %v2851_v59 = vpop.f32.mrb[128].mxu0  ;;  %v3071_v41 = vpop.f32.mrb[116].mxu1 }
 0x3cf   :  { %v3228_v23 = vmin.f32 %v10403_v31, 0.0  ;;  %v3134_v50 = vmax.f32 %v2851_v59, %v3071_v41  ;;  %v2853_v32 = vpop.f32.mrb[129].mxu0  ;;  %v3073_v3 = vpop.f32.mrb[117].mxu1  ;;  %8583 = vpow2.f32 %v3260_v25  ;;  %vm3200_vm15 = vcmp.gt.f32.partialorder %v10403_v31, 0.0 }
 0x3d0   :  { %v8572_v19 = vpop.eup %8571  ;;  %v3135_v56 = vmax.f32 %v2853_v32, %v3073_v3  ;;  %8585 = vpow2.f32 %v3262_v37  ;;  %v3229_v42 = vmin.f32 %v10406_v35, 0.0  ;;  %vm3201_vm14 = vcmp.gt.f32.partialorder %v10406_v35, 0.0 }
 0x3d1   :  { %v8574_v27 = vpop.eup %8573  ;;  %v10410_v34 = vadd.f32 %v10366_v52, %v3134_v50  ;;  %v3264_v38 = vmul.f32 1.442695, %v3228_v23  ;;  %v6704_v47 = vadd.f32 -1.0, %v8572_v19 }
 0x3d2   :  { %v8576_v14 = vpop.eup %8575  ;;  %v2857_v61 = vpop.f32.mrb[130].mxu0  ;;  %v10417_v12 = vadd.f32 %v10368_v10, %v3135_v56  ;;  %v6705_v4 = vadd.f32 -1.0, %v8574_v27  ;;  %v3266_v29 = vmul.f32 1.442695, %v3229_v42 }
 0x3d3   :  { %v3077_v62 = vpop.f32.mrb[118].mxu1  ;;  %v8578_v17 = vpop.eup %8577  ;;  %v3230_v63 = vmin.f32 %v10410_v34, 0.0  ;;  %v6706_v51 = vadd.f32 -1.0, %v8576_v14  ;;  %8587 = vpow2.f32 %v3264_v38  ;;  %v10439_v24 = vsel %vm3193_vm5, %v10374_v58, %v6704_v47 }
 0x3d4   :  { %v2859_v13 = vpop.f32.mrb[131].mxu0  ;;  %v3079_v44 = vpop.f32.mrb[119].mxu1  ;;  %v3136_v46 = vmax.f32 %v2857_v61, %v3077_v62  ;;  %v3231_v49 = vmin.f32 %v10417_v12, 0.0  ;;  %v6703_v6 = vadd.f32 -1.0, %v8578_v17  ;;  %v10434_v22 = vsel %vm3194_vm6, %v10379_v43, %v6705_v4 }
 0x3d5   :  { %v3137_v45 = vmax.f32 %v2859_v13, %v3079_v44  ;;  %v3268_v48 = vmul.f32 1.442695, %v3230_v63  ;;  %v10428_v16 = vsel %vm3195_vm7, %v10382_v20, %v6706_v51  ;;  %v8580_v28 = vpop.eup %8579  ;;  %vm3203_vm13 = vcmp.gt.f32.partialorder %v10417_v12, 0.0 }
 0x3d6   :  { %v10422_v60 = vadd.f32 %v10366_v52, %v3136_v46  ;;  %v2863_v55 = vpop.f32.mrb[132].mxu0  ;;  %v3083_v1 = vpop.f32.mrb[120].mxu1  ;;  %v3270_v2 = vmul.f32 1.442695, %v3231_v49  ;;  %v10446_v9 = vsel %vm3192_vm8, %v10371_v40, %v6703_v6  ;;  %v7742_v43 = vpack.c.bf16 %v10428_v16, %v10439_v24 }
 0x3d7   :  { %v10425_v5 = vadd.f32 %v10368_v10, %v3137_v45  ;;  %v3138_v7 = vmax.f32 %v2863_v55, %v3083_v1  ;;  %v2865_v8 = vpop.f32.mrb[133].mxu0  ;;  %v3085_v15 = vpop.f32.mrb[121].mxu1  ;;  %8589 = vpow2.f32 %v3268_v48  ;;  %v7744_v59 = vpack.c.bf16 %v10434_v22, %v10446_v9 }
 0x3d8   :  { %8591 = vpow2.f32 %v3270_v2  ;;  %v3232_v30 = vmin.f32 %v10422_v60, 0.0  ;;  %v3139_v33 = vmax.f32 %v2865_v8, %v3085_v15  ;;  %v8582_v36 = vpop.eup %8581  ;;  %7743 = vmatprep.subr.bf16.mxu0 %v7742_v43  ;;  %7771 = vmatprep.subr.bf16.mxu1 %v7742_v43  ;;  %v6707_v3 = vadd.f32 -1.0, %v8580_v28 }
 0x3d9   :  { %v10443_v20 = vadd.f32 %v10366_v52, %v3138_v7  ;;  %8593 = vpow2.f32 %v3266_v29  ;;  %v8584_v58 = vpop.eup %8583  ;;  %v3233_v11 = vmin.f32 %v10425_v5, 0.0  ;;  %7745 = vmatpush1.bf16.msra.mxu0 %v7744_v59  ;;  %7773 = vmatpush1.bf16.msra.mxu1 %v7744_v59  ;;  %v6708_v4 = vadd.f32 -1.0, %v8582_v36 }
 0x3da   :  { %v2869_v39 = vpop.f32.mrb[134].mxu0  ;;  %v3089_v57 = vpop.f32.mrb[122].mxu1  ;;  %v10453_v37 = vadd.f32 %v10368_v10, %v3139_v33  ;;  %v3272_v19 = vmul.f32 1.442695, %v3232_v30  ;;  %v6709_v56 = vadd.f32 -1.0, %v8584_v58  ;;  %v10477_v55 = vsel %vm3196_vm9, %v10387_v53, %v6707_v3 }
 0x3db   :  { %v3234_v25 = vmin.f32 %v10443_v20, 0.0  ;;  %v2871_v41 = vpop.f32.mrb[135].mxu0  ;;  %v3091_v40 = vpop.f32.mrb[123].mxu1  ;;  %v3140_v50 = vmax.f32 %v2869_v39, %v3089_v57  ;;  %v3274_v17 = vmul.f32 1.442695, %v3233_v11  ;;  %vm3202_vm1 = vcmp.gt.f32.partialorder %v10410_v34, 0.0 }
 0x3dc   :  { %v8586_v23 = vpop.eup %8585  ;;  %v3141_v32 = vmax.f32 %v2871_v41, %v3091_v40  ;;  %v3235_v27 = vmin.f32 %v10453_v37, 0.0  ;;  %8595 = vpow2.f32 %v3272_v19  ;;  %v10482_v1 = vsel %vm3198_vm11, %v10395_v18, %v6709_v56 }
 0x3dd   :  { %v3276_v14 = vmul.f32 1.442695, %v3234_v25  ;;  %v10462_v38 = vadd.f32 %v10366_v52, %v3140_v50  ;;  %v6710_v46 = vadd.f32 -1.0, %v8586_v23  ;;  %v8588_v45 = vpop.eup %8587  ;;  %v10496_v18 = vsel %vm3197_vm10, %v10390_v54, %v6708_v4 }
 0x3de   :  { %v10465_v42 = vadd.f32 %v10368_v10, %v3141_v32  ;;  %v2875_v61 = vpop.f32.mrb[136].mxu0  ;;  %v3095_v62 = vpop.f32.mrb[124].mxu1  ;;  %v3278_v47 = vmul.f32 1.442695, %v3235_v27  ;;  %v6711_v36 = vadd.f32 -1.0, %v8588_v45  ;;  %v7748_v25 = vpack.c.bf16 %v10482_v1, %v10477_v55 }
 0x3df   :  { %v3142_v63 = vmax.f32 %v2875_v61, %v3095_v62  ;;  %v2877_v13 = vpop.f32.mrb[137].mxu0  ;;  %v3097_v44 = vpop.f32.mrb[125].mxu1  ;;  %v3236_v48 = vmin.f32 %v10462_v38, 0.0  ;;  %8597 = vpow2.f32 %v3276_v14  ;;  %v10486_v2 = vsel %vm3199_vm12, %v10398_v21, %v6710_v46 }
 0x3e0   :  { %v3237_v49 = vmin.f32 %v10465_v42, 0.0  ;;  %v3143_v6 = vmax.f32 %v2877_v13, %v3097_v44  ;;  %8599 = vpow2.f32 %v3274_v17  ;;  %v7746_v39 = vpack.c.bf16 %v10486_v2, %v10496_v18 }
 0x3e1   :  { %v10472_v51 = vadd.f32 %v10366_v52, %v3142_v63  ;;  %v8590_v29 = vpop.eup %8589  ;;  %8601 = vpow2.f32 %v3278_v47  ;;  %v3280_v43 = vmul.f32 1.442695, %v3236_v48  ;;  %vm3204_vm2 = vcmp.gt.f32.partialorder %v10422_v60, 0.0 }
 0x3e2   :  { %v2881_v7 = vpop.f32.mrb[138].mxu0  ;;  %v3101_v8 = vpop.f32.mrb[126].mxu1  ;;  %v10491_v28 = vadd.f32 %v10368_v10, %v3143_v6  ;;  %v3282_v57 = vmul.f32 1.442695, %v3237_v49  ;;  %v6713_v59 = vadd.f32 -1.0, %v8590_v29  ;;  %7747 = vmatprep.subr.bf16.mxu0 %v7746_v39  ;;  %7775 = vmatprep.subr.bf16.mxu1 %v7746_v39  ;;  %vm3205_vm3 = vcmp.gt.f32.partialorder %v10425_v5, 0.0 }
 0x3e3   :  { %v8592_v15 = vpop.eup %8591  ;;  %v3238_v53 = vmin.f32 %v10472_v51, 0.0  ;;  %v2883_v30 = vpop.f32.mrb[139].mxu0  ;;  %v3144_v54 = vmax.f32 %v2881_v7, %v3101_v8  ;;  %7749 = vmatpush1.bf16.msra.mxu0 %v7748_v25  ;;  %7777 = vmatpush1.bf16.msra.mxu1 %v7748_v25  ;;  %v10536_v7 = vsel %vm3200_vm15, %v10403_v31, %v6711_v36  ;;  %vm3206_vm4 = vcmp.gt.f32.partialorder %v10443_v20, 0.0 }
 0x3e4   :  { %v3103_v33 = vpop.f32.mrb[127].mxu1  ;;  %v8594_v21 = vpop.eup %8593  ;;  %v3239_v11 = vmin.f32 %v10491_v28, 0.0  ;;  %v6714_v50 = vadd.f32 -1.0, %v8592_v15  ;;  %v10519_v13 = vsel %vm3202_vm1, %v10410_v34, %v6713_v59  ;;  %vm3207_vm5 = vcmp.gt.f32.partialorder %v10453_v37, 0.0 }
 0x3e5   :  { %v3284_v58 = vmul.f32 1.442695, %v3238_v53  ;;  %v3145_v41 = vmax.f32 %v2883_v30, %v3103_v33  ;;  %v6712_v56 = vadd.f32 -1.0, %v8594_v21  ;;  %v10504_v14 = vadd.f32 %v10366_v52, %v3144_v54 }
 0x3e6   :  { %v2887_v40 = vpop.f32.mrb[140].mxu0  ;;  %v3107_v23 = vpop.f32.mrb[128].mxu1  ;;  %v3286_v32 = vmul.f32 1.442695, %v3239_v11  ;;  %v10516_v63 = vsel %vm3203_vm13, %v10417_v12, %v6714_v50  ;;  %v7752_v21 = vpack.c.bf16 %v10519_v13, %v10536_v7  ;;  %vm3210_vm6 = vcmp.gt.f32.partialorder %v10472_v51, 0.0 }
 0x3e7   :  { %8603 = vpow2.f32 %v3284_v58  ;;  %v3146_v3 = vmax.f32 %v2887_v40, %v3107_v23  ;;  %v2889_v19 = vpop.f32.mrb[141].mxu0  ;;  %v3109_v27 = vpop.f32.mrb[129].mxu1  ;;  %v10507_v61 = vadd.f32 %v10368_v10, %v3145_v41  ;;  %v3240_v44 = vmin.f32 %v10504_v14, 0.0 }
 0x3e8   :  { %8605 = vpow2.f32 %v3280_v43  ;;  %v3147_v62 = vmax.f32 %v2889_v19, %v3109_v27  ;;  %v8596_v45 = vpop.eup %8595  ;;  %v10531_v34 = vsel %vm3201_vm14, %v10406_v35, %v6712_v56  ;;  %vm3209_vm7 = vcmp.gt.f32.partialorder %v10465_v42, 0.0 }
 0x3e9   :  { %8607 = vpow2.f32 %v3282_v57  ;;  %v10511_v17 = vadd.f32 %v10366_v52, %v3146_v3  ;;  %v3241_v47 = vmin.f32 %v10507_v61, 0.0  ;;  %v8598_v29 = vpop.eup %8597  ;;  %v3288_v8 = vmul.f32 1.442695, %v3240_v44 }
 0x3ea   :  { %8609 = vpow2.f32 %v3286_v32  ;;  %v2893_v4 = vpop.f32.mrb[142].mxu0  ;;  %v3113_v46 = vpop.f32.mrb[130].mxu1  ;;  %v10526_v49 = vadd.f32 %v10368_v10, %v3147_v62  ;;  %v7750_v15 = vpack.c.bf16 %v10516_v63, %v10531_v34  ;;  %v6715_v39 = vadd.f32 -1.0, %v8596_v45 }
 0x3eb   :  { %v3242_v48 = vmin.f32 %v10511_v17, 0.0  ;;  %v2895_v12 = vpop.f32.mrb[143].mxu0  ;;  %v3115_v6 = vpop.f32.mrb[131].mxu1  ;;  %v3290_v30 = vmul.f32 1.442695, %v3241_v47  ;;  %8611 = vpow2.f32 %v3288_v8  ;;  %v3148_v31 = vmax.f32 %v2893_v4, %v3113_v46 }
 0x3ec   :  { %v8600_v53 = vpop.eup %8599  ;;  %v3243_v35 = vmin.f32 %v10526_v49, 0.0  ;;  %7751 = vmatprep.subr.bf16.mxu0 %v7750_v15  ;;  %7779 = vmatprep.subr.bf16.mxu1 %v7750_v15  ;;  %v3149_v36 = vmax.f32 %v2895_v12, %v3115_v6  ;;  %v6717_v11 = vadd.f32 -1.0, %v8598_v29  ;;  %v10560_v4 = vsel %vm3204_vm2, %v10422_v60, %v6715_v39 }
 0x3ed   :  { %v3292_v33 = vmul.f32 1.442695, %v3242_v48  ;;  %v8602_v43 = vpop.eup %8601  ;;  %8613 = vpow2.f32 %v3290_v30  ;;  %7753 = vmatpush1.bf16.msra.mxu0 %v7752_v21  ;;  %7781 = vmatpush1.bf16.msra.mxu1 %v7752_v21  ;;  %v10545_v40 = vadd.f32 %v10366_v52, %v3148_v31  ;;  %v6716_v19 = vadd.f32 -1.0, %v8600_v53 }
 0x3ee   :  { %v2899_v57 = vpop.f32.mrb[144].mxu0  ;;  %v3119_v58 = vpop.f32.mrb[132].mxu1  ;;  %v3294_v25 = vmul.f32 1.442695, %v3243_v35  ;;  %v10548_v23 = vadd.f32 %v10368_v10, %v3149_v36  ;;  %v6718_v27 = vadd.f32 -1.0, %v8602_v43  ;;  %v10568_v48 = vsel %vm3206_vm4, %v10443_v20, %v6717_v11 }
 0x3ef   :  { %v3150_v59 = vmax.f32 %v2899_v57, %v3119_v58  ;;  %v2901_v54 = vpop.f32.mrb[145].mxu0  ;;  %v3121_v41 = vpop.f32.mrb[133].mxu1  ;;  %8615 = vpow2.f32 %v3292_v33  ;;  %v3244_v62 = vmin.f32 %v10545_v40, 0.0  ;;  %v10577_v53 = vsel %vm3205_vm3, %v10425_v5, %v6716_v19 }
 0x3f0   :  { %v3151_v50 = vmax.f32 %v2901_v54, %v3121_v41  ;;  %8617 = vpow2.f32 %v3294_v25  ;;  %v10571_v29 = vsel %vm3207_vm5, %v10453_v37, %v6718_v27  ;;  %v7756_v37 = vpack.c.bf16 %v10568_v48, %v10560_v4 }
 0x3f1   :  { %v8604_v32 = vpop.eup %8603  ;;  %v10551_v3 = vadd.f32 %v10366_v52, %v3150_v59  ;;  %v3245_v52 = vmin.f32 %v10548_v23, 0.0  ;;  %v3296_v6 = vmul.f32 1.442695, %v3244_v62  ;;  %v7754_v20 = vpack.c.bf16 %v10571_v29, %v10577_v53 }
 0x3f2   :  { %v8606_v56 = vpop.eup %8605  ;;  %v10565_v45 = vadd.f32 %v10368_v10, %v3151_v50  ;;  %v6721_v12 = vadd.f32 -1.0, %v8604_v32  ;;  %vm3211_vm8 = vcmp.gt.f32.partialorder %v10491_v28, 0.0  ;;  %vm3208_vm9 = vcmp.gt.f32.partialorder %v10462_v38, 0.0 }
 0x3f3   :  { %v8608_v44 = vpop.eup %8607  ;;  %v3246_v46 = vmin.f32 %v10551_v3, 0.0  ;;  %v3298_v8 = vmul.f32 1.442695, %v3245_v52  ;;  %v6719_v10 = vadd.f32 -1.0, %v8606_v56  ;;  %8619 = vpow2.f32 %v3296_v6  ;;  %7755 = vmatprep.subr.bf16.mxu0 %v7754_v20  ;;  %7783 = vmatprep.subr.bf16.mxu1 %v7754_v20 }
 0x3f4   :  { %v8610_v47 = vpop.eup %8609  ;;  %v3247_v60 = vmin.f32 %v10565_v45, 0.0  ;;  %v6720_v30 = vadd.f32 -1.0, %v8608_v44  ;;  %v10587_v5 = vsel %vm3210_vm6, %v10472_v51, %v6721_v12  ;;  %7757 = vmatpush1.bf16.msra.mxu0 %v7756_v37  ;;  %7785 = vmatpush1.bf16.msra.mxu1 %v7756_v37  ;;  %vm3214_vm10 = vcmp.gt.f32.partialorder %v10511_v17, 0.0  ;;  %v6773_v12 = vld [vmem:[%s12224_s6 + $0xe0] sm:$0xff]  ;;  %v6901_v37 = vld [vmem:[%s12224_s6 + $0x390] sm:$0xff] }
 0x3f5   :  { %v3300_v15 = vmul.f32 1.442695, %v3246_v46  ;;  %8621 = vpow2.f32 %v3298_v8  ;;  %v6722_v35 = vadd.f32 -1.0, %v8610_v47  ;;  %v8612_v21 = vpop.eup %8611  ;;  %v10598_v51 = vsel %vm3208_vm9, %v10462_v38, %v6719_v10  ;;  %v6774_v8 = vld [vmem:[%s12224_s6 + $0xe8] sm:$0xff] }
 0x3f6   :  { %v3302_v33 = vmul.f32 1.442695, %v3247_v60  ;;  %v10592_v39 = vsel %vm3209_vm7, %v10465_v42, %v6720_v30  ;;  %v6723_v25 = vadd.f32 -1.0, %v8612_v21  ;;  %v7760_v54 = vpack.c.bf16 %v10587_v5, %v10598_v51  ;;  %v6745_v60 = vld [vmem:[%s12225_s5 + $0x70] sm:$0xff]  ;;  %v3361_v21 = vld [vmem:[%s12225_s5 + $0x8] sm:$0xff] }
 0x3f7   :  { %8623 = vpow2.f32 %v3300_v15  ;;  %v8614_v43 = vpop.eup %8613  ;;  %v10595_v31 = vsel %vm3211_vm8, %v10491_v28, %v6722_v35  ;;  %vm3213_vm11 = vcmp.gt.f32.partialorder %v10507_v61, 0.0  ;;  %vm3215_vm12 = vcmp.gt.f32.partialorder %v10526_v49, 0.0  ;;  %v6775_v30 = vld [vmem:[%s12224_s6 + $0xf0] sm:$0xff]  ;;  %v6902_v35 = vld [vmem:[%s12224_s6 + $0x398] sm:$0xff] }
 0x3f8   :  { %8625 = vpow2.f32 %v3302_v33  ;;  %v7758_v57 = vpack.c.bf16 %v10595_v31, %v10592_v39  ;;  %v6724_v58 = vadd.f32 -1.0, %v8614_v43  ;;  %vm3212_vm13 = vcmp.gt.f32.partialorder %v10504_v14, 0.0  ;;  %v6776_v33 = vld [vmem:[%s12224_s6 + $0xf8] sm:$0xff] }
 0x3f9   :  { %v8616_v36 = vpop.eup %8615  ;;  %v10618_v50 = vsel %vm3212_vm13, %v10504_v14, %v6723_v25  ;;  %vm3218_vm14 = vcmp.gt.f32.partialorder %v10551_v3, 0.0  ;;  %vm3217_vm15 = vcmp.gt.f32.partialorder %v10548_v23, 0.0  ;;  %vm3219_vm1 = vcmp.gt.f32.partialorder %v10565_v45, 0.0  ;;  %v6746_v43 = vld [vmem:[%s12225_s5 + $0x78] sm:$0xff]  ;;  %v6903_v25 = vld [vmem:[%s12224_s6 + $0x3a0] sm:$0xff] }
 0x3fa   :  { %v8618_v11 = vpop.eup %8617  ;;  %v6725_v59 = vadd.f32 -1.0, %v8616_v36  ;;  %7759 = vmatprep.subr.bf16.mxu0 %v7758_v57  ;;  %7787 = vmatprep.subr.bf16.mxu1 %v7758_v57  ;;  %v10612_v28 = vsel %vm3213_vm11, %v10507_v61, %v6724_v58  ;;  %vm3216_vm2 = vcmp.gt.f32.partialorder %v10545_v40, 0.0  ;;  %vm3374_vm3 = vcmask 916480   ;;  %v6777_v58 = vld [vmem:[%s12224_s6 + $0x100] sm:$0xff] }
 0x3fb   :  { %v6726_v42 = vadd.f32 -1.0, %v8618_v11  ;;  %7761 = vmatpush1.bf16.msra.mxu0 %v7760_v54  ;;  %7789 = vmatpush1.bf16.msra.mxu1 %v7760_v54  ;;  %v7799_v10 = vpack.c.bf16 %v6774_v8, %v6773_v12  ;;  %v7802_v36 = vpack.c.bf16 %v6776_v33, %v6775_v30  ;;  %v7928_v57 = vpack.c.bf16 %v6902_v35, %v6901_v37  ;;  %v6778_v11 = vld [vmem:[%s12224_s6 + $0x108] sm:$0xff]  ;;  %v3362_v54 = vld [vmem:[%s12225_s5 + $0x10] sm:$0xff]  ;;  %v6781_v12 = vld [vmem:[%s12224_s6 + $0x120] sm:$0xff] }
 0x3fc   :  { %v10607_v38 = vsel %vm3214_vm10, %v10511_v17, %v6725_v59  ;;  %v6904_v59 = vld [vmem:[%s12224_s6 + $0x3a8] sm:$0xff]  ;;  %v6907_v8 = vld [vmem:[%s12224_s6 + $0x3c0] sm:$0xff]  ;;  %v6909_v30 = vld [vmem:[%s12224_s6 + $0x3d0] sm:$0xff]  ;;  %vm8660_vm4 = vmmov 0  }
 0x3fd   :  { %v10615_v41 = vsel %vm3215_vm12, %v10526_v49, %v6726_v42  ;;  %v8620_v17 = vpop.eup %8619  ;;  %v7764_v19 = vpack.c.bf16 %v10607_v38, %v10618_v50  ;;  %v6747_v42 = vld [vmem:[%s12225_s5 + $0x80] sm:$0xff]  ;;  %v6910_v33 = vld [vmem:[%s12224_s6 + $0x3d8] sm:$0xff]  ;;  %v3365_v37 = vld [vmem:[%s12225_s5 + $0x28] sm:$0xff]  ;;  %vm5250_vm12 = vcmask 457728  }
 0x3fe   :  { %v7762_v32 = vpack.c.bf16 %v10615_v41, %v10612_v28  ;;  %v6727_v49 = vadd.f32 -1.0, %v8620_v17  ;;  %v7931_v17 = vpack.c.bf16 %v6904_v59, %v6903_v25  ;;  %v6750_v35 = vld [vmem:[%s12225_s5 + $0x98] sm:$0xff]  ;;  %v3366_v25 = vld [vmem:[%s12225_s5 + $0x30] sm:$0xff]  ;;  %v6751_v59 = vld [vmem:[%s12225_s5 + $0xa0] sm:$0xff] }
 0x3ff   :  { %v8622_v27 = vpop.eup %8621 }
 0x400   :  { %7763 = vmatprep.subr.bf16.mxu0 %v7762_v32  ;;  %7791 = vmatprep.subr.bf16.mxu1 %v7762_v32  ;;  %v6728_v61 = vadd.f32 -1.0, %v8622_v27  ;;  %v10641_v6 = vsel %vm3216_vm2, %v10545_v40, %v6727_v49  ;;  %v3360_v40 = vld [vmem:[%s12225_s5] sm:$0xff]  ;;  %v7805_v32 = vpack.c.bf16 %v6778_v11, %v6777_v58  ;;  %v6780_v27 = vld [vmem:[%s12224_s6 + $0x118] sm:$0xff]  ;;  %v6748_v49 = vld [vmem:[%s12225_s5 + $0x88] sm:$0xff] }
 0x401   :  { %v8624_v56 = vpop.eup %8623  ;;  %7765 = vmatpush1.bf16.msra.mxu0 %v7764_v19  ;;  %7793 = vmatpush1.bf16.msra.mxu1 %v7764_v19  ;;  %v6779_v19 = vld [vmem:[%s12224_s6 + $0x110] sm:$0xff]  ;;  %v6911_v58 = vld [vmem:[%s12224_s6 + $0x3e0] sm:$0xff]  ;;  %v6912_v11 = vld [vmem:[%s12224_s6 + $0x3e8] sm:$0xff] }
 0x402   :  { %v8626_v62 = vpop.eup %8625  ;;  %v6729_v44 = vadd.f32 -1.0, %v8624_v56  ;;  %v10632_v46 = vsel %vm3217_vm15, %v10548_v23, %v6728_v61  ;;  %v6899_v23 = vld [vmem:[%s12224_s6 + $0x380] sm:$0xff]  ;;  %v6905_v56 = vld [vmem:[%s12224_s6 + $0x3b0] sm:$0xff]  ;;  %v6906_v61 = vld [vmem:[%s12224_s6 + $0x3b8] sm:$0xff] }
 0x403   :  { %v6730_v14 = vadd.f32 -1.0, %v8626_v62  ;;  %v3363_v62 = vld [vmem:[%s12225_s5 + $0x18] sm:$0xff] }
 0x404   :  { %v10627_v52 = vsel %vm3218_vm14, %v10551_v3, %v6729_v44  ;;  %v7808_v44 = vpack.c.bf16 %v6780_v27, %v6779_v19  ;;  %v6913_v19 = vld [vmem:[%s12224_s6 + $0x3f0] sm:$0xff]  ;;  %v6914_v27 = vld [vmem:[%s12224_s6 + $0x3f8] sm:$0xff] }
 0x405   :  { %v10635_v47 = vsel %vm3219_vm1, %v10565_v45, %v6730_v14  ;;  %v6900_v45 = vld [vmem:[%s12224_s6 + $0x388] sm:$0xff]  ;;  %v7768_v15 = vpack.c.bf16 %v10627_v52, %v10641_v6  ;;  %v7934_v14 = vpack.c.bf16 %v6906_v61, %v6905_v56  ;;  %v3367_v56 = vld [vmem:[%s12225_s5 + $0x38] sm:$0xff] }
 0x406   :  { %v7766_v3 = vpack.c.bf16 %v10635_v47, %v10632_v46  ;;  %v7925_v20 = vpack.c.bf16 %v6900_v45, %v6899_v23  ;;  %v6908_v23 = vld [vmem:[%s12224_s6 + $0x3c8] sm:$0xff]  ;;  %v3364_v45 = vld [vmem:[%s12225_s5 + $0x20] sm:$0xff] }
 0x407   :  { %v6752_v61 = vld [vmem:[%s12225_s5 + $0xa8] sm:$0xff] }
 0x408   :  { %7767 = vmatprep.subr.bf16.mxu0 %v7766_v3  ;;  %7795 = vmatprep.subr.bf16.mxu1 %v7766_v3  ;;  %v6782_v3 = vld [vmem:[%s12224_s6 + $0x128] sm:$0xff] }
 0x409   :  { %7769 = vmatpush1.bf16.msra.mxu0 %v7768_v15  ;;  %7797 = vmatpush1.bf16.msra.mxu1 %v7768_v15  ;;  %v6749_v15 = vld [vmem:[%s12225_s5 + $0x90] sm:$0xff] }
 0x40a   :  { %7798 = vmatprep.subr.bf16.mxu0 %v8657_v0  ;;  %7924 = vmatprep.subr.bf16.mxu1 %v8657_v0 }
 0x40c   :  { %6731 = vmatmul.mubr.msk.f32.vlgmr.msra.gmra.mrb[146].mxu0 %vm3374_vm3, %v3360_v40  ;;  %6759 = vmatmul.mubr.msk.f32.vlgmr.msra.gmra.mrb[134].mxu1 %vm3374_vm3, %v6745_v60  ;;  %v7811_v40 = vpack.c.bf16 %v6782_v3, %v6781_v12  ;;  %v7937_v60 = vpack.c.bf16 %v6908_v23, %v6907_v8  ;;  %v6915_v12 = vld [vmem:[%s12224_s6 + $0x400] sm:$0xff]  ;;  %v6916_v3 = vld [vmem:[%s12224_s6 + $0x408] sm:$0xff]  ;;  %v6753_v23 = vld [vmem:[%s12225_s5 + $0xb0] sm:$0xff] }
 0x40d   :  { %7800 = vmatpush1.bf16.msra.mxu0 %v7799_v10  ;;  %7926 = vmatpush1.bf16.msra.mxu1 %v7925_v20  ;;  %v6783_v10 = vld [vmem:[%s12224_s6 + $0x130] sm:$0xff]  ;;  %v6784_v20 = vld [vmem:[%s12224_s6 + $0x138] sm:$0xff]  ;;  %v3368_v8 = vld [vmem:[%s12225_s5 + $0x40] sm:$0xff] }
 0x40e   :  { %3487 = vmatprep.mubr.f32.mxu0 %v8659_v26  ;;  %3693 = vmatprep.mubr.f32.mxu1 %v8659_v26 }
 0x40f   :  { %7801 = vmatprep.subr.bf16.mxu0 %v8657_v0  ;;  %7927 = vmatprep.subr.bf16.mxu1 %v8657_v0 }
 0x410   :  { %6732 = vmatmul.mubr.msk.f32.gmra.mrb[148].mxu0 %vm3374_vm3, %v3361_v21  ;;  %6760 = vmatmul.mubr.msk.f32.gmra.mrb[136].mxu1 %vm3374_vm3, %v6746_v43  ;;  %v7814_v21 = vpack.c.bf16 %v6784_v20, %v6783_v10  ;;  %v7940_v43 = vpack.c.bf16 %v6910_v33, %v6909_v30  ;;  %v6917_v10 = vld [vmem:[%s12224_s6 + $0x410] sm:$0xff]  ;;  %v6918_v20 = vld [vmem:[%s12224_s6 + $0x418] sm:$0xff]  ;;  %v3369_v30 = vld [vmem:[%s12225_s5 + $0x48] sm:$0xff] }
 0x411   :  { %7803 = vmatpush1.bf16.msra.mxu0 %v7802_v36  ;;  %7929 = vmatpush1.bf16.msra.mxu1 %v7928_v57  ;;  %v6785_v36 = vld [vmem:[%s12224_s6 + $0x140] sm:$0xff]  ;;  %v6786_v57 = vld [vmem:[%s12224_s6 + $0x148] sm:$0xff]  ;;  %v6754_v33 = vld [vmem:[%s12225_s5 + $0xb8] sm:$0xff] }
 0x412   :  { %3493 = vmatprep.mubr.f32.mxu0 %v8659_v26  ;;  %3699 = vmatprep.mubr.f32.mxu1 %v8659_v26 }
 0x413   :  { %7804 = vmatprep.subr.bf16.mxu0 %v8657_v0  ;;  %7930 = vmatprep.subr.bf16.mxu1 %v8657_v0 }
 0x414   :  { %6733 = vmatmul.mubr.msk.f32.gmra.mrb[150].mxu0 %vm3374_vm3, %v3362_v54  ;;  %6761 = vmatmul.mubr.msk.f32.gmra.mrb[138].mxu1 %vm3374_vm3, %v6747_v42  ;;  %v7817_v54 = vpack.c.bf16 %v6786_v57, %v6785_v36  ;;  %v7943_v42 = vpack.c.bf16 %v6912_v11, %v6911_v58  ;;  %v6919_v36 = vld [vmem:[%s12224_s6 + $0x420] sm:$0xff]  ;;  %v6920_v57 = vld [vmem:[%s12224_s6 + $0x428] sm:$0xff]  ;;  %v3370_v58 = vld [vmem:[%s12225_s5 + $0x50] sm:$0xff] }
 0x415   :  { %7806 = vmatpush1.bf16.msra.mxu0 %v7805_v32  ;;  %7932 = vmatpush1.bf16.msra.mxu1 %v7931_v17  ;;  %v6787_v32 = vld [vmem:[%s12224_s6 + $0x150] sm:$0xff]  ;;  %v6788_v17 = vld [vmem:[%s12224_s6 + $0x158] sm:$0xff]  ;;  %v6755_v11 = vld [vmem:[%s12225_s5 + $0xc0] sm:$0xff] }
 0x416   :  { %3499 = vmatprep.mubr.f32.mxu0 %v8659_v26  ;;  %3705 = vmatprep.mubr.f32.mxu1 %v8659_v26 }
 0x417   :  { %7807 = vmatprep.subr.bf16.mxu0 %v8657_v0  ;;  %7933 = vmatprep.subr.bf16.mxu1 %v8657_v0 }
 0x418   :  { %6734 = vmatmul.mubr.msk.f32.gmra.mrb[152].mxu0 %vm3374_vm3, %v3363_v62  ;;  %6762 = vmatmul.mubr.msk.f32.gmra.mrb[140].mxu1 %vm3374_vm3, %v6748_v49  ;;  %v7820_v62 = vpack.c.bf16 %v6788_v17, %v6787_v32  ;;  %v7946_v49 = vpack.c.bf16 %v6914_v27, %v6913_v19  ;;  %v6921_v32 = vld [vmem:[%s12224_s6 + $0x430] sm:$0xff]  ;;  %v6922_v17 = vld [vmem:[%s12224_s6 + $0x438] sm:$0xff]  ;;  %v6756_v27 = vld [vmem:[%s12225_s5 + $0xc8] sm:$0xff] }
 0x419   :  { %7809 = vmatpush1.bf16.msra.mxu0 %v7808_v44  ;;  %7935 = vmatpush1.bf16.msra.mxu1 %v7934_v14  ;;  %v6789_v44 = vld [vmem:[%s12224_s6 + $0x160] sm:$0xff]  ;;  %v6790_v14 = vld [vmem:[%s12224_s6 + $0x168] sm:$0xff]  ;;  %v3371_v19 = vld [vmem:[%s12225_s5 + $0x58] sm:$0xff] }
 0x41a   :  { %3505 = vmatprep.mubr.f32.mxu0 %v8659_v26  ;;  %3711 = vmatprep.mubr.f32.mxu1 %v8659_v26 }
 0x41b   :  { %7810 = vmatprep.subr.bf16.mxu0 %v8657_v0  ;;  %7936 = vmatprep.subr.bf16.mxu1 %v8657_v0 }
 0x41c   :  { %6735 = vmatmul.mubr.msk.f32.gmra.mrb[154].mxu0 %vm3374_vm3, %v3364_v45  ;;  %6763 = vmatmul.mubr.msk.f32.gmra.mrb[142].mxu1 %vm3374_vm3, %v6749_v15  ;;  %v7823_v45 = vpack.c.bf16 %v6790_v14, %v6789_v44  ;;  %v7949_v15 = vpack.c.bf16 %v6916_v3, %v6915_v12  ;;  %v6923_v44 = vld [vmem:[%s12224_s6 + $0x440] sm:$0xff]  ;;  %v6924_v14 = vld [vmem:[%s12224_s6 + $0x448] sm:$0xff]  ;;  %v6757_v3 = vld [vmem:[%s12225_s5 + $0xd0] sm:$0xff] }
 0x41d   :  { %7812 = vmatpush1.bf16.msra.mxu0 %v7811_v40  ;;  %7938 = vmatpush1.bf16.msra.mxu1 %v7937_v60  ;;  %v6791_v40 = vld [vmem:[%s12224_s6 + $0x170] sm:$0xff]  ;;  %v6792_v60 = vld [vmem:[%s12224_s6 + $0x178] sm:$0xff]  ;;  %v3372_v12 = vld [vmem:[%s12225_s5 + $0x60] sm:$0xff] }
 0x41e   :  { %3511 = vmatprep.mubr.f32.mxu0 %v8659_v26  ;;  %3717 = vmatprep.mubr.f32.mxu1 %v8659_v26 }
 0x41f   :  { %7813 = vmatprep.subr.bf16.mxu0 %v8657_v0  ;;  %7939 = vmatprep.subr.bf16.mxu1 %v8657_v0 }
 0x420   :  { %6736 = vmatmul.mubr.msk.f32.gmra.mrb[156].mxu0 %vm3374_vm3, %v3365_v37  ;;  %6764 = vmatmul.mubr.msk.f32.gmra.mrb[144].mxu1 %vm3374_vm3, %v6750_v35  ;;  %v7826_v37 = vpack.c.bf16 %v6792_v60, %v6791_v40  ;;  %v7952_v35 = vpack.c.bf16 %v6918_v20, %v6917_v10  ;;  %v6925_v40 = vld [vmem:[%s12224_s6 + $0x450] sm:$0xff]  ;;  %v6926_v60 = vld [vmem:[%s12224_s6 + $0x458] sm:$0xff]  ;;  %v3373_v10 = vld [vmem:[%s12225_s5 + $0x68] sm:$0xff] }
 0x421   :  { %7815 = vmatpush1.bf16.msra.mxu0 %v7814_v21  ;;  %7941 = vmatpush1.bf16.msra.mxu1 %v7940_v43  ;;  %v6793_v21 = vld [vmem:[%s12224_s6 + $0x180] sm:$0xff]  ;;  %v6794_v43 = vld [vmem:[%s12224_s6 + $0x188] sm:$0xff]  ;;  %v6758_v20 = vld [vmem:[%s12225_s5 + $0xd8] sm:$0xff] }
 0x422   :  { %3517 = vmatprep.mubr.f32.mxu0 %v8659_v26  ;;  %3723 = vmatprep.mubr.f32.mxu1 %v8659_v26 }
 0x423   :  { %7816 = vmatprep.subr.bf16.mxu0 %v8657_v0  ;;  %7942 = vmatprep.subr.bf16.mxu1 %v8657_v0 }
 0x424   :  { %6737 = vmatmul.mubr.msk.f32.gmra.mrb[158].mxu0 %vm3374_vm3, %v3366_v25  ;;  %6765 = vmatmul.mubr.msk.f32.gmra.mrb[146].mxu1 %vm3374_vm3, %v6751_v59  ;;  %v7829_v25 = vpack.c.bf16 %v6794_v43, %v6793_v21  ;;  %v7955_v59 = vpack.c.bf16 %v6920_v57, %v6919_v36  ;;  %v6871_v21 = vld [vmem:[%s12224_s6 + $0x2a0] sm:$0xff]  ;;  %v6872_v43 = vld [vmem:[%s12224_s6 + $0x2a8] sm:$0xff] }
 0x425   :  { %7818 = vmatpush1.bf16.msra.mxu0 %v7817_v54  ;;  %7944 = vmatpush1.bf16.msra.mxu1 %v7943_v42  ;;  %v6795_v54 = vld [vmem:[%s12224_s6 + $0x190] sm:$0xff]  ;;  %v6796_v42 = vld [vmem:[%s12224_s6 + $0x198] sm:$0xff]  ;;  %v7967_v57 = vpack.c.bf16 %v6872_v43, %v6871_v21  ;;  %v6888_v21 = vld [vmem:[%s12224_s6 + $0x328] sm:$0xff] }
 0x426   :  { %3523 = vmatprep.mubr.f32.mxu0 %v8659_v26  ;;  %3729 = vmatprep.mubr.f32.mxu1 %v8659_v26 }
 0x427   :  { %7819 = vmatprep.subr.bf16.mxu0 %v8657_v0  ;;  %7945 = vmatprep.subr.bf16.mxu1 %v8657_v0 }
 0x428   :  { %6738 = vmatmul.mubr.msk.f32.gmra.mrb[160].mxu0 %vm3374_vm3, %v3367_v56  ;;  %6766 = vmatmul.mubr.msk.f32.gmra.mrb[148].mxu1 %vm3374_vm3, %v6752_v61  ;;  %v7832_v56 = vpack.c.bf16 %v6796_v42, %v6795_v54  ;;  %v7958_v61 = vpack.c.bf16 %v6922_v17, %v6921_v32  ;;  %v3776_v42 = vld [vmem:[%s12224_s6 + $0x20] sm:$0xff]  ;;  %v6876_v32 = vld [vmem:[%s12224_s6 + $0x2c8] sm:$0xff] }
 0x429   :  { %7821 = vmatpush1.bf16.msra.mxu0 %v7820_v62  ;;  %7947 = vmatpush1.bf16.msra.mxu1 %v7946_v49  ;;  %v6797_v62 = vld [vmem:[%s12224_s6 + $0x1a0] sm:$0xff]  ;;  %v6798_v49 = vld [vmem:[%s12224_s6 + $0x1a8] sm:$0xff] }
 0x42a   :  { %3529 = vmatprep.mubr.f32.mxu0 %v8659_v26  ;;  %3735 = vmatprep.mubr.f32.mxu1 %v8659_v26 }
 0x42b   :  { %7822 = vmatprep.subr.bf16.mxu0 %v8657_v0  ;;  %7948 = vmatprep.subr.bf16.mxu1 %v8657_v0 }
 0x42c   :  { %6739 = vmatmul.mubr.msk.f32.gmra.mrb[162].mxu0 %vm3374_vm3, %v3368_v8  ;;  %6767 = vmatmul.mubr.msk.f32.gmra.mrb[150].mxu1 %vm3374_vm3, %v6753_v23  ;;  %v7835_v8 = vpack.c.bf16 %v6798_v49, %v6797_v62  ;;  %v7961_v23 = vpack.c.bf16 %v6924_v14, %v6923_v44  ;;  %v3780_v49 = vld [vmem:[%s12224_s6 + $0x40] sm:$0xff]  ;;  %v6880_v44 = vld [vmem:[%s12224_s6 + $0x2e8] sm:$0xff] }
 0x42d   :  { %7824 = vmatpush1.bf16.msra.mxu0 %v7823_v45  ;;  %7950 = vmatpush1.bf16.msra.mxu1 %v7949_v15  ;;  %v6799_v45 = vld [vmem:[%s12224_s6 + $0x1b0] sm:$0xff]  ;;  %v6800_v15 = vld [vmem:[%s12224_s6 + $0x1b8] sm:$0xff] }
 0x42e   :  { %3535 = vmatprep.mubr.f32.mxu0 %v8659_v26  ;;  %3741 = vmatprep.mubr.f32.mxu1 %v8659_v26 }
 0x42f   :  { %7825 = vmatprep.subr.bf16.mxu0 %v8657_v0  ;;  %7951 = vmatprep.subr.bf16.mxu1 %v8657_v0 }
 0x430   :  { %6740 = vmatmul.mubr.msk.f32.gmra.mrb[164].mxu0 %vm3374_vm3, %v3369_v30  ;;  %6768 = vmatmul.mubr.msk.f32.gmra.mrb[152].mxu1 %vm3374_vm3, %v6754_v33  ;;  %v7838_v30 = vpack.c.bf16 %v6800_v15, %v6799_v45  ;;  %v7964_v33 = vpack.c.bf16 %v6926_v60, %v6925_v40  ;;  %v3784_v15 = vld [vmem:[%s12224_s6 + $0x60] sm:$0xff]  ;;  %v6884_v40 = vld [vmem:[%s12224_s6 + $0x308] sm:$0xff] }
 0x431   :  { %7827 = vmatpush1.bf16.msra.mxu0 %v7826_v37  ;;  %7953 = vmatpush1.bf16.msra.mxu1 %v7952_v35  ;;  %v3772_v37 = vld [vmem:[%s12224_s6] sm:$0xff]  ;;  %v3773_v35 = vld [vmem:[%s12224_s6 + $0x8] sm:$0xff] }
 0x432   :  { %3541 = vmatprep.mubr.f32.mxu0 %v8659_v26  ;;  %3747 = vmatprep.mubr.f32.mxu1 %v8659_v26  ;;  %v7841_v36 = vpack.c.bf16 %v3773_v35, %v3772_v37  ;;  %v3788_v35 = vld [vmem:[%s12224_s6 + $0x80] sm:$0xff] }
 0x433   :  { %7828 = vmatprep.subr.bf16.mxu0 %v8657_v0  ;;  %7954 = vmatprep.subr.bf16.mxu1 %v8657_v0 }
 0x434   :  { %6741 = vmatmul.mubr.msk.f32.gmra.mrb[166].mxu0 %vm3374_vm3, %v3370_v58  ;;  %6769 = vmatmul.mubr.msk.f32.gmra.mrb[154].mxu1 %vm3374_vm3, %v6755_v11  ;;  %v3774_v58 = vld [vmem:[%s12224_s6 + $0x10] sm:$0xff]  ;;  %v3775_v11 = vld [vmem:[%s12224_s6 + $0x18] sm:$0xff] }
 0x435   :  { %7830 = vmatpush1.bf16.msra.mxu0 %v7829_v25  ;;  %7956 = vmatpush1.bf16.msra.mxu1 %v7955_v59  ;;  %v6874_v25 = vld [vmem:[%s12224_s6 + $0x2b8] sm:$0xff]  ;;  %v7844_v59 = vpack.c.bf16 %v3775_v11, %v3774_v58 }
 0x436   :  { %3547 = vmatprep.mubr.f32.mxu0 %v8659_v26  ;;  %3753 = vmatprep.mubr.f32.mxu1 %v8659_v26  ;;  %v6890_v58 = vld [vmem:[%s12224_s6 + $0x338] sm:$0xff] }
 0x437   :  { %7831 = vmatprep.subr.bf16.mxu0 %v8657_v0  ;;  %7957 = vmatprep.subr.bf16.mxu1 %v8657_v0 }
 0x438   :  { %6742 = vmatmul.mubr.msk.f32.gmra.mrb[168].mxu0 %vm3374_vm3, %v3371_v19  ;;  %6770 = vmatmul.mubr.msk.f32.gmra.mrb[156].mxu1 %vm3374_vm3, %v6756_v27  ;;  %v3778_v27 = vld [vmem:[%s12224_s6 + $0x30] sm:$0xff] }
 0x439   :  { %7833 = vmatpush1.bf16.msra.mxu0 %v7832_v56  ;;  %7959 = vmatpush1.bf16.msra.mxu1 %v7958_v61  ;;  %v6878_v56 = vld [vmem:[%s12224_s6 + $0x2d8] sm:$0xff] }
 0x43a   :  { %3553 = vmatprep.mubr.f32.mxu0 %v8659_v26  ;;  %3759 = vmatprep.mubr.f32.mxu1 %v8659_v26 }
 0x43b   :  { %7834 = vmatprep.subr.bf16.mxu0 %v8657_v0  ;;  %7960 = vmatprep.subr.bf16.mxu1 %v8657_v0 }
 0x43c   :  { %6743 = vmatmul.mubr.msk.f32.gmra.mrb[170].mxu0 %vm3374_vm3, %v3372_v12  ;;  %6771 = vmatmul.mubr.msk.f32.gmra.mrb[158].mxu1 %vm3374_vm3, %v6757_v3  ;;  %v3782_v3 = vld [vmem:[%s12224_s6 + $0x50] sm:$0xff] }
 0x43d   :  { %7836 = vmatpush1.bf16.msra.mxu0 %v7835_v8  ;;  %7962 = vmatpush1.bf16.msra.mxu1 %v7961_v23  ;;  %v6882_v8 = vld [vmem:[%s12224_s6 + $0x2f8] sm:$0xff] }
 0x43e   :  { %3559 = vmatprep.mubr.f32.mxu0 %v8659_v26  ;;  %3765 = vmatprep.mubr.f32.mxu1 %v8659_v26 }
 0x43f   :  { %7837 = vmatprep.subr.bf16.mxu0 %v8657_v0  ;;  %7963 = vmatprep.subr.bf16.mxu1 %v8657_v0 }
 0x440   :  { %6744 = vmatmul.mubr.msk.f32.gmra.mrb[172].mxu0 %vm3374_vm3, %v3373_v10  ;;  %6772 = vmatmul.mubr.msk.f32.gmra.mrb[160].mxu1 %vm3374_vm3, %v6758_v20  ;;  %v3786_v20 = vld [vmem:[%s12224_s6 + $0x70] sm:$0xff] }
 0x441   :  { %7839 = vmatpush1.bf16.msra.mxu0 %v7838_v30  ;;  %6801 = vmatprep.mubr.msk.f32.mxu0 %vm140_vm0, %v10439_v24  ;;  %v6886_v30 = vld [vmem:[%s12224_s6 + $0x318] sm:$0xff] }
 0x442   :  { %7965 = vmatpush1.bf16.msra.mxu1 %v7964_v33  ;;  %6927 = vmatprep.mubr.msk.f32.mxu1 %vm140_vm0, %v10439_v24  ;;  %v6873_v24 = vld [vmem:[%s12224_s6 + $0x2b0] sm:$0xff] }
 0x443   :  { %7840 = vmatprep.subr.bf16.mxu0 %v8657_v0  ;;  %7966 = vmatprep.subr.bf16.mxu1 %v8657_v0  ;;  %v7970_v54 = vpack.c.bf16 %v6874_v25, %v6873_v24  ;;  %v3792_v25 = vld [vmem:[%s12224_s6 + $0xa0] sm:$0xff] }
 0x444   :  { %3936 = vmatmul.mubr.f32.vlgmr.msra.gmra.mrb[174].mxu0 %v10446_v9 }
 0x445   :  { %4526 = vmatmul.mubr.f32.vlgmr.msra.gmra.mrb[162].mxu1 %v10446_v9  ;;  %6802 = vmatprep.mubr.msk.f32.mxu0 %vm140_vm0, %v10428_v16  ;;  %v3777_v9 = vld [vmem:[%s12224_s6 + $0x28] sm:$0xff] }
 0x446   :  { %6928 = vmatprep.mubr.msk.f32.mxu1 %vm140_vm0, %v10428_v16  ;;  %7842 = vmatpush1.bf16.msra.mxu0 %v7841_v36  ;;  %v6875_v16 = vld [vmem:[%s12224_s6 + $0x2c0] sm:$0xff]  ;;  %v7847_v17 = vpack.c.bf16 %v3777_v9, %v3776_v42  ;;  %v3794_v9 = vld [vmem:[%s12224_s6 + $0xb0] sm:$0xff] }
 0x447   :  { %7968 = vmatpush1.bf16.msra.mxu1 %v7967_v57  ;;  %7843 = vmatprep.subr.bf16.mxu0 %v8657_v0  ;;  %v7973_v19 = vpack.c.bf16 %v6876_v32, %v6875_v16  ;;  %v3790_v57 = vld [vmem:[%s12224_s6 + $0x90] sm:$0xff]  ;;  %v6894_v16 = vld [vmem:[%s12224_s6 + $0x358] sm:$0xff] }
 0x448   :  { %3941 = vmatmul.mubr.f32.gmra.mrb[176].mxu0 %v10434_v22  ;;  %7969 = vmatprep.subr.bf16.mxu1 %v8657_v0 }
 0x449   :  { %4531 = vmatmul.mubr.f32.gmra.mrb[164].mxu1 %v10434_v22  ;;  %6803 = vmatprep.mubr.msk.f32.mxu0 %vm140_vm0, %v10496_v18  ;;  %v3779_v22 = vld [vmem:[%s12224_s6 + $0x38] sm:$0xff] }
 0x44a   :  { %6929 = vmatprep.mubr.msk.f32.mxu1 %vm140_vm0, %v10496_v18  ;;  %7845 = vmatpush1.bf16.msra.mxu0 %v7844_v59  ;;  %v6877_v18 = vld [vmem:[%s12224_s6 + $0x2d0] sm:$0xff]  ;;  %v7850_v61 = vpack.c.bf16 %v3779_v22, %v3778_v27  ;;  %v6892_v59 = vld [vmem:[%s12224_s6 + $0x348] sm:$0xff] }
 0x44b   :  { %7971 = vmatpush1.bf16.msra.mxu1 %v7970_v54  ;;  %7846 = vmatprep.subr.bf16.mxu0 %v8657_v0  ;;  %v7976_v62 = vpack.c.bf16 %v6878_v56, %v6877_v18  ;;  %v6896_v27 = vld [vmem:[%s12224_s6 + $0x368] sm:$0xff]  ;;  %v3798_v56 = vld [vmem:[%s12224_s6 + $0xd0] sm:$0xff] }
 0x44c   :  { %3946 = vmatmul.mubr.f32.gmra.mrb[178].mxu0 %v10477_v55  ;;  %7972 = vmatprep.subr.bf16.mxu1 %v8657_v0 }
 0x44d   :  { %4536 = vmatmul.mubr.f32.gmra.mrb[166].mxu1 %v10477_v55  ;;  %6804 = vmatprep.mubr.msk.f32.mxu0 %vm140_vm0, %v10486_v2  ;;  %v3781_v55 = vld [vmem:[%s12224_s6 + $0x48] sm:$0xff] }
 0x44e   :  { %6930 = vmatprep.mubr.msk.f32.mxu1 %vm140_vm0, %v10486_v2  ;;  %7848 = vmatpush1.bf16.msra.mxu0 %v7847_v17  ;;  %v6879_v2 = vld [vmem:[%s12224_s6 + $0x2e0] sm:$0xff]  ;;  %v7853_v14 = vpack.c.bf16 %v3781_v55, %v3780_v49 }
 0x44f   :  { %7974 = vmatpush1.bf16.msra.mxu1 %v7973_v19  ;;  %7849 = vmatprep.subr.bf16.mxu0 %v8657_v0  ;;  %v7979_v12 = vpack.c.bf16 %v6880_v44, %v6879_v2  ;;  %v3796_v19 = vld [vmem:[%s12224_s6 + $0xc0] sm:$0xff] }
 0x450   :  { %3951 = vmatmul.mubr.f32.gmra.mrb[180].mxu0 %v10482_v1  ;;  %7975 = vmatprep.subr.bf16.mxu1 %v8657_v0  ;;  %v6955_v55 = vld [vmem:[%s12224_s6 + $0x460] sm:$0xff] }
 0x451   :  { %4541 = vmatmul.mubr.f32.gmra.mrb[168].mxu1 %v10482_v1  ;;  %6805 = vmatprep.mubr.msk.f32.mxu0 %vm140_vm0, %v10531_v34  ;;  %v3783_v1 = vld [vmem:[%s12224_s6 + $0x58] sm:$0xff] }
 0x452   :  { %6931 = vmatprep.mubr.msk.f32.mxu1 %vm140_vm0, %v10531_v34  ;;  %7851 = vmatpush1.bf16.msra.mxu0 %v7850_v61  ;;  %v6881_v34 = vld [vmem:[%s12224_s6 + $0x2f0] sm:$0xff]  ;;  %v7856_v23 = vpack.c.bf16 %v3783_v1, %v3782_v3  ;;  %v6898_v61 = vld [vmem:[%s12224_s6 + $0x378] sm:$0xff] }
 0x453   :  { %7977 = vmatpush1.bf16.msra.mxu1 %v7976_v62  ;;  %7852 = vmatprep.subr.bf16.mxu0 %v8657_v0  ;;  %v7982_v45 = vpack.c.bf16 %v6882_v8, %v6881_v34  ;;  %v6832_v34 = vld [vmem:[%s12224_s6 + $0x1d8] sm:$0xff]  ;;  %v6957_v8 = vld [vmem:[%s12224_s6 + $0x470] sm:$0xff] }
 0x454   :  { %3956 = vmatmul.mubr.f32.gmra.mrb[182].mxu0 %v10536_v7  ;;  %7978 = vmatprep.subr.bf16.mxu1 %v8657_v0 }
 0x455   :  { %4546 = vmatmul.mubr.f32.gmra.mrb[170].mxu1 %v10536_v7  ;;  %6806 = vmatprep.mubr.msk.f32.mxu0 %vm140_vm0, %v10516_v63  ;;  %v3785_v7 = vld [vmem:[%s12224_s6 + $0x68] sm:$0xff] }
 0x456   :  { %6932 = vmatprep.mubr.msk.f32.mxu1 %vm140_vm0, %v10516_v63  ;;  %7854 = vmatpush1.bf16.msra.mxu0 %v7853_v14  ;;  %v6883_v63 = vld [vmem:[%s12224_s6 + $0x300] sm:$0xff]  ;;  %v7859_v60 = vpack.c.bf16 %v3785_v7, %v3784_v15 }
 0x457   :  { %7980 = vmatpush1.bf16.msra.mxu1 %v7979_v12  ;;  %7855 = vmatprep.subr.bf16.mxu0 %v8657_v0  ;;  %v7985_v10 = vpack.c.bf16 %v6884_v40, %v6883_v63  ;;  %v6831_v12 = vld [vmem:[%s12224_s6 + $0x1d0] sm:$0xff]  ;;  %v6833_v40 = vld [vmem:[%s12224_s6 + $0x1e0] sm:$0xff] }
 0x458   :  { %3961 = vmatmul.mubr.f32.gmra.mrb[184].mxu0 %v10519_v13  ;;  %7981 = vmatprep.subr.bf16.mxu1 %v8657_v0  ;;  %v7886_v7 = vpack.c.bf16 %v6832_v34, %v6831_v12  ;;  %v6969_v34 = vld [vmem:[%s12224_s6 + $0x4d0] sm:$0xff] }
 0x459   :  { %4551 = vmatmul.mubr.f32.gmra.mrb[172].mxu1 %v10519_v13  ;;  %6807 = vmatprep.mubr.msk.f32.mxu0 %vm140_vm0, %v10577_v53  ;;  %v3787_v13 = vld [vmem:[%s12224_s6 + $0x78] sm:$0xff] }
 0x45a   :  { %6933 = vmatprep.mubr.msk.f32.mxu1 %vm140_vm0, %v10577_v53  ;;  %7857 = vmatpush1.bf16.msra.mxu0 %v7856_v23  ;;  %v6885_v53 = vld [vmem:[%s12224_s6 + $0x310] sm:$0xff]  ;;  %v7862_v33 = vpack.c.bf16 %v3787_v13, %v3786_v20  ;;  %v6958_v23 = vld [vmem:[%s12224_s6 + $0x478] sm:$0xff]  ;;  %v6834_v20 = vld [vmem:[%s12224_s6 + $0x1e8] sm:$0xff] }
 0x45b   :  { %7983 = vmatpush1.bf16.msra.mxu1 %v7982_v45  ;;  %7858 = vmatprep.subr.bf16.mxu0 %v8657_v0  ;;  %v7988_v37 = vpack.c.bf16 %v6886_v30, %v6885_v53  ;;  %v8012_v63 = vpack.c.bf16 %v6958_v23, %v6957_v8  ;;  %v6959_v13 = vld [vmem:[%s12224_s6 + $0x480] sm:$0xff]  ;;  %v6960_v53 = vld [vmem:[%s12224_s6 + $0x488] sm:$0xff]  ;;  %v6970_v8 = vld [vmem:[%s12224_s6 + $0x4d8] sm:$0xff] }
 0x45c   :  { %3966 = vmatmul.mubr.f32.gmra.mrb[186].mxu0 %v10560_v4  ;;  %7984 = vmatprep.subr.bf16.mxu1 %v8657_v0 }
 0x45d   :  { %4556 = vmatmul.mubr.f32.gmra.mrb[174].mxu1 %v10560_v4  ;;  %6808 = vmatprep.mubr.msk.f32.mxu0 %vm140_vm0, %v10571_v29  ;;  %v3789_v4 = vld [vmem:[%s12224_s6 + $0x88] sm:$0xff] }
 0x45e   :  { %6934 = vmatprep.mubr.msk.f32.mxu1 %vm140_vm0, %v10571_v29  ;;  %7860 = vmatpush1.bf16.msra.mxu0 %v7859_v60  ;;  %v6887_v29 = vld [vmem:[%s12224_s6 + $0x320] sm:$0xff]  ;;  %v7865_v43 = vpack.c.bf16 %v3789_v4, %v3788_v35  ;;  %v8015_v35 = vpack.c.bf16 %v6960_v53, %v6959_v13  ;;  %v6835_v4 = vld [vmem:[%s12224_s6 + $0x1f0] sm:$0xff]  ;;  %v6846_v13 = vld [vmem:[%s12224_s6 + $0x248] sm:$0xff] }
 0x45f   :  { %7986 = vmatpush1.bf16.msra.mxu1 %v7985_v10  ;;  %7861 = vmatprep.subr.bf16.mxu0 %v8657_v0  ;;  %v7991_v36 = vpack.c.bf16 %v6888_v21, %v6887_v29  ;;  %v6971_v53 = vld [vmem:[%s12224_s6 + $0x4e0] sm:$0xff] }
 0x460   :  { %3971 = vmatmul.mubr.f32.gmra.mrb[188].mxu0 %v10568_v48  ;;  %7987 = vmatprep.subr.bf16.mxu1 %v8657_v0 }
 0x461   :  { %4561 = vmatmul.mubr.f32.gmra.mrb[176].mxu1 %v10568_v48  ;;  %6809 = vmatprep.mubr.msk.f32.mxu0 %vm140_vm0, %v10592_v39  ;;  %v3791_v48 = vld [vmem:[%s12224_s6 + $0x98] sm:$0xff] }
 0x462   :  { %6935 = vmatprep.mubr.msk.f32.mxu1 %vm140_vm0, %v10592_v39  ;;  %7863 = vmatpush1.bf16.msra.mxu0 %v7862_v33  ;;  %v6889_v39 = vld [vmem:[%s12224_s6 + $0x330] sm:$0xff]  ;;  %v7868_v11 = vpack.c.bf16 %v3791_v48, %v3790_v57  ;;  %v6962_v57 = vld [vmem:[%s12224_s6 + $0x498] sm:$0xff] }
 0x463   :  { %7989 = vmatpush1.bf16.msra.mxu1 %v7988_v37  ;;  %7864 = vmatprep.subr.bf16.mxu0 %v8657_v0  ;;  %v7994_v24 = vpack.c.bf16 %v6890_v58, %v6889_v39  ;;  %v7889_v37 = vpack.c.bf16 %v6834_v20, %v6833_v40  ;;  %v6845_v40 = vld [vmem:[%s12224_s6 + $0x240] sm:$0xff] }
 0x464   :  { %3976 = vmatmul.mubr.f32.gmra.mrb[190].mxu0 %v10598_v51  ;;  %7990 = vmatprep.subr.bf16.mxu1 %v8657_v0 }
 0x465   :  { %4566 = vmatmul.mubr.f32.gmra.mrb[178].mxu1 %v10598_v51  ;;  %6810 = vmatprep.mubr.msk.f32.mxu0 %vm140_vm0, %v10595_v31  ;;  %v3793_v51 = vld [vmem:[%s12224_s6 + $0xa8] sm:$0xff] }
 0x466   :  { %6936 = vmatprep.mubr.msk.f32.mxu1 %vm140_vm0, %v10595_v31  ;;  %7866 = vmatpush1.bf16.msra.mxu0 %v7865_v43  ;;  %v6891_v31 = vld [vmem:[%s12224_s6 + $0x340] sm:$0xff]  ;;  %v7871_v54 = vpack.c.bf16 %v3793_v51, %v3792_v25  ;;  %v6836_v43 = vld [vmem:[%s12224_s6 + $0x1f8] sm:$0xff] }
 0x467   :  { %7992 = vmatpush1.bf16.msra.mxu1 %v7991_v36  ;;  %7867 = vmatprep.subr.bf16.mxu0 %v8657_v0  ;;  %v7997_v42 = vpack.c.bf16 %v6892_v59, %v6891_v31  ;;  %v6961_v36 = vld [vmem:[%s12224_s6 + $0x490] sm:$0xff]  ;;  %v7892_v58 = vpack.c.bf16 %v6836_v43, %v6835_v4  ;;  %v6838_v31 = vld [vmem:[%s12224_s6 + $0x208] sm:$0xff]  ;;  %v6963_v59 = vld [vmem:[%s12224_s6 + $0x4a0] sm:$0xff]  ;;  %v7907_v4 = vpack.c.bf16 %v6846_v13, %v6845_v40 }
 0x468   :  { %3981 = vmatmul.mubr.f32.gmra.mrb[192].mxu0 %v10587_v5  ;;  %7993 = vmatprep.subr.bf16.mxu1 %v8657_v0  ;;  %v6847_v43 = vld [vmem:[%s12224_s6 + $0x250] sm:$0xff] }
 0x469   :  { %4571 = vmatmul.mubr.f32.gmra.mrb[180].mxu1 %v10587_v5  ;;  %6811 = vmatprep.mubr.msk.f32.mxu0 %vm140_vm0, %v10612_v28  ;;  %v3795_v5 = vld [vmem:[%s12224_s6 + $0xb8] sm:$0xff]  ;;  %v6855_v13 = vld [vmem:[%s12224_s6 + $0x290] sm:$0xff] }
 0x46a   :  { %6937 = vmatprep.mubr.msk.f32.mxu1 %vm140_vm0, %v10612_v28  ;;  %7869 = vmatpush1.bf16.msra.mxu0 %v7868_v11  ;;  %v6893_v28 = vld [vmem:[%s12224_s6 + $0x350] sm:$0xff]  ;;  %v7874_v32 = vpack.c.bf16 %v3795_v5, %v3794_v9  ;;  %v8018_v11 = vpack.c.bf16 %v6962_v57, %v6961_v36 }
 0x46b   :  { %7995 = vmatpush1.bf16.msra.mxu1 %v7994_v24  ;;  %7870 = vmatprep.subr.bf16.mxu0 %v8657_v0  ;;  %v8000_v17 = vpack.c.bf16 %v6894_v16, %v6893_v28  ;;  %v6837_v24 = vld [vmem:[%s12224_s6 + $0x200] sm:$0xff]  ;;  %v6839_v16 = vld [vmem:[%s12224_s6 + $0x210] sm:$0xff] }
 0x46c   :  { %3986 = vmatmul.mubr.f32.gmra.mrb[194].mxu0 %v10618_v50  ;;  %7996 = vmatprep.subr.bf16.mxu1 %v8657_v0  ;;  %v7895_v5 = vpack.c.bf16 %v6838_v31, %v6837_v24 }
 0x46d   :  { %4576 = vmatmul.mubr.f32.gmra.mrb[182].mxu1 %v10618_v50  ;;  %6812 = vmatprep.mubr.msk.f32.mxu0 %vm140_vm0, %v10615_v41  ;;  %v3797_v50 = vld [vmem:[%s12224_s6 + $0xc8] sm:$0xff] }
 0x46e   :  { %6938 = vmatprep.mubr.msk.f32.mxu1 %vm140_vm0, %v10615_v41  ;;  %7872 = vmatpush1.bf16.msra.mxu0 %v7871_v54  ;;  %v6895_v41 = vld [vmem:[%s12224_s6 + $0x360] sm:$0xff]  ;;  %v7877_v22 = vpack.c.bf16 %v3797_v50, %v3796_v19  ;;  %v6964_v54 = vld [vmem:[%s12224_s6 + $0x4a8] sm:$0xff]  ;;  %v6840_v19 = vld [vmem:[%s12224_s6 + $0x218] sm:$0xff] }
 0x46f   :  { %7998 = vmatpush1.bf16.msra.mxu1 %v7997_v42  ;;  %7873 = vmatprep.subr.bf16.mxu0 %v8657_v0  ;;  %v8003_v18 = vpack.c.bf16 %v6896_v27, %v6895_v41  ;;  %v8021_v28 = vpack.c.bf16 %v6964_v54, %v6963_v59  ;;  %v6965_v50 = vld [vmem:[%s12224_s6 + $0x4b0] sm:$0xff]  ;;  %v6966_v41 = vld [vmem:[%s12224_s6 + $0x4b8] sm:$0xff]  ;;  %v6849_v54 = vld [vmem:[%s12224_s6 + $0x260] sm:$0xff] }
 0x470   :  { %3991 = vmatmul.mubr.f32.gmra.mrb[196].mxu0 %v10607_v38  ;;  %7999 = vmatprep.subr.bf16.mxu1 %v8657_v0 }
 0x471   :  { %4581 = vmatmul.mubr.f32.gmra.mrb[184].mxu1 %v10607_v38  ;;  %6813 = vmatprep.mubr.msk.f32.mxu0 %vm140_vm0, %v10632_v46  ;;  %v3799_v38 = vld [vmem:[%s12224_s6 + $0xd8] sm:$0xff] }
 0x472   :  { %6939 = vmatprep.mubr.msk.f32.mxu1 %vm140_vm0, %v10632_v46  ;;  %7875 = vmatpush1.bf16.msra.mxu0 %v7874_v32  ;;  %v6897_v46 = vld [vmem:[%s12224_s6 + $0x370] sm:$0xff]  ;;  %v7880_v62 = vpack.c.bf16 %v3799_v38, %v3798_v56  ;;  %v8024_v56 = vpack.c.bf16 %v6966_v41, %v6965_v50  ;;  %v6841_v38 = vld [vmem:[%s12224_s6 + $0x220] sm:$0xff] }
 0x473   :  { %8001 = vmatpush1.bf16.msra.mxu1 %v8000_v17  ;;  %7876 = vmatprep.subr.bf16.mxu0 %v8657_v0  ;;  %v8006_v49 = vpack.c.bf16 %v6898_v61, %v6897_v46 }
 0x474   :  { %3996 = vmatmul.mubr.f32.gmra.mrb[198].mxu0 %v10641_v6  ;;  %8002 = vmatprep.subr.bf16.mxu1 %v8657_v0 }
 0x475   :  { %4586 = vmatmul.mubr.f32.gmra.mrb[186].mxu1 %v10641_v6  ;;  %6814 = vmatprep.mubr.msk.f32.mxu0 %vm140_vm0, %v10635_v47  ;;  %v6830_v6 = vld [vmem:[%s12224_s6 + $0x1c8] sm:$0xff] }
 0x476   :  { %6940 = vmatprep.mubr.msk.f32.mxu1 %vm140_vm0, %v10635_v47  ;;  %7878 = vmatpush1.bf16.msra.mxu0 %v7877_v22  ;;  %v6829_v47 = vld [vmem:[%s12224_s6 + $0x1c0] sm:$0xff] }
 0x477   :  { %8004 = vmatpush1.bf16.msra.mxu1 %v8003_v18  ;;  %7879 = vmatprep.subr.bf16.mxu0 %v8657_v0  ;;  %v7883_v44 = vpack.c.bf16 %v6830_v6, %v6829_v47  ;;  %v7898_v18 = vpack.c.bf16 %v6840_v19, %v6839_v16  ;;  %v6968_v47 = vld [vmem:[%s12224_s6 + $0x4c8] sm:$0xff]  ;;  %v6975_v16 = vld [vmem:[%s12224_s6 + $0x500] sm:$0xff] }
 0x478   :  { %4001 = vmatmul.mubr.f32.gmra.mrb[200].mxu0 %v10627_v52  ;;  %8005 = vmatprep.subr.bf16.mxu1 %v8657_v0 }
 0x479   :  { %4591 = vmatmul.mubr.f32.gmra.mrb[188].mxu1 %v10627_v52  ;;  %v6956_v52 = vld [vmem:[%s12224_s6 + $0x468] sm:$0xff] }
 0x47a   :  { %7881 = vmatpush1.bf16.msra.mxu0 %v7880_v62  ;;  %v8009_v14 = vpack.c.bf16 %v6956_v52, %v6955_v55  ;;  %v6842_v62 = vld [vmem:[%s12224_s6 + $0x228] sm:$0xff] }
 0x47b   :  { %8007 = vmatpush1.bf16.msra.mxu1 %v8006_v49  ;;  %7882 = vmatprep.subr.bf16.mxu0 %v8657_v0  ;;  %v6967_v49 = vld [vmem:[%s12224_s6 + $0x4c0] sm:$0xff]  ;;  %v7901_v52 = vpack.c.bf16 %v6842_v62, %v6841_v38  ;;  %v6977_v62 = vld [vmem:[%s12224_s6 + $0x510] sm:$0xff] }
 0x47c   :  { %8008 = vmatprep.subr.bf16.mxu1 %v8657_v0 }
 0x4df   :  { %v3483_v2 = vpop.f32.mrb[146].mxu0  ;;  %v11275_v3 = vpop.f32.mrb[134].mxu1 }
 0x4e0   :  { %v3485_v1 = vpop.f32.mrb[147].mxu0  ;;  %v11286_v45 = vpop.f32.mrb[135].mxu1 }
 0x4e1   :  { %6815 = vmatprep.mubr.msk.f32.mxu0 %vm140_vm0, %v3485_v1  ;;  %6941 = vmatprep.mubr.msk.f32.mxu1 %vm140_vm0, %v3485_v1  ;;  %v6844_v1 = vld [vmem:[%s12224_s6 + $0x238] sm:$0xff] }
 0x4e2   :  { %4113 = vmatmul.mubr.f32.vlgmr.msra.gmra.mrb[174].mxu0 %v3483_v2  ;;  %4661 = vmatmul.mubr.f32.vlgmr.msra.gmra.mrb[162].mxu1 %v3483_v2  ;;  %v8027_v2 = vpack.c.bf16 %v6968_v47, %v6967_v49  ;;  %v6978_v49 = vld [vmem:[%s12224_s6 + $0x518] sm:$0xff] }
 0x4e3   :  { %v3489_v15 = vpop.f32.mrb[148].mxu0  ;;  %7884 = vmatpush1.bf16.msra.mxu0 %v7883_v44  ;;  %8010 = vmatpush1.bf16.msra.mxu1 %v8009_v14  ;;  %v11293_v60 = vpop.f32.mrb[136].mxu1  ;;  %v6843_v44 = vld [vmem:[%s12224_s6 + $0x230] sm:$0xff] }
 0x4e4   :  { %v3491_v10 = vpop.f32.mrb[149].mxu0  ;;  %7885 = vmatprep.subr.bf16.mxu0 %v8657_v0  ;;  %8011 = vmatprep.subr.bf16.mxu1 %v8657_v0  ;;  %v11306_v30 = vpop.f32.mrb[137].mxu1 }
 0x4e5   :  { %6816 = vmatprep.mubr.msk.f32.mxu0 %vm140_vm0, %v3491_v10  ;;  %6942 = vmatprep.mubr.msk.f32.mxu1 %vm140_vm0, %v3491_v10 }
 0x4e6   :  { %4118 = vmatmul.mubr.f32.gmra.mrb[176].mxu0 %v3489_v15  ;;  %4666 = vmatmul.mubr.f32.gmra.mrb[164].mxu1 %v3489_v15 }
 0x4e7   :  { %v3495_v33 = vpop.f32.mrb[150].mxu0  ;;  %7887 = vmatpush1.bf16.msra.mxu0 %v7886_v7  ;;  %8013 = vmatpush1.bf16.msra.mxu1 %v8012_v63  ;;  %v11313_v29 = vpop.f32.mrb[138].mxu1  ;;  %v7904_v7 = vpack.c.bf16 %v6844_v1, %v6843_v44  ;;  %v8030_v63 = vpack.c.bf16 %v6970_v8, %v6969_v34  ;;  %v6853_v44 = vld [vmem:[%s12224_s6 + $0x280] sm:$0xff]  ;;  %v6854_v34 = vld [vmem:[%s12224_s6 + $0x288] sm:$0xff] }
 0x4e8   :  { %v3497_v21 = vpop.f32.mrb[151].mxu0  ;;  %7888 = vmatprep.subr.bf16.mxu0 %v8657_v0  ;;  %8014 = vmatprep.subr.bf16.mxu1 %v8657_v0  ;;  %v11326_v48 = vpop.f32.mrb[139].mxu1  ;;  %v6979_v8 = vld [vmem:[%s12224_s6 + $0x520] sm:$0xff]  ;;  %v7919_v40 = vpack.c.bf16 %v6854_v34, %v6853_v44 }
 0x4e9   :  { %6817 = vmatprep.mubr.msk.f32.mxu0 %vm140_vm0, %v3497_v21  ;;  %6943 = vmatprep.mubr.msk.f32.mxu1 %vm140_vm0, %v3497_v21 }
 0x4ea   :  { %4123 = vmatmul.mubr.f32.gmra.mrb[178].mxu0 %v3495_v33  ;;  %4671 = vmatmul.mubr.f32.gmra.mrb[166].mxu1 %v3495_v33  ;;  %v6972_v33 = vld [vmem:[%s12224_s6 + $0x4e8] sm:$0xff] }
 0x4eb   :  { %v3501_v39 = vpop.f32.mrb[152].mxu0  ;;  %7890 = vmatpush1.bf16.msra.mxu0 %v7889_v37  ;;  %8016 = vmatpush1.bf16.msra.mxu1 %v8015_v35  ;;  %v11333_v25 = vpop.f32.mrb[140].mxu1  ;;  %v8033_v21 = vpack.c.bf16 %v6972_v33, %v6971_v53 }
 0x4ec   :  { %v3503_v51 = vpop.f32.mrb[153].mxu0  ;;  %7891 = vmatprep.subr.bf16.mxu0 %v8657_v0  ;;  %8017 = vmatprep.subr.bf16.mxu1 %v8657_v0  ;;  %v11346_v42 = vpop.f32.mrb[141].mxu1 }
 0x4ed   :  { %6818 = vmatprep.mubr.msk.f32.mxu0 %vm140_vm0, %v3503_v51  ;;  %6944 = vmatprep.mubr.msk.f32.mxu1 %vm140_vm0, %v3503_v51 }
 0x4ee   :  { %4128 = vmatmul.mubr.f32.gmra.mrb[180].mxu0 %v3501_v39  ;;  %4676 = vmatmul.mubr.f32.gmra.mrb[168].mxu1 %v3501_v39  ;;  %v6848_v39 = vld [vmem:[%s12224_s6 + $0x258] sm:$0xff] }
 0x4ef   :  { %v3507_v9 = vpop.f32.mrb[154].mxu0  ;;  %7893 = vmatpush1.bf16.msra.mxu0 %v7892_v58  ;;  %8019 = vmatpush1.bf16.msra.mxu1 %v8018_v11  ;;  %v11353_v32 = vpop.f32.mrb[142].mxu1  ;;  %v6973_v58 = vld [vmem:[%s12224_s6 + $0x4f0] sm:$0xff]  ;;  %v6974_v11 = vld [vmem:[%s12224_s6 + $0x4f8] sm:$0xff]  ;;  %v7910_v31 = vpack.c.bf16 %v6848_v39, %v6847_v43 }
 0x4f0   :  { %v3509_v17 = vpop.f32.mrb[155].mxu0  ;;  %7894 = vmatprep.subr.bf16.mxu0 %v8657_v0  ;;  %8020 = vmatprep.subr.bf16.mxu1 %v8657_v0  ;;  %v11366_v27 = vpop.f32.mrb[143].mxu1  ;;  %v8036_v59 = vpack.c.bf16 %v6974_v11, %v6973_v58 }
 0x4f1   :  { %6819 = vmatprep.mubr.msk.f32.mxu0 %vm140_vm0, %v3509_v17  ;;  %6945 = vmatprep.mubr.msk.f32.mxu1 %vm140_vm0, %v3509_v17  ;;  %v6976_v17 = vld [vmem:[%s12224_s6 + $0x508] sm:$0xff] }
 0x4f2   :  { %4133 = vmatmul.mubr.f32.gmra.mrb[182].mxu0 %v3507_v9  ;;  %4681 = vmatmul.mubr.f32.gmra.mrb[170].mxu1 %v3507_v9 }
 0x4f3   :  { %v3513_v22 = vpop.f32.mrb[156].mxu0  ;;  %7896 = vmatpush1.bf16.msra.mxu0 %v7895_v5  ;;  %8022 = vmatpush1.bf16.msra.mxu1 %v8021_v28  ;;  %v11373_v46 = vpop.f32.mrb[144].mxu1  ;;  %v6850_v28 = vld [vmem:[%s12224_s6 + $0x268] sm:$0xff] }
 0x4f4   :  { %v3515_v61 = vpop.f32.mrb[157].mxu0  ;;  %7897 = vmatprep.subr.bf16.mxu0 %v8657_v0  ;;  %8023 = vmatprep.subr.bf16.mxu1 %v8657_v0  ;;  %v11386_v6 = vpop.f32.mrb[145].mxu1  ;;  %v7913_v41 = vpack.c.bf16 %v6850_v28, %v6849_v54 }
 0x4f5   :  { %6820 = vmatprep.mubr.msk.f32.mxu0 %vm140_vm0, %v3515_v61  ;;  %6946 = vmatprep.mubr.msk.f32.mxu1 %vm140_vm0, %v3515_v61  ;;  %v6852_v61 = vld [vmem:[%s12224_s6 + $0x278] sm:$0xff] }
 0x4f6   :  { %4138 = vmatmul.mubr.f32.gmra.mrb[184].mxu0 %v3513_v22  ;;  %4686 = vmatmul.mubr.f32.gmra.mrb[172].mxu1 %v3513_v22  ;;  %v8039_v22 = vpack.c.bf16 %v6976_v17, %v6975_v16 }
 0x4f7   :  { %v3519_v55 = vpop.f32.mrb[158].mxu0  ;;  %7899 = vmatpush1.bf16.msra.mxu0 %v7898_v18  ;;  %8025 = vmatpush1.bf16.msra.mxu1 %v8024_v56  ;;  %v11393_v14 = vpop.f32.mrb[146].mxu1  ;;  %v6851_v18 = vld [vmem:[%s12224_s6 + $0x270] sm:$0xff] }
 0x4f8   :  { %v3521_v12 = vpop.f32.mrb[159].mxu0  ;;  %7900 = vmatprep.subr.bf16.mxu0 %v8657_v0  ;;  %8026 = vmatprep.subr.bf16.mxu1 %v8657_v0  ;;  %v11406_v23 = vpop.f32.mrb[147].mxu1 }
 0x4f9   :  { %6821 = vmatprep.mubr.msk.f32.mxu0 %vm140_vm0, %v3521_v12  ;;  %6947 = vmatprep.mubr.msk.f32.mxu1 %vm140_vm0, %v3521_v12 }
 0x4fa   :  { %4143 = vmatmul.mubr.f32.gmra.mrb[186].mxu0 %v3519_v55  ;;  %4691 = vmatmul.mubr.f32.gmra.mrb[174].mxu1 %v3519_v55 }
 0x4fb   :  { %v3525_v15 = vpop.f32.mrb[160].mxu0  ;;  %7902 = vmatpush1.bf16.msra.mxu0 %v7901_v52  ;;  %8028 = vmatpush1.bf16.msra.mxu1 %v8027_v2  ;;  %v11413_v10 = vpop.f32.mrb[148].mxu1  ;;  %v7916_v52 = vpack.c.bf16 %v6852_v61, %v6851_v18  ;;  %v8042_v2 = vpack.c.bf16 %v6978_v49, %v6977_v62 }
 0x4fc   :  { %v3527_v20 = vpop.f32.mrb[161].mxu0  ;;  %7903 = vmatprep.subr.bf16.mxu0 %v8657_v0  ;;  %8029 = vmatprep.subr.bf16.mxu1 %v8657_v0  ;;  %v11426_v37 = vpop.f32.mrb[149].mxu1 }
 0x4fd   :  { %6822 = vmatprep.mubr.msk.f32.mxu0 %vm140_vm0, %v3527_v20  ;;  %6948 = vmatprep.mubr.msk.f32.mxu1 %vm140_vm0, %v3527_v20 }
 0x4fe   :  { %4148 = vmatmul.mubr.f32.gmra.mrb[188].mxu0 %v3525_v15  ;;  %4696 = vmatmul.mubr.f32.gmra.mrb[176].mxu1 %v3525_v15  ;;  %v6980_v15 = vld [vmem:[%s12224_s6 + $0x528] sm:$0xff] }
 0x4ff   :  { %v3531_v35 = vpop.f32.mrb[162].mxu0  ;;  %7905 = vmatpush1.bf16.msra.mxu0 %v7904_v7  ;;  %8031 = vmatpush1.bf16.msra.mxu1 %v8030_v63  ;;  %v11433_v36 = vpop.f32.mrb[150].mxu1  ;;  %v8045_v20 = vpack.c.bf16 %v6980_v15, %v6979_v8 }
 0x500   :  { %v3533_v57 = vpop.f32.mrb[163].mxu0  ;;  %7906 = vmatprep.subr.bf16.mxu0 %v8657_v0  ;;  %8032 = vmatprep.subr.bf16.mxu1 %v8657_v0  ;;  %v11446_v24 = vpop.f32.mrb[151].mxu1 }
 0x501   :  { %6823 = vmatprep.mubr.msk.f32.mxu0 %vm140_vm0, %v3533_v57  ;;  %6949 = vmatprep.mubr.msk.f32.mxu1 %vm140_vm0, %v3533_v57 }
 0x502   :  { %4153 = vmatmul.mubr.f32.gmra.mrb[190].mxu0 %v3531_v35  ;;  %4701 = vmatmul.mubr.f32.gmra.mrb[178].mxu1 %v3531_v35  ;;  %v6856_v35 = vld [vmem:[%s12224_s6 + $0x298] sm:$0xff] }
 0x503   :  { %v3537_v51 = vpop.f32.mrb[164].mxu0  ;;  %7908 = vmatpush1.bf16.msra.mxu0 %v7907_v4  ;;  %8034 = vmatpush1.bf16.msra.mxu1 %v8033_v21  ;;  %v11453_v9 = vpop.f32.mrb[152].mxu1  ;;  %v6981_v4 = vld [vmem:[%s12224_s6 + $0x530] sm:$0xff]  ;;  %v6982_v21 = vld [vmem:[%s12224_s6 + $0x538] sm:$0xff]  ;;  %v7922_v39 = vpack.c.bf16 %v6856_v35, %v6855_v13 }
 0x504   :  { %v3539_v5 = vpop.f32.mrb[165].mxu0  ;;  %7909 = vmatprep.subr.bf16.mxu0 %v8657_v0  ;;  %8035 = vmatprep.subr.bf16.mxu1 %v8657_v0  ;;  %v11466_v19 = vpop.f32.mrb[153].mxu1  ;;  %v8048_v58 = vpack.c.bf16 %v6982_v21, %v6981_v4 }
 0x505   :  { %6824 = vmatprep.mubr.msk.f32.mxu0 %vm140_vm0, %v3539_v5  ;;  %6950 = vmatprep.mubr.msk.f32.mxu1 %vm140_vm0, %v3539_v5 }
 0x506   :  { %4158 = vmatmul.mubr.f32.gmra.mrb[192].mxu0 %v3537_v51  ;;  %4706 = vmatmul.mubr.f32.gmra.mrb[180].mxu1 %v3537_v51 }
 0x507   :  { %v3543_v50 = vpop.f32.mrb[166].mxu0  ;;  %7911 = vmatpush1.bf16.msra.mxu0 %v7910_v31  ;;  %8037 = vmatpush1.bf16.msra.mxu1 %v8036_v59  ;;  %v11473_v56 = vpop.f32.mrb[154].mxu1 }
 0x508   :  { %v3545_v38 = vpop.f32.mrb[167].mxu0  ;;  %7912 = vmatprep.subr.bf16.mxu0 %v8657_v0  ;;  %8038 = vmatprep.subr.bf16.mxu1 %v8657_v0  ;;  %v11486_v47 = vpop.f32.mrb[155].mxu1 }
 0x509   :  { %6825 = vmatprep.mubr.msk.f32.mxu0 %vm140_vm0, %v3545_v38  ;;  %6951 = vmatprep.mubr.msk.f32.mxu1 %vm140_vm0, %v3545_v38 }
 0x50a   :  { %4163 = vmatmul.mubr.f32.gmra.mrb[194].mxu0 %v3543_v50  ;;  %4711 = vmatmul.mubr.f32.gmra.mrb[182].mxu1 %v3543_v50 }
 0x50b   :  { %v3549_v55 = vpop.f32.mrb[168].mxu0  ;;  %7914 = vmatpush1.bf16.msra.mxu0 %v7913_v41  ;;  %8040 = vmatpush1.bf16.msra.mxu1 %v8039_v22  ;;  %v11493_v12 = vpop.f32.mrb[156].mxu1 }
 0x50c   :  { %v3551_v1 = vpop.f32.mrb[169].mxu0  ;;  %7915 = vmatprep.subr.bf16.mxu0 %v8657_v0  ;;  %8041 = vmatprep.subr.bf16.mxu1 %v8657_v0  ;;  %v11506_v7 = vpop.f32.mrb[157].mxu1 }
 0x50d   :  { %6826 = vmatprep.mubr.msk.f32.mxu0 %vm140_vm0, %v3551_v1  ;;  %6952 = vmatprep.mubr.msk.f32.mxu1 %vm140_vm0, %v3551_v1 }
 0x50e   :  { %4168 = vmatmul.mubr.f32.gmra.mrb[196].mxu0 %v3549_v55  ;;  %4716 = vmatmul.mubr.f32.gmra.mrb[184].mxu1 %v3549_v55 }
 0x50f   :  { %v3555_v63 = vpop.f32.mrb[170].mxu0  ;;  %7917 = vmatpush1.bf16.msra.mxu0 %v7916_v52  ;;  %8043 = vmatpush1.bf16.msra.mxu1 %v8042_v2  ;;  %v11513_v53 = vpop.f32.mrb[158].mxu1 }
 0x510   :  { %v3557_v33 = vpop.f32.mrb[171].mxu0  ;;  %7918 = vmatprep.subr.bf16.mxu0 %v8657_v0  ;;  %8044 = vmatprep.subr.bf16.mxu1 %v8657_v0  ;;  %v11526_v43 = vpop.f32.mrb[159].mxu1 }
 0x511   :  { %6827 = vmatprep.mubr.msk.f32.mxu0 %vm140_vm0, %v3557_v33  ;;  %6953 = vmatprep.mubr.msk.f32.mxu1 %vm140_vm0, %v3557_v33 }
 0x512   :  { %4173 = vmatmul.mubr.f32.gmra.mrb[198].mxu0 %v3555_v63  ;;  %4721 = vmatmul.mubr.f32.gmra.mrb[186].mxu1 %v3555_v63 }
 0x513   :  { %v3561_v57 = vpop.f32.mrb[172].mxu0  ;;  %7920 = vmatpush1.bf16.msra.mxu0 %v7919_v40  ;;  %8046 = vmatpush1.bf16.msra.mxu1 %v8045_v20  ;;  %v11530_v11 = vpop.f32.mrb[160].mxu1 }
 0x514   :  { %v3563_v51 = vpop.f32.mrb[173].mxu0  ;;  %7921 = vmatprep.subr.bf16.mxu0 %v8657_v0  ;;  %8047 = vmatprep.subr.bf16.mxu1 %v8657_v0  ;;  %v3769_v31 = vpop.f32.mrb[161].mxu1 }
 0x515   :  { %6828 = vmatprep.mubr.msk.f32.mxu0 %vm140_vm0, %v3563_v51  ;;  %6954 = vmatprep.mubr.msk.f32.mxu1 %vm140_vm0, %v3563_v51 }
 0x516   :  { %4178 = vmatmul.mubr.f32.gmra.mrb[200].mxu0 %v3561_v57  ;;  %4726 = vmatmul.mubr.f32.gmra.mrb[188].mxu1 %v3561_v57 }
 0x517   :  { %7923 = vmatpush1.bf16.msra.mxu0 %v7922_v39  ;;  %8049 = vmatpush1.bf16.msra.mxu1 %v8048_v58 }
 0x518   :  { %6857 = vmatprep.mubr.msk.f32.mxu0 %vm140_vm0, %v11286_v45  ;;  %6983 = vmatprep.mubr.msk.f32.mxu1 %vm140_vm0, %v11286_v45 }
 0x519   :  { %8050 = vmatprep.subr.bf16.mxu0 %v8657_v0  ;;  %8071 = vmatprep.subr.bf16.mxu1 %v8657_v0 }
 0x51a   :  { %4319 = vmatmul.mubr.f32.vlgmr.msra.gmra.mrb[174].mxu0 %v11275_v3  ;;  %4825 = vmatmul.mubr.f32.vlgmr.msra.gmra.mrb[162].mxu1 %v11275_v3 }
 0x51b   :  { %6858 = vmatprep.mubr.msk.f32.mxu0 %vm140_vm0, %v11306_v30  ;;  %6984 = vmatprep.mubr.msk.f32.mxu1 %vm140_vm0, %v11306_v30 }
 0x51e   :  { %4324 = vmatmul.mubr.f32.gmra.mrb[176].mxu0 %v11293_v60  ;;  %4830 = vmatmul.mubr.f32.gmra.mrb[164].mxu1 %v11293_v60 }
 0x51f   :  { %6859 = vmatprep.mubr.msk.f32.mxu0 %vm140_vm0, %v11326_v48  ;;  %6985 = vmatprep.mubr.msk.f32.mxu1 %vm140_vm0, %v11326_v48 }
 0x522   :  { %4329 = vmatmul.mubr.f32.gmra.mrb[178].mxu0 %v11313_v29  ;;  %4835 = vmatmul.mubr.f32.gmra.mrb[166].mxu1 %v11313_v29 }
 0x523   :  { %6860 = vmatprep.mubr.msk.f32.mxu0 %vm140_vm0, %v11346_v42  ;;  %6986 = vmatprep.mubr.msk.f32.mxu1 %vm140_vm0, %v11346_v42 }
 0x526   :  { %4334 = vmatmul.mubr.f32.gmra.mrb[180].mxu0 %v11333_v25  ;;  %4840 = vmatmul.mubr.f32.gmra.mrb[168].mxu1 %v11333_v25 }
 0x527   :  { %6861 = vmatprep.mubr.msk.f32.mxu0 %vm140_vm0, %v11366_v27  ;;  %6987 = vmatprep.mubr.msk.f32.mxu1 %vm140_vm0, %v11366_v27 }
 0x52a   :  { %4339 = vmatmul.mubr.f32.gmra.mrb[182].mxu0 %v11353_v32  ;;  %4845 = vmatmul.mubr.f32.gmra.mrb[170].mxu1 %v11353_v32 }
 0x52b   :  { %6862 = vmatprep.mubr.msk.f32.mxu0 %vm140_vm0, %v11386_v6  ;;  %6988 = vmatprep.mubr.msk.f32.mxu1 %vm140_vm0, %v11386_v6 }
 0x52e   :  { %4344 = vmatmul.mubr.f32.gmra.mrb[184].mxu0 %v11373_v46  ;;  %4850 = vmatmul.mubr.f32.gmra.mrb[172].mxu1 %v11373_v46 }
 0x52f   :  { %6863 = vmatprep.mubr.msk.f32.mxu0 %vm140_vm0, %v11406_v23  ;;  %6989 = vmatprep.mubr.msk.f32.mxu1 %vm140_vm0, %v11406_v23 }
 0x532   :  { %4349 = vmatmul.mubr.f32.gmra.mrb[186].mxu0 %v11393_v14  ;;  %4855 = vmatmul.mubr.f32.gmra.mrb[174].mxu1 %v11393_v14 }
 0x533   :  { %6864 = vmatprep.mubr.msk.f32.mxu0 %vm140_vm0, %v11426_v37  ;;  %6990 = vmatprep.mubr.msk.f32.mxu1 %vm140_vm0, %v11426_v37 }
 0x536   :  { %4354 = vmatmul.mubr.f32.gmra.mrb[188].mxu0 %v11413_v10  ;;  %4860 = vmatmul.mubr.f32.gmra.mrb[176].mxu1 %v11413_v10 }
 0x537   :  { %6865 = vmatprep.mubr.msk.f32.mxu0 %vm140_vm0, %v11446_v24  ;;  %6991 = vmatprep.mubr.msk.f32.mxu1 %vm140_vm0, %v11446_v24 }
 0x53a   :  { %4359 = vmatmul.mubr.f32.gmra.mrb[190].mxu0 %v11433_v36  ;;  %4865 = vmatmul.mubr.f32.gmra.mrb[178].mxu1 %v11433_v36 }
 0x53b   :  { %6866 = vmatprep.mubr.msk.f32.mxu0 %vm140_vm0, %v11466_v19  ;;  %6992 = vmatprep.mubr.msk.f32.mxu1 %vm140_vm0, %v11466_v19 }
 0x53e   :  { %4364 = vmatmul.mubr.f32.gmra.mrb[192].mxu0 %v11453_v9  ;;  %4870 = vmatmul.mubr.f32.gmra.mrb[180].mxu1 %v11453_v9 }
 0x53f   :  { %6867 = vmatprep.mubr.msk.f32.mxu0 %vm140_vm0, %v11486_v47  ;;  %6993 = vmatprep.mubr.msk.f32.mxu1 %vm140_vm0, %v11486_v47 }
 0x542   :  { %4369 = vmatmul.mubr.f32.gmra.mrb[194].mxu0 %v11473_v56  ;;  %4875 = vmatmul.mubr.f32.gmra.mrb[182].mxu1 %v11473_v56 }
 0x543   :  { %6868 = vmatprep.mubr.msk.f32.mxu0 %vm140_vm0, %v11506_v7  ;;  %6994 = vmatprep.mubr.msk.f32.mxu1 %vm140_vm0, %v11506_v7 }
 0x546   :  { %4374 = vmatmul.mubr.f32.gmra.mrb[196].mxu0 %v11493_v12  ;;  %4880 = vmatmul.mubr.f32.gmra.mrb[184].mxu1 %v11493_v12 }
 0x547   :  { %6869 = vmatprep.mubr.msk.f32.mxu0 %vm140_vm0, %v11526_v43  ;;  %6995 = vmatprep.mubr.msk.f32.mxu1 %vm140_vm0, %v11526_v43 }
 0x54a   :  { %4379 = vmatmul.mubr.f32.gmra.mrb[198].mxu0 %v11513_v53  ;;  %4885 = vmatmul.mubr.f32.gmra.mrb[186].mxu1 %v11513_v53 }
 0x54b   :  { %6870 = vmatprep.mubr.msk.f32.mxu0 %vm140_vm0, %v3769_v31  ;;  %6996 = vmatprep.mubr.msk.f32.mxu1 %vm140_vm0, %v3769_v31 }
 0x54e   :  { %4384 = vmatmul.mubr.f32.gmra.mrb[200].mxu0 %v11530_v11  ;;  %4890 = vmatmul.mubr.f32.gmra.mrb[188].mxu1 %v11530_v11 }
 0x54f   :  { %7241 = vmatprep.mubr.msk.f32.mxu0 %vm8660_vm4, %v8659_v26  ;;  %7290 = vmatprep.mubr.msk.f32.mxu1 %vm8660_vm4, %v8659_v26 }
 0x5ed   :  { %v4320_v3 = vpop.f32.mrb[174].mxu0  ;;  %v4826_v45 = vpop.f32.mrb[162].mxu1 }
 0x5ee   :  { %v4909_v60 = vmax.f32 %v4320_v3, %v4826_v45  ;;  %v4322_v30 = vpop.f32.mrb[175].mxu0  ;;  %v4828_v29 = vpop.f32.mrb[163].mxu1 }
 0x5f1   :  { %v4325_v48 = vpop.f32.mrb[176].mxu0  ;;  %v4831_v25 = vpop.f32.mrb[164].mxu1 }
 0x5f2   :  { %v4910_v42 = vmax.f32 %v4325_v48, %v4831_v25  ;;  %v4327_v32 = vpop.f32.mrb[177].mxu0  ;;  %v4833_v27 = vpop.f32.mrb[165].mxu1 }
 0x5f4   :  { %v8051_v46 = vpack.c.bf16 %v4910_v42, %v4909_v60 }
 0x5f5   :  { %v4330_v6 = vpop.f32.mrb[178].mxu0  ;;  %v4836_v14 = vpop.f32.mrb[166].mxu1 }
 0x5f6   :  { %v4911_v23 = vmax.f32 %v4330_v6, %v4836_v14  ;;  %v4332_v10 = vpop.f32.mrb[179].mxu0  ;;  %v4838_v37 = vpop.f32.mrb[167].mxu1  ;;  %8052 = vmatpush3.bf16.msra.mxu0 %v8051_v46  ;;  %8073 = vmatpush3.bf16.msra.mxu1 %v8051_v46 }
 0x5f7   :  { %8053 = vmatprep.subr.bf16.mxu0 %v8657_v0  ;;  %8074 = vmatprep.subr.bf16.mxu1 %v8657_v0  ;;  %v4923_v37 = vld [vmem:[%s12226_s7] sm:$0xff] }
 0x5f9   :  { %v4335_v36 = vpop.f32.mrb[180].mxu0  ;;  %v4841_v24 = vpop.f32.mrb[168].mxu1 }
 0x5fa   :  { %v4912_v59 = vmax.f32 %v4335_v36, %v4841_v24  ;;  %v4337_v54 = vpop.f32.mrb[181].mxu0  ;;  %v4843_v9 = vpop.f32.mrb[169].mxu1  ;;  %v7004_v36 = vld [vmem:[%s12226_s7 + $0x38] sm:$0xff]  ;;  %v4924_v24 = vld [vmem:[%s12226_s7 + $0x8] sm:$0xff] }
 0x5fb   :  { %v4925_v54 = vld [vmem:[%s12226_s7 + $0x10] sm:$0xff]  ;;  %v7006_v9 = vld [vmem:[%s12226_s7 + $0x48] sm:$0xff] }
 0x5fc   :  { %v8054_v5 = vpack.c.bf16 %v4912_v59, %v4911_v23  ;;  %v7005_v59 = vld [vmem:[%s12226_s7 + $0x40] sm:$0xff] }
 0x5fd   :  { %v4340_v28 = vpop.f32.mrb[182].mxu0  ;;  %v4846_v16 = vpop.f32.mrb[170].mxu1 }
 0x5fe   :  { %v4913_v17 = vmax.f32 %v4340_v28, %v4846_v16  ;;  %v4342_v19 = vpop.f32.mrb[183].mxu0  ;;  %v4848_v50 = vpop.f32.mrb[171].mxu1  ;;  %8055 = vmatpush3.bf16.msra.mxu0 %v8054_v5  ;;  %8076 = vmatpush3.bf16.msra.mxu1 %v8054_v5  ;;  %v4926_v5 = vld [vmem:[%s12226_s7 + $0x18] sm:$0xff]  ;;  %v7007_v28 = vld [vmem:[%s12226_s7 + $0x50] sm:$0xff]  ;;  %v4927_v16 = vld [vmem:[%s12226_s7 + $0x20] sm:$0xff] }
 0x5ff   :  { %8056 = vmatprep.subr.bf16.mxu0 %v8657_v0  ;;  %8077 = vmatprep.subr.bf16.mxu1 %v8657_v0  ;;  %v4928_v19 = vld [vmem:[%s12226_s7 + $0x28] sm:$0xff]  ;;  %v7009_v50 = vld [vmem:[%s12226_s7 + $0x60] sm:$0xff] }
 0x601   :  { %v4345_v41 = vpop.f32.mrb[184].mxu0  ;;  %v4851_v22 = vpop.f32.mrb[172].mxu1 }
 0x602   :  { %v4914_v18 = vmax.f32 %v4345_v41, %v4851_v22  ;;  %v4347_v56 = vpop.f32.mrb[185].mxu0  ;;  %v4853_v38 = vpop.f32.mrb[173].mxu1  ;;  %v4929_v41 = vld [vmem:[%s12226_s7 + $0x30] sm:$0xff]  ;;  %v7010_v22 = vld [vmem:[%s12226_s7 + $0x68] sm:$0xff] }
 0x603   :  { %v11725_v38 = vld [vmem:[%s12227_s8] ss:$0 sm:$0xff] }
 0x604   :  { %v8057_v61 = vpack.c.bf16 %v4914_v18, %v4913_v17  ;;  %v7008_v17 = vld [vmem:[%s12226_s7 + $0x58] sm:$0xff] }
 0x605   :  { %v4350_v62 = vpop.f32.mrb[186].mxu0  ;;  %v4856_v49 = vpop.f32.mrb[174].mxu1 }
 0x606   :  { %v4915_v47 = vmax.f32 %v4350_v62, %v4856_v49  ;;  %v4352_v55 = vpop.f32.mrb[187].mxu0  ;;  %v4858_v52 = vpop.f32.mrb[175].mxu1  ;;  %8058 = vmatpush3.bf16.msra.mxu0 %v8057_v61  ;;  %8079 = vmatpush3.bf16.msra.mxu1 %v8057_v61 }
 0x607   :  { %8059 = vmatprep.subr.bf16.mxu0 %v8657_v0  ;;  %8080 = vmatprep.subr.bf16.mxu1 %v8657_v0 }
 0x609   :  { %v4355_v2 = vpop.f32.mrb[188].mxu0  ;;  %v4861_v44 = vpop.f32.mrb[176].mxu1 }
 0x60a   :  { %v4916_v12 = vmax.f32 %v4355_v2, %v4861_v44  ;;  %v4357_v1 = vpop.f32.mrb[189].mxu0  ;;  %v4863_v34 = vpop.f32.mrb[177].mxu1 }
 0x60c   :  { %v8060_v8 = vpack.c.bf16 %v4916_v12, %v4915_v47 }
 0x60d   :  { %v4360_v15 = vpop.f32.mrb[190].mxu0  ;;  %v4866_v7 = vpop.f32.mrb[178].mxu1 }
 0x60e   :  { %v4917_v63 = vmax.f32 %v4360_v15, %v4866_v7  ;;  %v4362_v40 = vpop.f32.mrb[191].mxu0  ;;  %v4868_v20 = vpop.f32.mrb[179].mxu1  ;;  %8061 = vmatpush3.bf16.msra.mxu0 %v8060_v8  ;;  %8082 = vmatpush3.bf16.msra.mxu1 %v8060_v8 }
 0x60f   :  { %8062 = vmatprep.subr.bf16.mxu0 %v8657_v0  ;;  %8083 = vmatprep.subr.bf16.mxu1 %v8657_v0 }
 0x611   :  { %v4365_v13 = vpop.f32.mrb[192].mxu0  ;;  %v4871_v53 = vpop.f32.mrb[180].mxu1 }
 0x612   :  { %v4918_v33 = vmax.f32 %v4365_v13, %v4871_v53  ;;  %v4367_v35 = vpop.f32.mrb[193].mxu0  ;;  %v4873_v4 = vpop.f32.mrb[181].mxu1 }
 0x614   :  { %v8063_v21 = vpack.c.bf16 %v4918_v33, %v4917_v63 }
 0x615   :  { %v4370_v43 = vpop.f32.mrb[194].mxu0  ;;  %v4876_v57 = vpop.f32.mrb[182].mxu1 }
 0x616   :  { %v4919_v39 = vmax.f32 %v4370_v43, %v4876_v57  ;;  %v4372_v58 = vpop.f32.mrb[195].mxu0  ;;  %v4878_v11 = vpop.f32.mrb[183].mxu1  ;;  %8064 = vmatpush3.bf16.msra.mxu0 %v8063_v21  ;;  %8085 = vmatpush3.bf16.msra.mxu1 %v8063_v21 }
 0x617   :  { %8065 = vmatprep.subr.bf16.mxu0 %v8657_v0  ;;  %8086 = vmatprep.subr.bf16.mxu1 %v8657_v0 }
 0x619   :  { %v4375_v51 = vpop.f32.mrb[196].mxu0  ;;  %v4881_v31 = vpop.f32.mrb[184].mxu1 }
 0x61a   :  { %v4920_v3 = vmax.f32 %v4375_v51, %v4881_v31  ;;  %v4377_v45 = vpop.f32.mrb[197].mxu0  ;;  %v4883_v60 = vpop.f32.mrb[185].mxu1 }
 0x61c   :  { %v8066_v30 = vpack.c.bf16 %v4920_v3, %v4919_v39 }
 0x61d   :  { %v4380_v29 = vpop.f32.mrb[198].mxu0  ;;  %v4886_v48 = vpop.f32.mrb[186].mxu1 }
 0x61e   :  { %v4921_v25 = vmax.f32 %v4380_v29, %v4886_v48  ;;  %v4382_v42 = vpop.f32.mrb[199].mxu0  ;;  %v4888_v32 = vpop.f32.mrb[187].mxu1  ;;  %8067 = vmatpush3.bf16.msra.mxu0 %v8066_v30  ;;  %8088 = vmatpush3.bf16.msra.mxu1 %v8066_v30 }
 0x61f   :  { %8068 = vmatprep.subr.bf16.mxu0 %v8657_v0  ;;  %8089 = vmatprep.subr.bf16.mxu1 %v8657_v0 }
 0x621   :  { %v4385_v27 = vpop.f32.mrb[200].mxu0  ;;  %v4891_v46 = vpop.f32.mrb[188].mxu1 }
 0x622   :  { %v4922_v6 = vmax.f32 %v4385_v27, %v4891_v46  ;;  %v4387_v14 = vpop.f32.mrb[201].mxu0  ;;  %v4893_v23 = vpop.f32.mrb[189].mxu1 }
 0x624   :  { %v8069_v10 = vpack.c.bf16 %v4922_v6, %v4921_v25 }
 0x626   :  { %8070 = vmatpush3.bf16.msra.mxu0 %v8069_v10  ;;  %8091 = vmatpush3.bf16.msra.mxu1 %v8069_v10 }
 0x627   :  { %8092 = vmatprep.subr.bf16.mxu0 %v8657_v0  ;;  %8101 = vmatprep.subr.bf16.mxu1 %v8657_v0 }
 0x629   :  { %7242 = vmatmul.mubr.msk.f32.vlgmr.msra.gmra.mrb[202].mxu0 %vm3374_vm3, %v4923_v37  ;;  %7291 = vmatmul.mubr.msk.f32.vlgmr.msra.gmra.mrb[190].mxu1 %vm3374_vm3, %v7004_v36 }
 0x62a   :  { %7244 = vmatprep.mubr.msk.f32.mxu0 %vm8660_vm4, %v8659_v26  ;;  %7293 = vmatprep.mubr.msk.f32.mxu1 %vm8660_vm4, %v8659_v26 }
 0x62d   :  { %7245 = vmatmul.mubr.msk.f32.gmra.mrb[204].mxu0 %vm3374_vm3, %v4924_v24  ;;  %7294 = vmatmul.mubr.msk.f32.gmra.mrb[192].mxu1 %vm3374_vm3, %v7005_v59 }
 0x62e   :  { %7247 = vmatprep.mubr.msk.f32.mxu0 %vm8660_vm4, %v8659_v26  ;;  %7296 = vmatprep.mubr.msk.f32.mxu1 %vm8660_vm4, %v8659_v26 }
 0x631   :  { %7248 = vmatmul.mubr.msk.f32.gmra.mrb[206].mxu0 %vm3374_vm3, %v4925_v54  ;;  %7297 = vmatmul.mubr.msk.f32.gmra.mrb[194].mxu1 %vm3374_vm3, %v7006_v9 }
 0x632   :  { %7250 = vmatprep.mubr.msk.f32.mxu0 %vm8660_vm4, %v8659_v26  ;;  %7299 = vmatprep.mubr.msk.f32.mxu1 %vm8660_vm4, %v8659_v26 }
 0x635   :  { %7251 = vmatmul.mubr.msk.f32.gmra.mrb[208].mxu0 %vm3374_vm3, %v4926_v5  ;;  %7300 = vmatmul.mubr.msk.f32.gmra.mrb[196].mxu1 %vm3374_vm3, %v7007_v28 }
 0x636   :  { %7253 = vmatprep.mubr.msk.f32.mxu0 %vm8660_vm4, %v8659_v26  ;;  %7302 = vmatprep.mubr.msk.f32.mxu1 %vm8660_vm4, %v8659_v26 }
 0x639   :  { %7254 = vmatmul.mubr.msk.f32.gmra.mrb[210].mxu0 %vm3374_vm3, %v4927_v16  ;;  %7303 = vmatmul.mubr.msk.f32.gmra.mrb[198].mxu1 %vm3374_vm3, %v7008_v17 }
 0x63a   :  { %7256 = vmatprep.mubr.msk.f32.mxu0 %vm8660_vm4, %v8659_v26  ;;  %7305 = vmatprep.mubr.msk.f32.mxu1 %vm8660_vm4, %v8659_v26 }
 0x63d   :  { %7257 = vmatmul.mubr.msk.f32.gmra.mrb[212].mxu0 %vm3374_vm3, %v4928_v19  ;;  %7306 = vmatmul.mubr.msk.f32.gmra.mrb[200].mxu1 %vm3374_vm3, %v7009_v50 }
 0x63e   :  { %7259 = vmatprep.mubr.msk.f32.mxu0 %vm8660_vm4, %v8659_v26  ;;  %7308 = vmatprep.mubr.msk.f32.mxu1 %vm8660_vm4, %v8659_v26 }
 0x641   :  { %7260 = vmatmul.mubr.msk.f32.gmra.mrb[214].mxu0 %vm3374_vm3, %v4929_v41  ;;  %7309 = vmatmul.mubr.msk.f32.gmra.mrb[202].mxu1 %vm3374_vm3, %v7010_v22 }
 0x642   :  { %7325 = vmatprep.mubr.msk.f32.mxu0 %vm8660_vm4, %v8659_v26  ;;  %7360 = vmatprep.mubr.msk.f32.mxu1 %vm8660_vm4, %v8659_v26 }
 0x6fc   :  { %v5017_v18 = vpop.f32.mrb[202].mxu0  ;;  %v5146_v56 = vpop.f32.mrb[190].mxu1 }
 0x6fd   :  { %v5180_v61 = vmax.f32 %v5017_v18, %v5146_v56  ;;  %v7243_v62 = vpop.f32.mrb[203].mxu0  ;;  %v7292_v49 = vpop.f32.mrb[191].mxu1 }
 0x6ff   :  { %v5194_v47 = vadd.f32 %v11725_v38, %v5180_v61 }
 0x700   :  { %v5022_v55 = vpop.f32.mrb[204].mxu0  ;;  %v5151_v52 = vpop.f32.mrb[192].mxu1 }
 0x701   :  { %v5208_v2 = vmin.f32 %v5194_v47, 0.0  ;;  %v5181_v44 = vmax.f32 %v5022_v55, %v5151_v52  ;;  %v7246_v12 = vpop.f32.mrb[205].mxu0  ;;  %v7295_v1 = vpop.f32.mrb[193].mxu1  ;;  %vm5201_vm5 = vcmp.gt.f32.partialorder %v5194_v47, 0.0 }
 0x703   :  { %v5215_v34 = vmul.f32 1.442695, %v5208_v2  ;;  %v5195_v8 = vadd.f32 %v11725_v38, %v5181_v44 }
 0x704   :  { %v5027_v15 = vpop.f32.mrb[206].mxu0  ;;  %v5156_v7 = vpop.f32.mrb[194].mxu1 }
 0x705   :  { %8627 = vpow2.f32 %v5215_v34  ;;  %v5209_v63 = vmin.f32 %v5195_v8, 0.0  ;;  %v5182_v40 = vmax.f32 %v5027_v15, %v5156_v7  ;;  %v7249_v20 = vpop.f32.mrb[207].mxu0  ;;  %v7298_v13 = vpop.f32.mrb[195].mxu1  ;;  %vm5202_vm6 = vcmp.gt.f32.partialorder %v5195_v8, 0.0 }
 0x706   :  { %v7048_v20 = vld [vmem:[%s12228_s10 + $0x40] sm:$0xff] }
 0x707   :  { %v5217_v53 = vmul.f32 1.442695, %v5209_v63  ;;  %v5196_v33 = vadd.f32 %v11725_v38, %v5182_v40  ;;  %v7047_v40 = vld [vmem:[%s12228_s10 + $0x38] sm:$0xff]  ;;  %v5501_v13 = vld [vmem:[%s12228_s10] sm:$0xff] }
 0x708   :  { %v5032_v35 = vpop.f32.mrb[208].mxu0  ;;  %v5161_v4 = vpop.f32.mrb[196].mxu1 }
 0x709   :  { %8629 = vpow2.f32 %v5217_v53  ;;  %v5210_v21 = vmin.f32 %v5196_v33, 0.0  ;;  %v5183_v43 = vmax.f32 %v5032_v35, %v5161_v4  ;;  %v7252_v57 = vpop.f32.mrb[209].mxu0  ;;  %v7301_v39 = vpop.f32.mrb[197].mxu1  ;;  %vm5203_vm7 = vcmp.gt.f32.partialorder %v5196_v33, 0.0  ;;  %v5502_v53 = vld [vmem:[%s12228_s10 + $0x8] sm:$0xff]  ;;  %v7033_v35 = vld [vmem:[%s12229_s9 + $0x38] sm:$0xff] }
 0x70a   :  { %v8120_v57 = vpack.c.bf16 %v5502_v53, %v5501_v13  ;;  %v7050_v39 = vld [vmem:[%s12228_s10 + $0x50] sm:$0xff] }
 0x70b   :  { %v5219_v58 = vmul.f32 1.442695, %v5210_v21  ;;  %v5197_v11 = vadd.f32 %v11725_v38, %v5183_v43  ;;  %v8111_v21 = vpack.c.bf16 %v7048_v20, %v7047_v40  ;;  %v7049_v43 = vld [vmem:[%s12228_s10 + $0x48] sm:$0xff] }
 0x70c   :  { %v5037_v51 = vpop.f32.mrb[210].mxu0  ;;  %v5166_v31 = vpop.f32.mrb[198].mxu1 }
 0x70d   :  { %8631 = vpow2.f32 %v5219_v58  ;;  %v5211_v3 = vmin.f32 %v5197_v11, 0.0  ;;  %v5184_v45 = vmax.f32 %v5037_v51, %v5166_v31  ;;  %v7255_v60 = vpop.f32.mrb[211].mxu0  ;;  %v7304_v30 = vpop.f32.mrb[199].mxu1  ;;  %vm5204_vm8 = vcmp.gt.f32.partialorder %v5197_v11, 0.0  ;;  %v5503_v58 = vld [vmem:[%s12228_s10 + $0x10] sm:$0xff]  ;;  %v5244_v51 = vld [vmem:[%s12229_s9 + $0x8] sm:$0xff] }
 0x70e   :  { %v7034_v31 = vld [vmem:[%s12229_s9 + $0x40] sm:$0xff] }
 0x70f   :  { %v8628_v29 = vpop.eup %8627  ;;  %v5221_v48 = vmul.f32 1.442695, %v5211_v3  ;;  %v5198_v25 = vadd.f32 %v11725_v38, %v5184_v45  ;;  %v8114_v3 = vpack.c.bf16 %v7050_v39, %v7049_v43  ;;  %v7051_v45 = vld [vmem:[%s12228_s10 + $0x58] sm:$0xff]  ;;  %v7052_v30 = vld [vmem:[%s12228_s10 + $0x60] sm:$0xff] }
 0x710   :  { %v5042_v42 = vpop.f32.mrb[212].mxu0  ;;  %v5171_v32 = vpop.f32.mrb[200].mxu1  ;;  %v7019_v23 = vadd.f32 -1.0, %v8628_v29  ;;  %v5505_v29 = vld [vmem:[%s12228_s10 + $0x20] sm:$0xff] }
 0x711   :  { %8633 = vpow2.f32 %v5221_v48  ;;  %v5212_v27 = vmin.f32 %v5198_v25, 0.0  ;;  %v5185_v46 = vmax.f32 %v5042_v42, %v5171_v32  ;;  %v7258_v6 = vpop.f32.mrb[213].mxu0  ;;  %v7307_v14 = vpop.f32.mrb[201].mxu1  ;;  %vm5205_vm9 = vcmp.gt.f32.partialorder %v5198_v25, 0.0  ;;  %v5506_v48 = vld [vmem:[%s12228_s10 + $0x28] sm:$0xff] }
 0x712   :  { %v11733_v17 = vsel %vm5201_vm5, %v5194_v47, %v7019_v23  ;;  %v7035_v42 = vld [vmem:[%s12229_s9 + $0x48] sm:$0xff]  ;;  %v8117_v32 = vpack.c.bf16 %v7052_v30, %v7051_v45  ;;  %v7036_v6 = vld [vmem:[%s12229_s9 + $0x50] sm:$0xff]  ;;  %v5247_v23 = vld [vmem:[%s12229_s9 + $0x20] sm:$0xff]  ;;  %vm6309_vm5 = vcmask 261120  }
 0x713   :  { %v8630_v10 = vpop.eup %8629  ;;  %v5223_v37 = vmul.f32 1.442695, %v5212_v27  ;;  %v5199_v36 = vadd.f32 %v11725_v38, %v5185_v46  ;;  %v8126_v27 = vpack.c.bf16 %v5506_v48, %v5505_v29  ;;  %v5246_v46 = vld [vmem:[%s12229_s9 + $0x18] sm:$0xff]  ;;  %v7053_v14 = vld [vmem:[%s12228_s10 + $0x68] sm:$0xff] }
 0x714   :  { %v7020_v24 = vadd.f32 -1.0, %v8630_v10  ;;  %v5047_v59 = vpop.f32.mrb[214].mxu0  ;;  %v5176_v54 = vpop.f32.mrb[202].mxu1  ;;  %v7037_v10 = vld [vmem:[%s12229_s9 + $0x58] sm:$0xff] }
 0x715   :  { %8635 = vpow2.f32 %v5223_v37  ;;  %v5213_v9 = vmin.f32 %v5199_v36, 0.0  ;;  %v5186_v5 = vmax.f32 %v5047_v59, %v5176_v54  ;;  %v7261_v28 = vpop.f32.mrb[215].mxu0  ;;  %v7310_v16 = vpop.f32.mrb[203].mxu1  ;;  %vm5206_vm10 = vcmp.gt.f32.partialorder %v5199_v36, 0.0  ;;  %v5248_v37 = vld [vmem:[%s12229_s9 + $0x28] sm:$0xff]  ;;  %v7068_v54 = vld [vmem:[%s12228_s10 + $0x70] sm:$0xff] }
 0x716   :  { %v11735_v19 = vsel %vm5202_vm6, %v5195_v8, %v7020_v24  ;;  %v5249_v24 = vld [vmem:[%s12229_s9 + $0x30] sm:$0xff]  ;;  %v7039_v59 = vld [vmem:[%s12229_s9 + $0x68] sm:$0xff]  ;;  %v7070_v28 = vld [vmem:[%s12228_s10 + $0x80] sm:$0xff] }
 0x717   :  { %v8632_v50 = vpop.eup %8631  ;;  %v5225_v41 = vmul.f32 1.442695, %v5213_v9  ;;  %v5200_v22 = vadd.f32 %v11725_v38, %v5186_v5  ;;  %v8093_v18 = vpack.c.bf16 %v11735_v19, %v11733_v17  ;;  %v7069_v9 = vld [vmem:[%s12228_s10 + $0x78] sm:$0xff]  ;;  %v7071_v16 = vld [vmem:[%s12228_s10 + $0x88] sm:$0xff] }
 0x718   :  { %v7021_v61 = vadd.f32 -1.0, %v8632_v50  ;;  %v8129_v5 = vpack.c.bf16 %v7069_v9, %v7068_v54  ;;  %v8132_v50 = vpack.c.bf16 %v7071_v16, %v7070_v28  ;;  %v5954_v54 = vld [vmem:[%s12230_s12 + $0x20] sm:$0xff]  ;;  %v5956_v9 = vld [vmem:[%s12230_s12 + $0x30] sm:$0xff]  ;;  %v5959_v28 = vld [vmem:[%s12230_s12 + $0x48] sm:$0xff] }
 0x719   :  { %8637 = vpow2.f32 %v5225_v41  ;;  %v5214_v56 = vmin.f32 %v5200_v22, 0.0  ;;  %8094 = vmatpush3.bf16.msra.mxu0 %v8093_v18  ;;  %8103 = vmatpush3.bf16.msra.mxu1 %v8093_v18  ;;  %vm5207_vm11 = vcmp.gt.f32.partialorder %v5200_v22, 0.0  ;;  %v7072_v41 = vld [vmem:[%s12228_s10 + $0x90] sm:$0xff]  ;;  %v7074_v18 = vld [vmem:[%s12228_s10 + $0xa0] sm:$0xff]  ;;  %v5961_v16 = vld [vmem:[%s12230_s12 + $0x58] sm:$0xff] }
 0x71a   :  { %8095 = vmatprep.subr.bf16.mxu0 %v8657_v0  ;;  %8104 = vmatprep.subr.bf16.mxu1 %v8657_v0  ;;  %v11742_v55 = vsel %vm5203_vm7, %v5196_v33, %v7021_v61  ;;  %v5243_v33 = vld [vmem:[%s12229_s9] sm:$0xff] }
 0x71b   :  { %v8634_v62 = vpop.eup %8633  ;;  %v5227_v49 = vmul.f32 1.442695, %v5214_v56 }
 0x71c   :  { %v7022_v47 = vadd.f32 -1.0, %v8634_v62 }
 0x71d   :  { %8639 = vpow2.f32 %v5227_v49 }
 0x71e   :  { %v11744_v38 = vsel %vm5204_vm8, %v5197_v11, %v7022_v47  ;;  %v5504_v11 = vld [vmem:[%s12228_s10 + $0x18] sm:$0xff] }
 0x71f   :  { %v8636_v52 = vpop.eup %8635  ;;  %v8096_v2 = vpack.c.bf16 %v11744_v38, %v11742_v55  ;;  %v8123_v60 = vpack.c.bf16 %v5504_v11, %v5503_v58 }
 0x720   :  { %v7023_v44 = vadd.f32 -1.0, %v8636_v52 }
 0x721   :  { %8097 = vmatpush3.bf16.msra.mxu0 %v8096_v2  ;;  %8106 = vmatpush3.bf16.msra.mxu1 %v8096_v2 }
 0x722   :  { %8098 = vmatprep.subr.bf16.mxu0 %v8657_v0  ;;  %8107 = vmatprep.subr.bf16.mxu1 %v8657_v0  ;;  %v11750_v34 = vsel %vm5205_vm9, %v5198_v25, %v7023_v44  ;;  %v5245_v25 = vld [vmem:[%s12229_s9 + $0x10] sm:$0xff] }
 0x723   :  { %v8638_v12 = vpop.eup %8637 }
 0x724   :  { %v7024_v1 = vadd.f32 -1.0, %v8638_v12 }
 0x726   :  { %v11752_v8 = vsel %vm5206_vm10, %v5199_v36, %v7024_v1  ;;  %v7038_v36 = vld [vmem:[%s12229_s9 + $0x60] sm:$0xff] }
 0x727   :  { %v8640_v15 = vpop.eup %8639  ;;  %v8099_v7 = vpack.c.bf16 %v11752_v8, %v11750_v34 }
 0x728   :  { %v7025_v63 = vadd.f32 -1.0, %v8640_v15 }
 0x729   :  { %8100 = vmatpush3.bf16.msra.mxu0 %v8099_v7  ;;  %8109 = vmatpush3.bf16.msra.mxu1 %v8099_v7 }
 0x72a   :  { %7323 = vmatprep.subr.mxu0 %v8659_v26  ;;  %7358 = vmatprep.subr.mxu1 %v8659_v26  ;;  %v11776_v4 = vsel %vm5207_vm11, %v5200_v22, %v7025_v63  ;;  %v7073_v22 = vld [vmem:[%s12228_s10 + $0x98] sm:$0xff] }
 0x72d   :  { %7324 = vmatpush3.msra.mxu0 %v11776_v4  ;;  %7359 = vmatpush3.msra.mxu1 %v11776_v4 }
 0x72e   :  { %7326 = vmatmul.mubr.msk.f32.vlgmr.msra.gmra.mrb[216].mxu0 %vm5250_vm12, %v5243_v33  ;;  %7361 = vmatmul.mubr.msk.f32.vlgmr.msra.gmra.mrb[204].mxu1 %vm5250_vm12, %v7033_v35 }
 0x72f   :  { %7328 = vmatprep.mubr.msk.f32.mxu0 %vm8660_vm4, %v8659_v26  ;;  %7363 = vmatprep.mubr.msk.f32.mxu1 %vm8660_vm4, %v8659_v26 }
 0x730   :  { %8110 = vmatprep.subr.bf16.mxu0 %v8657_v0  ;;  %8119 = vmatprep.subr.bf16.mxu1 %v8657_v0 }
 0x731   :  { %8112 = vmatpush3.bf16.msra.mxu0 %v8111_v21  ;;  %8121 = vmatpush3.bf16.msra.mxu1 %v8120_v57 }
 0x732   :  { %7329 = vmatmul.mubr.msk.f32.gmra.mrb[218].mxu0 %vm5250_vm12, %v5244_v51  ;;  %7364 = vmatmul.mubr.msk.f32.gmra.mrb[206].mxu1 %vm5250_vm12, %v7034_v31 }
 0x733   :  { %7331 = vmatprep.mubr.msk.f32.mxu0 %vm8660_vm4, %v8659_v26  ;;  %7366 = vmatprep.mubr.msk.f32.mxu1 %vm8660_vm4, %v8659_v26 }
 0x734   :  { %8113 = vmatprep.subr.bf16.mxu0 %v8657_v0  ;;  %8122 = vmatprep.subr.bf16.mxu1 %v8657_v0 }
 0x735   :  { %8115 = vmatpush3.bf16.msra.mxu0 %v8114_v3  ;;  %8124 = vmatpush3.bf16.msra.mxu1 %v8123_v60 }
 0x736   :  { %7332 = vmatmul.mubr.msk.f32.gmra.mrb[220].mxu0 %vm5250_vm12, %v5245_v25  ;;  %7367 = vmatmul.mubr.msk.f32.gmra.mrb[208].mxu1 %vm5250_vm12, %v7035_v42 }
 0x737   :  { %7334 = vmatprep.mubr.msk.f32.mxu0 %vm8660_vm4, %v8659_v26  ;;  %7369 = vmatprep.mubr.msk.f32.mxu1 %vm8660_vm4, %v8659_v26 }
 0x738   :  { %8116 = vmatprep.subr.bf16.mxu0 %v8657_v0  ;;  %8125 = vmatprep.subr.bf16.mxu1 %v8657_v0 }
 0x739   :  { %8118 = vmatpush3.bf16.msra.mxu0 %v8117_v32  ;;  %8127 = vmatpush3.bf16.msra.mxu1 %v8126_v27 }
 0x73a   :  { %7335 = vmatmul.mubr.msk.f32.gmra.mrb[222].mxu0 %vm5250_vm12, %v5246_v46  ;;  %7370 = vmatmul.mubr.msk.f32.gmra.mrb[210].mxu1 %vm5250_vm12, %v7036_v6  ;;  %v5951_v46 = vld [vmem:[%s12230_s12 + $0x8] sm:$0xff]  ;;  %v5953_v6 = vld [vmem:[%s12230_s12 + $0x18] sm:$0xff] }
 0x73b   :  { %7337 = vmatprep.mubr.msk.f32.mxu0 %vm8660_vm4, %v8659_v26  ;;  %7372 = vmatprep.mubr.msk.f32.mxu1 %vm8660_vm4, %v8659_v26 }
 0x73c   :  { %7393 = vmatprep.subr.mxu0 %v8659_v26  ;;  %7428 = vmatprep.subr.mxu1 %v8659_v26 }
 0x73d   :  { %7394 = vmatpush3.msra.mxu0 %v7053_v14  ;;  %v8137_v14 = vpack.c.bf16 %v5953_v6, %v5951_v46 }
 0x73e   :  { %7338 = vmatmul.mubr.msk.f32.gmra.mrb[224].mxu0 %vm5250_vm12, %v5247_v23  ;;  %7373 = vmatmul.mubr.msk.f32.gmra.mrb[212].mxu1 %vm5250_vm12, %v7037_v10  ;;  %v5950_v23 = vld [vmem:[%s12230_s12] sm:$0xff]  ;;  %v5952_v10 = vld [vmem:[%s12230_s12 + $0x10] sm:$0xff] }
 0x73f   :  { %7340 = vmatprep.mubr.msk.f32.mxu0 %vm8660_vm4, %v8659_v26  ;;  %7375 = vmatprep.mubr.msk.f32.mxu1 %vm8660_vm4, %v8659_v26 }
 0x740   :  { %8128 = vmatprep.subr.bf16.mxu0 %v8657_v0 }
 0x742   :  { %7341 = vmatmul.mubr.msk.f32.gmra.mrb[226].mxu0 %vm5250_vm12, %v5248_v37  ;;  %7376 = vmatmul.mubr.msk.f32.gmra.mrb[214].mxu1 %vm5250_vm12, %v7038_v36  ;;  %v8139_v37 = vpack.c.bf16 %v5952_v10, %v5950_v23  ;;  %v5955_v36 = vld [vmem:[%s12230_s12 + $0x28] sm:$0xff] }
 0x743   :  { %7343 = vmatprep.mubr.msk.f32.mxu0 %vm8660_vm4, %v8659_v26  ;;  %7378 = vmatprep.mubr.msk.f32.mxu1 %vm8660_vm4, %v8659_v26 }
 0x746   :  { %7344 = vmatmul.mubr.msk.f32.gmra.mrb[228].mxu0 %vm5250_vm12, %v5249_v24  ;;  %7379 = vmatmul.mubr.msk.f32.gmra.mrb[216].mxu1 %vm5250_vm12, %v7039_v59  ;;  %v5957_v24 = vld [vmem:[%s12230_s12 + $0x38] sm:$0xff] }
 0x747   :  { %7395 = vmatprep.mubr.msk.f32.mxu0 %vm8660_vm4, %v8659_v26  ;;  %7430 = vmatprep.mubr.msk.f32.mxu1 %vm8660_vm4, %v8659_v26  ;;  %v8141_v59 = vpack.c.bf16 %v5957_v24, %v5955_v36 }
 0x74a   :  { %7396 = vmatmul.mubr.msk.f32.vlgmr.msra.gmra.mrb[230].mxu0 %vm5250_vm12, %v11733_v17  ;;  %v8135_v17 = vpack.c.bf16 %v7073_v22, %v7072_v41  ;;  %v5958_v41 = vld [vmem:[%s12230_s12 + $0x40] sm:$0xff]  ;;  %v5960_v22 = vld [vmem:[%s12230_s12 + $0x50] sm:$0xff] }
 0x74b   :  { %7398 = vmatprep.mubr.msk.f32.mxu0 %vm8660_vm4, %v8659_v26  ;;  %8130 = vmatpush3.bf16.msra.mxu0 %v8129_v5  ;;  %v8143_v5 = vpack.c.bf16 %v5956_v9, %v5954_v54 }
 0x74c   :  { %8131 = vmatprep.subr.bf16.mxu0 %v8657_v0 }
 0x74e   :  { %7399 = vmatmul.mubr.msk.f32.gmra.mrb[232].mxu0 %vm5250_vm12, %v11735_v19  ;;  %v5507_v19 = vld [vmem:[%s12228_s10 + $0x30] sm:$0xff] }
 0x74f   :  { %7401 = vmatprep.mubr.msk.f32.mxu0 %vm8660_vm4, %v8659_v26  ;;  %8133 = vmatpush3.bf16.msra.mxu0 %v8132_v50  ;;  %v8145_v50 = vpack.c.bf16 %v5961_v16, %v5959_v28 }
 0x750   :  { %8134 = vmatprep.subr.bf16.mxu0 %v8657_v0  ;;  %7429 = vmatpush3.msra.mxu1 %v5507_v19  ;;  %v5963_v19 = vld [vmem:[%s12230_s12 + $0x68] sm:$0xff] }
 0x751   :  { %8138 = vmatprep.subr.bf16.mxu1 %v8137_v14 }
 0x752   :  { %7402 = vmatmul.mubr.msk.f32.gmra.mrb[234].mxu0 %vm5250_vm12, %v11742_v55 }
 0x753   :  { %7404 = vmatprep.mubr.msk.f32.mxu0 %vm8660_vm4, %v8659_v26  ;;  %8136 = vmatpush3.bf16.msra.mxu0 %v8135_v17  ;;  %v8147_v17 = vpack.c.bf16 %v5960_v22, %v5958_v41 }
 0x754   :  { %7463 = vmatprep.subr.mxu0 %v8659_v26 }
 0x756   :  { %7405 = vmatmul.mubr.msk.f32.gmra.mrb[236].mxu0 %vm5250_vm12, %v11744_v38 }
 0x757   :  { %7407 = vmatprep.mubr.msk.f32.mxu0 %vm8660_vm4, %v8659_v26  ;;  %7464 = vmatpush3.msra.mxu0 %v7074_v18  ;;  %v5962_v18 = vld [vmem:[%s12230_s12 + $0x60] sm:$0xff] }
 0x75a   :  { %7408 = vmatmul.mubr.msk.f32.gmra.mrb[238].mxu0 %vm5250_vm12, %v11750_v34 }
 0x75b   :  { %7410 = vmatprep.mubr.msk.f32.mxu0 %vm8660_vm4, %v8659_v26 }
 0x75e   :  { %7411 = vmatmul.mubr.msk.f32.gmra.mrb[240].mxu0 %vm5250_vm12, %v11752_v8 }
 0x75f   :  { %7413 = vmatprep.mubr.msk.f32.mxu0 %vm8660_vm4, %v8659_v26 }
 0x762   :  { %7414 = vmatmul.mubr.msk.f32.gmra.mrb[242].mxu0 %vm5250_vm12, %v11776_v4 }
 0x763   :  { %7465 = vmatprep.mubr.msk.f32.mxu0 %vm8660_vm4, %v8659_v26 }
 0x801   :  { %v5338_v56 = vpop.f32.mrb[216].mxu0  ;;  %v5467_v61 = vpop.f32.mrb[204].mxu1 }
 0x802   :  { %v7327_v62 = vpop.f32.mrb[217].mxu0  ;;  %7431 = vmatmul.mubr.msk.f32.vlgmr.msra.gmra.mrb[218].mxu1 %vm5250_vm12, %v5338_v56  ;;  %v7362_v49 = vpop.f32.mrb[205].mxu1  ;;  %7466 = vmatmul.mubr.msk.f32.vlgmr.msra.gmra.mrb[244].mxu0 %vm5250_vm12, %v5467_v61 }
 0x803   :  { %7433 = vmatprep.mubr.msk.f32.mxu1 %vm8660_vm4, %v8659_v26  ;;  %7468 = vmatprep.mubr.msk.f32.mxu0 %vm8660_vm4, %v8659_v26 }
 0x804   :  { %8140 = vmatpush1.bf16.msra.mxu1 %v8139_v37 }
 0x805   :  { %v5343_v47 = vpop.f32.mrb[218].mxu0  ;;  %v5472_v55 = vpop.f32.mrb[206].mxu1  ;;  %8142 = vmatprep.subr.bf16.mxu1 %v8141_v59 }
 0x806   :  { %v7330_v38 = vpop.f32.mrb[219].mxu0  ;;  %7434 = vmatmul.mubr.msk.f32.gmra.mrb[220].mxu1 %vm5250_vm12, %v5343_v47  ;;  %v7365_v52 = vpop.f32.mrb[207].mxu1  ;;  %7469 = vmatmul.mubr.msk.f32.gmra.mrb[246].mxu0 %vm5250_vm12, %v5472_v55  ;;  %v12043_v55 = vld [vmem:[%s12231_s11] ss:$0 sm:$0xff] }
 0x807   :  { %7436 = vmatprep.mubr.msk.f32.mxu1 %vm8660_vm4, %v8659_v26  ;;  %7471 = vmatprep.mubr.msk.f32.mxu0 %vm8660_vm4, %v8659_v26 }
 0x808   :  { %8144 = vmatpush1.bf16.msra.mxu1 %v8143_v5 }
 0x809   :  { %v5348_v2 = vpop.f32.mrb[220].mxu0  ;;  %v5477_v44 = vpop.f32.mrb[208].mxu1  ;;  %8146 = vmatprep.subr.bf16.mxu1 %v8145_v50 }
 0x80a   :  { %v7333_v12 = vpop.f32.mrb[221].mxu0  ;;  %7437 = vmatmul.mubr.msk.f32.gmra.mrb[222].mxu1 %vm5250_vm12, %v5348_v2  ;;  %v7368_v1 = vpop.f32.mrb[209].mxu1  ;;  %7472 = vmatmul.mubr.msk.f32.gmra.mrb[248].mxu0 %vm5250_vm12, %v5477_v44 }
 0x80b   :  { %7439 = vmatprep.mubr.msk.f32.mxu1 %vm8660_vm4, %v8659_v26  ;;  %7474 = vmatprep.mubr.msk.f32.mxu0 %vm8660_vm4, %v8659_v26 }
 0x80c   :  { %8148 = vmatpush1.bf16.msra.mxu1 %v8147_v17 }
 0x80d   :  { %v5353_v34 = vpop.f32.mrb[222].mxu0  ;;  %v5482_v8 = vpop.f32.mrb[210].mxu1  ;;  %5997 = vmatprep.subr.mxu1 %v5963_v19 }
 0x80e   :  { %v7336_v15 = vpop.f32.mrb[223].mxu0  ;;  %7440 = vmatmul.mubr.msk.f32.gmra.mrb[224].mxu1 %vm5250_vm12, %v5353_v34  ;;  %v7371_v7 = vpop.f32.mrb[211].mxu1  ;;  %7475 = vmatmul.mubr.msk.f32.gmra.mrb[250].mxu0 %vm5250_vm12, %v5482_v8 }
 0x80f   :  { %7442 = vmatprep.mubr.msk.f32.mxu1 %vm8660_vm4, %v8659_v26  ;;  %7477 = vmatprep.mubr.msk.f32.mxu0 %vm8660_vm4, %v8659_v26 }
 0x810   :  { %5998 = vmatpush1.msra.mxu1 %v5962_v18 }
 0x811   :  { %v5358_v63 = vpop.f32.mrb[224].mxu0  ;;  %v5487_v40 = vpop.f32.mrb[212].mxu1  ;;  %8161 = vmatprep.subr.bf16.mxu1 %v8657_v0 }
 0x812   :  { %v7339_v20 = vpop.f32.mrb[225].mxu0  ;;  %7443 = vmatmul.mubr.msk.f32.gmra.mrb[226].mxu1 %vm5250_vm12, %v5358_v63  ;;  %v7374_v13 = vpop.f32.mrb[213].mxu1  ;;  %7478 = vmatmul.mubr.msk.f32.gmra.mrb[252].mxu0 %vm5250_vm12, %v5487_v40 }
 0x813   :  { %7445 = vmatprep.mubr.msk.f32.mxu1 %vm8660_vm4, %v8659_v26  ;;  %7480 = vmatprep.mubr.msk.f32.mxu0 %vm8660_vm4, %v8659_v26 }
 0x815   :  { %v5363_v53 = vpop.f32.mrb[226].mxu0  ;;  %v5492_v33 = vpop.f32.mrb[214].mxu1 }
 0x816   :  { %v7342_v35 = vpop.f32.mrb[227].mxu0  ;;  %7446 = vmatmul.mubr.msk.f32.gmra.mrb[228].mxu1 %vm5250_vm12, %v5363_v53  ;;  %v7377_v4 = vpop.f32.mrb[215].mxu1  ;;  %7481 = vmatmul.mubr.msk.f32.gmra.mrb[254].mxu0 %vm5250_vm12, %v5492_v33 }
 0x817   :  { %7448 = vmatprep.mubr.msk.f32.mxu1 %vm8660_vm4, %v8659_v26  ;;  %7483 = vmatprep.mubr.msk.f32.mxu0 %vm8660_vm4, %v8659_v26 }
 0x819   :  { %v5368_v21 = vpop.f32.mrb[228].mxu0  ;;  %v5497_v43 = vpop.f32.mrb[216].mxu1 }
 0x81a   :  { %7449 = vmatmul.mubr.msk.f32.gmra.mrb[230].mxu1 %vm5250_vm12, %v5368_v21  ;;  %v7345_v57 = vpop.f32.mrb[229].mxu0  ;;  %7484 = vmatmul.mubr.msk.f32.gmra.mrb[0].mxu0 %vm5250_vm12, %v5497_v43  ;;  %v7380_v39 = vpop.f32.mrb[217].mxu1 }
 0x81b   :  { %6049 = vmatprep.mubr.f32.mxu1 %v8659_v26  ;;  %6188 = vmatprep.mubr.f32.mxu0 %v8659_v26 }
 0x81d   :  { %v5603_v58 = vpop.f32.mrb[230].mxu0 }
 0x81e   :  { %v7397_v11 = vpop.f32.mrb[231].mxu0 }
 0x821   :  { %v5608_v51 = vpop.f32.mrb[232].mxu0 }
 0x822   :  { %v7400_v31 = vpop.f32.mrb[233].mxu0 }
 0x825   :  { %v5613_v3 = vpop.f32.mrb[234].mxu0 }
 0x826   :  { %v7403_v45 = vpop.f32.mrb[235].mxu0 }
 0x829   :  { %v11989_v60 = vpop.f32.mrb[236].mxu0 }
 0x82a   :  { %v7406_v30 = vpop.f32.mrb[237].mxu0 }
 0x82d   :  { %v11991_v29 = vpop.f32.mrb[238].mxu0 }
 0x82e   :  { %v7409_v48 = vpop.f32.mrb[239].mxu0 }
 0x831   :  { %v11993_v25 = vpop.f32.mrb[240].mxu0 }
 0x832   :  { %v7412_v42 = vpop.f32.mrb[241].mxu0 }
 0x835   :  { %v11995_v32 = vpop.f32.mrb[242].mxu0 }
 0x836   :  { %v7415_v27 = vpop.f32.mrb[243].mxu0 }
 0x8d5   :  { %v5724_v56 = vpop.f32.mrb[218].mxu1  ;;  %v5853_v61 = vpop.f32.mrb[244].mxu0 }
 0x8d6   :  { %v5725_v62 = vadd.f32 %v5724_v56, %v5603_v58  ;;  %v7432_v49 = vpop.f32.mrb[219].mxu1  ;;  %v7467_v47 = vpop.f32.mrb[245].mxu0 }
 0x8d8   :  { %v5887_v38 = vadd.f32 %v5853_v61, %v5725_v62 }
 0x8d9   :  { %v5729_v52 = vpop.f32.mrb[220].mxu1  ;;  %v5858_v2 = vpop.f32.mrb[246].mxu0 }
 0x8da   :  { %v5901_v44 = vadd.f32 %v12043_v55, %v5887_v38  ;;  %v5730_v12 = vadd.f32 %v5729_v52, %v5608_v51  ;;  %v7435_v1 = vpop.f32.mrb[221].mxu1  ;;  %v7470_v34 = vpop.f32.mrb[247].mxu0 }
 0x8dc   :  { %v5915_v8 = vmin.f32 %v5901_v44, 0.0  ;;  %v5888_v15 = vadd.f32 %v5858_v2, %v5730_v12  ;;  %vm5908_vm13 = vcmp.gt.f32.partialorder %v5901_v44, 0.0 }
 0x8dd   :  { %v5734_v7 = vpop.f32.mrb[222].mxu1  ;;  %v5863_v63 = vpop.f32.mrb[248].mxu0 }
 0x8de   :  { %v5922_v40 = vmul.f32 1.442695, %v5915_v8  ;;  %v5902_v20 = vadd.f32 %v12043_v55, %v5888_v15  ;;  %v5735_v13 = vadd.f32 %v5734_v7, %v5613_v3  ;;  %v7438_v53 = vpop.f32.mrb[223].mxu1  ;;  %v7473_v33 = vpop.f32.mrb[249].mxu0 }
 0x8e0   :  { %8641 = vpow2.f32 %v5922_v40  ;;  %v5916_v35 = vmin.f32 %v5902_v20, 0.0  ;;  %v5889_v4 = vadd.f32 %v5863_v63, %v5735_v13  ;;  %vm5909_vm14 = vcmp.gt.f32.partialorder %v5902_v20, 0.0 }
 0x8e1   :  { %v5739_v21 = vpop.f32.mrb[224].mxu1  ;;  %v5868_v43 = vpop.f32.mrb[250].mxu0 }
 0x8e2   :  { %v5924_v57 = vmul.f32 1.442695, %v5916_v35  ;;  %v5903_v39 = vadd.f32 %v12043_v55, %v5889_v4  ;;  %v5740_v58 = vadd.f32 %v5739_v21, %v11989_v60  ;;  %v7441_v11 = vpop.f32.mrb[225].mxu1  ;;  %v7476_v51 = vpop.f32.mrb[251].mxu0  ;;  %v6195_v4 = vld [vmem:[%s12232_s15] sm:$0xff]  ;;  %v6196_v21 = vld [vmem:[%s12232_s15 + $0x8] sm:$0xff] }
 0x8e3   :  { %v6200_v11 = vld [vmem:[%s12232_s15 + $0x28] sm:$0xff] }
 0x8e4   :  { %8643 = vpow2.f32 %v5924_v57  ;;  %v5917_v31 = vmin.f32 %v5903_v39, 0.0  ;;  %v5890_v45 = vadd.f32 %v5868_v43, %v5740_v58  ;;  %vm5910_vm15 = vcmp.gt.f32.partialorder %v5903_v39, 0.0  ;;  %v6197_v43 = vld [vmem:[%s12232_s15 + $0x10] sm:$0xff]  ;;  %v6199_v58 = vld [vmem:[%s12232_s15 + $0x20] sm:$0xff] }
 0x8e5   :  { %v5744_v30 = vpop.f32.mrb[226].mxu1  ;;  %v5873_v48 = vpop.f32.mrb[252].mxu0  ;;  %v8162_v57 = vpack.c.bf16 %v6196_v21, %v6195_v4  ;;  %v8168_v51 = vpack.c.bf16 %v6200_v11, %v6199_v58  ;;  %v6102_v58 = vld [vmem:[%s12233_s13 + $0x50] sm:$0xff]  ;;  %v6101_v11 = vld [vmem:[%s12233_s13 + $0x48] sm:$0xff] }
 0x8e6   :  { %v5926_v3 = vmul.f32 1.442695, %v5917_v31  ;;  %v5904_v42 = vadd.f32 %v12043_v55, %v5890_v45  ;;  %v5745_v27 = vadd.f32 %v5744_v30, %v11991_v29  ;;  %v7444_v46 = vpop.f32.mrb[227].mxu1  ;;  %v7479_v6 = vpop.f32.mrb[253].mxu0  ;;  %v6201_v31 = vld [vmem:[%s12232_s15 + $0x30] sm:$0xff]  ;;  %v6202_v45 = vld [vmem:[%s12232_s15 + $0x38] sm:$0xff] }
 0x8e7   :  { %v8171_v30 = vpack.c.bf16 %v6202_v45, %v6201_v31  ;;  %v6206_v46 = vld [vmem:[%s12232_s15 + $0x58] sm:$0xff] }
 0x8e8   :  { %8645 = vpow2.f32 %v5926_v3  ;;  %v5918_v14 = vmin.f32 %v5904_v42, 0.0  ;;  %v5891_v23 = vadd.f32 %v5873_v48, %v5745_v27  ;;  %vm5911_vm1 = vcmp.gt.f32.partialorder %v5904_v42, 0.0  ;;  %v6203_v48 = vld [vmem:[%s12232_s15 + $0x40] sm:$0xff]  ;;  %v6204_v3 = vld [vmem:[%s12232_s15 + $0x48] sm:$0xff]  ;;  %v6205_v27 = vld [vmem:[%s12232_s15 + $0x50] sm:$0xff] }
 0x8e9   :  { %v5749_v10 = vpop.f32.mrb[228].mxu1  ;;  %v5878_v37 = vpop.f32.mrb[254].mxu0  ;;  %v8177_v6 = vpack.c.bf16 %v6206_v46, %v6205_v27  ;;  %v6105_v46 = vld [vmem:[%s12233_s13 + $0x68] sm:$0xff] }
 0x8ea   :  { %v8642_v60 = vpop.eup %8641  ;;  %v5928_v36 = vmul.f32 1.442695, %v5918_v14  ;;  %v5905_v24 = vadd.f32 %v12043_v55, %v5891_v23  ;;  %v5750_v59 = vadd.f32 %v5749_v10, %v11993_v25  ;;  %v7447_v54 = vpop.f32.mrb[229].mxu1  ;;  %v6207_v14 = vld [vmem:[%s12232_s15 + $0x60] sm:$0xff]  ;;  %v6208_v23 = vld [vmem:[%s12232_s15 + $0x68] sm:$0xff] }
 0x8eb   :  { %v7482_v9 = vpop.f32.mrb[255].mxu0  ;;  %v7083_v5 = vadd.f32 -1.0, %v8642_v60  ;;  %v8180_v10 = vpack.c.bf16 %v6208_v23, %v6207_v14  ;;  %v6210_v60 = vld [vmem:[%s12232_s15 + $0x78] sm:$0xff] }
 0x8ec   :  { %8647 = vpow2.f32 %v5928_v36  ;;  %v5919_v28 = vmin.f32 %v5905_v24, 0.0  ;;  %v5892_v29 = vadd.f32 %v5878_v37, %v5750_v59  ;;  %vm5912_vm2 = vcmp.gt.f32.partialorder %v5905_v24, 0.0  ;;  %v6209_v37 = vld [vmem:[%s12232_s15 + $0x70] sm:$0xff]  ;;  %v6212_v59 = vld [vmem:[%s12232_s15 + $0x88] sm:$0xff] }
 0x8ed   :  { %v5943_v16 = vsel %vm5908_vm13, %v5901_v44, %v7083_v5  ;;  %v5754_v50 = vpop.f32.mrb[230].mxu1  ;;  %v5883_v41 = vpop.f32.mrb[0].mxu0  ;;  %v8183_v36 = vpack.c.bf16 %v6210_v60, %v6209_v37  ;;  %v6213_v9 = vld [vmem:[%s12232_s15 + $0x90] sm:$0xff]  ;;  %v6214_v5 = vld [vmem:[%s12232_s15 + $0x98] sm:$0xff] }
 0x8ee   :  { %v8644_v22 = vpop.eup %8643  ;;  %v5930_v17 = vmul.f32 1.442695, %v5919_v28  ;;  %v5906_v19 = vadd.f32 %v12043_v55, %v5892_v29  ;;  %v5755_v18 = vadd.f32 %v5754_v50, %v11995_v32  ;;  %7090 = vmatmul.mubr.msk.f32.vlgmr.msra.gmra.mrb[232].mxu1 %vm5250_vm12, %v5943_v16  ;;  %v7450_v56 = vpop.f32.mrb[231].mxu1  ;;  %v8189_v28 = vpack.c.bf16 %v6214_v5, %v6213_v9  ;;  %v6215_v29 = vld [vmem:[%s12232_s15 + $0xa0] sm:$0xff]  ;;  %v6216_v16 = vld [vmem:[%s12232_s15 + $0xa8] sm:$0xff] }
 0x8ef   :  { %v7485_v25 = vpop.f32.mrb[1].mxu0  ;;  %6055 = vmatprep.mubr.f32.mxu1 %v8659_v26  ;;  %v7084_v61 = vadd.f32 -1.0, %v8644_v22  ;;  %8163 = vmatpush1.bf16.msra.mxu1 %v8162_v57  ;;  %v8192_v50 = vpack.c.bf16 %v6216_v16, %v6215_v29  ;;  %v6218_v22 = vld [vmem:[%s12232_s15 + $0xb8] sm:$0xff] }
 0x8f0   :  { %8649 = vpow2.f32 %v5930_v17  ;;  %v5920_v62 = vmin.f32 %v5906_v19, 0.0  ;;  %v5893_v49 = vadd.f32 %v5883_v41, %v5755_v18  ;;  %vm5913_vm3 = vcmp.gt.f32.partialorder %v5906_v19, 0.0  ;;  %8164 = vmatprep.subr.bf16.mxu1 %v8657_v0  ;;  %v6217_v41 = vld [vmem:[%s12232_s15 + $0xb0] sm:$0xff]  ;;  %v6220_v18 = vld [vmem:[%s12232_s15 + $0xc8] sm:$0xff] }
 0x8f1   :  { %v5944_v47 = vsel %vm5909_vm14, %v5902_v20, %v7084_v61  ;;  %v8195_v17 = vpack.c.bf16 %v6218_v22, %v6217_v41 }
 0x8f2   :  { %v8646_v38 = vpop.eup %8645  ;;  %v5932_v52 = vmul.f32 1.442695, %v5920_v62  ;;  %v5907_v2 = vadd.f32 %v12043_v55, %v5893_v49  ;;  %7091 = vmatmul.mubr.msk.f32.gmra.mrb[234].mxu1 %vm5250_vm12, %v5944_v47  ;;  %v6092_v62 = vld [vmem:[%s12233_s13] sm:$0xff]  ;;  %v6094_v49 = vld [vmem:[%s12233_s13 + $0x10] sm:$0xff]  ;;  %v6093_v47 = vld [vmem:[%s12233_s13 + $0x8] sm:$0xff] }
 0x8f3   :  { %6061 = vmatprep.mubr.f32.mxu1 %v8659_v26  ;;  %v7085_v32 = vadd.f32 -1.0, %v8646_v38  ;;  %v6095_v38 = vld [vmem:[%s12233_s13 + $0x18] sm:$0xff] }
 0x8f4   :  { %8651 = vpow2.f32 %v5932_v52  ;;  %v5921_v44 = vmin.f32 %v5907_v2, 0.0  ;;  %vm5914_vm4 = vcmp.gt.f32.partialorder %v5907_v2, 0.0 }
 0x8f5   :  { %v5945_v12 = vsel %vm5910_vm15, %v5903_v39, %v7085_v32 }
 0x8f6   :  { %v8648_v1 = vpop.eup %8647  ;;  %v5934_v34 = vmul.f32 1.442695, %v5921_v44  ;;  %7092 = vmatmul.mubr.msk.f32.gmra.mrb[236].mxu1 %vm5250_vm12, %v5945_v12 }
 0x8f7   :  { %6067 = vmatprep.mubr.f32.mxu1 %v8659_v26  ;;  %v7086_v8 = vadd.f32 -1.0, %v8648_v1 }
 0x8f8   :  { %8653 = vpow2.f32 %v5934_v34 }
 0x8f9   :  { %v5946_v15 = vsel %vm5911_vm1, %v5904_v42, %v7086_v8  ;;  %v8174_v42 = vpack.c.bf16 %v6204_v3, %v6203_v48 }
 0x8fa   :  { %v8650_v55 = vpop.eup %8649  ;;  %7093 = vmatmul.mubr.msk.f32.gmra.mrb[238].mxu1 %vm5250_vm12, %v5946_v15 }
 0x8fb   :  { %6073 = vmatprep.mubr.f32.mxu1 %v8659_v26  ;;  %v7087_v7 = vadd.f32 -1.0, %v8650_v55  ;;  %v6096_v55 = vld [vmem:[%s12233_s13 + $0x20] sm:$0xff] }
 0x8fd   :  { %v5947_v63 = vsel %vm5912_vm2, %v5905_v24, %v7087_v7  ;;  %v6211_v24 = vld [vmem:[%s12232_s15 + $0x80] sm:$0xff]  ;;  %v6098_v7 = vld [vmem:[%s12233_s13 + $0x30] sm:$0xff] }
 0x8fe   :  { %v8652_v40 = vpop.eup %8651  ;;  %7094 = vmatmul.mubr.msk.f32.gmra.mrb[240].mxu1 %vm5250_vm12, %v5947_v63  ;;  %v8186_v54 = vpack.c.bf16 %v6212_v59, %v6211_v24  ;;  %v6097_v63 = vld [vmem:[%s12233_s13 + $0x28] sm:$0xff]  ;;  %v6221_v24 = vld [vmem:[%s12232_s15 + $0xd0] sm:$0xff]  ;;  %v6222_v59 = vld [vmem:[%s12232_s15 + $0xd8] sm:$0xff] }
 0x8ff   :  { %6079 = vmatprep.mubr.f32.mxu1 %v8659_v26  ;;  %v7088_v20 = vadd.f32 -1.0, %v8652_v40  ;;  %v6099_v40 = vld [vmem:[%s12233_s13 + $0x38] sm:$0xff] }
 0x901   :  { %v5948_v13 = vsel %vm5913_vm3, %v5906_v19, %v7088_v20  ;;  %v6219_v19 = vld [vmem:[%s12232_s15 + $0xc0] sm:$0xff] }
 0x902   :  { %v8654_v53 = vpop.eup %8653  ;;  %7095 = vmatmul.mubr.msk.f32.gmra.mrb[242].mxu1 %vm5250_vm12, %v5948_v13  ;;  %v8198_v56 = vpack.c.bf16 %v6220_v18, %v6219_v19 }
 0x903   :  { %6085 = vmatprep.mubr.f32.mxu1 %v8659_v26  ;;  %v7089_v33 = vadd.f32 -1.0, %v8654_v53  ;;  %v6198_v26 = vld [vmem:[%s12232_s15 + $0x18] sm:$0xff] }
 0x904   :  { %v8165_v39 = vpack.c.bf16 %v6198_v26, %v6197_v43 }
 0x905   :  { %v5949_v35 = vsel %vm5914_vm4, %v5907_v2, %v7089_v33 }
 0x906   :  { %7096 = vmatmul.mubr.msk.f32.gmra.mrb[244].mxu1 %vm5250_vm12, %v5949_v35 }
 0x907   :  { %8166 = vmatpush1.bf16.msra.mxu1 %v8165_v39  ;;  %v6100_v39 = vld [vmem:[%s12233_s13 + $0x40] sm:$0xff] }
 0x908   :  { %8167 = vmatprep.subr.bf16.mxu1 %v8657_v0 }
 0x90b   :  { %8169 = vmatpush1.bf16.msra.mxu1 %v8168_v51  ;;  %v6103_v51 = vld [vmem:[%s12233_s13 + $0x58] sm:$0xff] }
 0x90c   :  { %8170 = vmatprep.subr.bf16.mxu1 %v8657_v0 }
 0x90f   :  { %8172 = vmatpush1.bf16.msra.mxu1 %v8171_v30 }
 0x910   :  { %8173 = vmatprep.subr.bf16.mxu1 %v8657_v0 }
 0x913   :  { %8175 = vmatpush1.bf16.msra.mxu1 %v8174_v42 }
 0x914   :  { %8176 = vmatprep.subr.bf16.mxu1 %v8657_v0 }
 0x917   :  { %8178 = vmatpush1.bf16.msra.mxu1 %v8177_v6 }
 0x918   :  { %8179 = vmatprep.subr.bf16.mxu1 %v8657_v0 }
 0x91b   :  { %8181 = vmatpush1.bf16.msra.mxu1 %v8180_v10  ;;  %v6104_v10 = vld [vmem:[%s12233_s13 + $0x60] sm:$0xff] }
 0x91c   :  { %8182 = vmatprep.subr.bf16.mxu1 %v8657_v0 }
 0x91f   :  { %8184 = vmatpush1.bf16.msra.mxu1 %v8183_v36  ;;  %v6120_v36 = vld [vmem:[%s12234_s14] sm:$0xff] }
 0x920   :  { %8185 = vmatprep.subr.bf16.mxu1 %v8657_v0 }
 0x923   :  { %8187 = vmatpush1.bf16.msra.mxu1 %v8186_v54  ;;  %v8201_v54 = vpack.c.bf16 %v6222_v59, %v6221_v24 }
 0x924   :  { %8188 = vmatprep.subr.bf16.mxu1 %v8657_v0 }
 0x927   :  { %8190 = vmatpush1.bf16.msra.mxu1 %v8189_v28  ;;  %v7098_v28 = vld [vmem:[%s12235_s16] ss:$0 sm:$0xff] }
 0x928   :  { %8191 = vmatprep.subr.bf16.mxu1 %v8657_v0 }
 0x92b   :  { %8193 = vmatpush1.bf16.msra.mxu1 %v8192_v50 }
 0x92c   :  { %8194 = vmatprep.subr.bf16.mxu1 %v8657_v0 }
 0x92f   :  { %8196 = vmatpush1.bf16.msra.mxu1 %v8195_v17 }
 0x930   :  { %8197 = vmatprep.subr.bf16.mxu1 %v8657_v0 }
 0x933   :  { %8199 = vmatpush1.bf16.msra.mxu1 %v8198_v56 }
 0x934   :  { %8200 = vmatprep.subr.bf16.mxu1 %v8657_v0 }
 0x937   :  { %8202 = vmatpush1.bf16.msra.mxu1 %v8201_v54 }
 0x9c1   :  { %v6051_v25 = vpop.f32.mrb[232].mxu1 }
 0x9c2   :  { %v6053_v61 = vpop.f32.mrb[233].mxu1  ;;  %v6106_v0 = vmul.f32 %v6092_v62, %v6051_v25 }
 0x9c3   :  { %v6107_v44 = vmul.f32 %v6093_v47, %v6053_v61 }
 0x9c5   :  { %v6057_v52 = vpop.f32.mrb[234].mxu1 }
 0x9c6   :  { %v6108_v2 = vmul.f32 %v6094_v49, %v6057_v52  ;;  %v6059_v32 = vpop.f32.mrb[235].mxu1 }
 0x9c7   :  { %v6109_v12 = vmul.f32 %v6095_v38, %v6059_v32 }
 0x9c8   :  { %v8151_v1 = vpack.c.bf16 %v6108_v2, %v6106_v0 }
 0x9c9   :  { %v8149_v34 = vpack.c.bf16 %v6109_v12, %v6107_v44  ;;  %v6063_v8 = vpop.f32.mrb[236].mxu1 }
 0x9ca   :  { %v6065_v15 = vpop.f32.mrb[237].mxu1  ;;  %v6110_v13 = vmul.f32 %v6096_v55, %v6063_v8 }
 0x9cb   :  { %8150 = vmatprep.subr.bf16.mxu0 %v8149_v34  ;;  %v6111_v35 = vmul.f32 %v6097_v63, %v6065_v15 }
 0x9cc   :  { %8152 = vmatpush1.bf16.msra.mxu0 %v8151_v1 }
 0x9cd   :  { %v6069_v20 = vpop.f32.mrb[238].mxu1 }
 0x9ce   :  { %v6112_v53 = vmul.f32 %v6098_v7, %v6069_v20  ;;  %v6071_v33 = vpop.f32.mrb[239].mxu1 }
 0x9cf   :  { %v6113_v4 = vmul.f32 %v6099_v40, %v6071_v33 }
 0x9d0   :  { %v8155_v21 = vpack.c.bf16 %v6112_v53, %v6110_v13 }
 0x9d1   :  { %v8153_v43 = vpack.c.bf16 %v6113_v4, %v6111_v35  ;;  %v6075_v57 = vpop.f32.mrb[240].mxu1 }
 0x9d2   :  { %v6077_v26 = vpop.f32.mrb[241].mxu1  ;;  %v6114_v45 = vmul.f32 %v6100_v39, %v6075_v57 }
 0x9d3   :  { %8154 = vmatprep.subr.bf16.mxu0 %v8153_v43  ;;  %v6115_v3 = vmul.f32 %v6101_v11, %v6077_v26 }
 0x9d4   :  { %8156 = vmatpush1.bf16.msra.mxu0 %v8155_v21 }
 0x9d5   :  { %v6081_v31 = vpop.f32.mrb[242].mxu1 }
 0x9d6   :  { %v6116_v30 = vmul.f32 %v6102_v58, %v6081_v31  ;;  %v6083_v48 = vpop.f32.mrb[243].mxu1 }
 0x9d7   :  { %v6117_v42 = vmul.f32 %v6103_v51, %v6083_v48 }
 0x9d8   :  { %v8159_v27 = vpack.c.bf16 %v6116_v30, %v6114_v45 }
 0x9d9   :  { %v8157_v6 = vpack.c.bf16 %v6117_v42, %v6115_v3  ;;  %v6087_v14 = vpop.f32.mrb[244].mxu1 }
 0x9da   :  { %v6089_v23 = vpop.f32.mrb[245].mxu1  ;;  %v6118_v60 = vmul.f32 %v6104_v10, %v6087_v14 }
 0x9db   :  { %v6119_v37 = vmul.f32 %v6105_v46, %v6089_v23  ;;  %8158 = vmatprep.subr.bf16.mxu0 %v8157_v6 }
 0x9dc   :  { %8160 = vmatpush1.bf16.msra.mxu0 %v8159_v27 }
 0x9dd   :  { %6136 = vmatprep.subr.mxu0 %v6119_v37 }
 0x9e0   :  { %6137 = vmatpush1.msra.mxu0 %v6118_v60 }
 0x9e1   :  { %7097 = vmatmul.mubr.msk.f32.vlgmr.msra.gmra.mrb[2].mxu0 %vm5250_vm12, %v6120_v36 }
 0xab4   :  { %v6190_v9 = vpop.f32.mrb[2].mxu0 }
 0xab5   :  { %v6192_v5 = vpop.f32.mrb[3].mxu0 }
 0xab6   :  { %7099 = vmatprep.mubr.msk.f32.mxu1 %vm140_vm0, %v6192_v5 }
 0xab7   :  { %6298 = vmatmul.mubr.f32.vlgmr.msra.gmra.mrb[246].mxu1 %v6190_v9 }
 0xb8a   :  { %v6299_v29 = vpop.f32.mrb[246].mxu1 }
 0xb8b   :  { %v6300_v16 = vadd.f32 %v7098_v28, %v6299_v29  ;;  %v6301_v50 = vpop.f32.mrb[247].mxu1 }
 0xb8d   :  { %v6304_v41 = vmin.f32 %v6300_v16, 0.0  ;;  %vm6303_vm6 = vcmp.gt.f32.partialorder %v6300_v16, 0.0 }
 0xb8f   :  { %v6305_v22 = vmul.f32 1.442695, %v6304_v41 }
 0xb91   :  { %8655 = vpow2.f32 %v6305_v22 }
 0xb9b   :  { %v8656_v17 = vpop.eup %8655 }
 0xb9c   :  { %v7100_v19 = vadd.f32 -1.0, %v8656_v17 }
 0xb9e   :  { %v6308_v18 = vsel %vm6303_vm6, %v6300_v16, %v7100_v19 }
 0xb9f   :  { %6310 = vst.msk [vmem:[%s12236_s17] sm:$0xff] %vm6309_vm5, %v6308_v18 }

</bundles_post_ra>
